<compile_context>
chip_gen: v7x
topology: tpu7x:2x2x1
jax: 0.10.0
libtpu: 0.0.40
codegen_flags: <defaults>
</compile_context>

<pallas_src>
import functools

import jax
import jax.numpy as jnp
from jax.experimental import pallas as pl
from jax.experimental.pallas import tpu as pltpu
from jax.scipy.linalg import block_diag

_ROW_ALIGN = 16  # sublane alignment; 16 keeps bf16 (16,128) packing happy


def _hw_config():
    """Per-generation tiling / VMEM budget.  Conservative (v7x-class) when unknown."""
    try:
        kind = jax.devices()[0].device_kind.lower()
    except Exception:
        kind = ""
    if any(tag in kind for tag in ("v3", "v4", "v5", "v6")):
        # single TensorCore, 128 MiB physical VMEM: bigger tiles amortize per-step cost
        return {"row_cap": 1024, "vmem": 64 * 1024 * 1024, "min_steps": 1}
    # v7x-class (2 TCs, 64 MiB VMEM) or unknown: smaller budget, >= 2 parallel steps
    return {"row_cap": 512, "vmem": 32 * 1024 * 1024, "min_steps": 2}


_CFG = _hw_config()


# ------------------------------------------------------------------ helpers

def _round_up(x, m):
    return ((x + m - 1) // m) * m


def _cdiv(a, b):
    return -(-a // b)


def _n_steps_for(m, cfg):
    steps = max(1, _cdiv(m, cfg["row_cap"]))
    if m >= 16:
        steps = max(steps, cfg["min_steps"])   # engage both TCs on v7x-class chips
    return steps


def _tile_rows(m, n_steps):
    tm = _round_up(max(1, _cdiv(m, n_steps)), _ROW_ALIGN)
    return tm, tm * n_steps


def _pad_rows(x, m_pad):
    pad = m_pad - x.shape[0]
    if pad:
        x = jnp.pad(x, ((0, pad), (0, 0)))
    return x


# ------------------------------------------------------------------ kernels

def _conv_pool_kernel(p_ref, w_ref, b_ref, o_ref, *, tm):
    """Fused Conv3x3 (im2col matmul) + bias + ReLU + MaxPool2d(2).

    p_ref stacks the im2col patches of the 4 pixels of each 2x2 pool window along the
    row axis (group-major within the tile) -> a single bf16 MXU dot; the pool is a
    VPU max over the 4 row groups (max(relu(y_i + b)) == relu(max_i y_i + b)).
    """
    y = jnp.dot(p_ref[...], w_ref[...], preferred_element_type=jnp.float32)
    y = jnp.maximum(jnp.maximum(y[0 * tm:1 * tm], y[1 * tm:2 * tm]),
                    jnp.maximum(y[2 * tm:3 * tm], y[3 * tm:4 * tm]))
    o_ref[...] = jnp.maximum(y + b_ref[...], 0.0).astype(o_ref.dtype)


def _multi_chain_kernel(*refs, chains):
    """Several independent fused matmul chains; all intermediates stay on-chip.

    refs = (x_0, w_0_1, b_0_1, ..., x_1, w_1_1, b_1_1, ..., out_0, out_1, ...)
    chains = tuple of per-chain activation tuples.
    """
    out_refs = refs[-len(chains):]
    pos = 0
    for acts, o_ref in zip(chains, out_refs):
        y = refs[pos][...]
        pos += 1
        n_layers = len(acts)
        for li in range(n_layers):
            w_ref, b_ref = refs[pos], refs[pos + 1]
            pos += 2
            y = jnp.dot(y, w_ref[...], preferred_element_type=jnp.float32) + b_ref[...]
            act = acts[li]
            if act == "relu":
                y = jnp.maximum(y, 0.0)
            elif act == "tanh":
                y = jnp.tanh(y)
            elif act == "sigmoid":
                # EUP exp + approx reciprocal (EUP slot) instead of a VPU divide;
                # clip so the approximation can never leave [0, 1].
                y = jnp.clip(pl.reciprocal(1.0 + jnp.exp(-y), approx=True), 0.0, 1.0)
            if li + 1 < n_layers:
                y = y.astype(jnp.bfloat16)  # bf16 MXU operand for the next dot
        o_ref[...] = y.astype(o_ref.dtype)


# ------------------------------------------------------------ kernel wrappers

def _pool_position_patches(x):
    """im2col patches grouped by 2x2-pool-window position.

    x: (B, H, W, C) NHWC.  Returns 4 arrays of shape (B*(H//2)*(W//2), 9*C),
    columns ordered (dy, dx, ci) to match the (9*Cin, Cout) weight matrix.
    """
    B, H, W, C = x.shape
    Ho, Wo = H // 2, W // 2
    xp = jnp.pad(x, ((0, 0), (1, 1), (1, 1), (0, 0)))
    out = []
    for py in range(2):
        for px in range(2):
            taps = [xp[:, py + dy: py + dy + 2 * Ho: 2,
                       px + dx: px + dx + 2 * Wo: 2, :]
                    for dy in range(3) for dx in range(3)]
            out.append(jnp.concatenate(taps, axis=-1).reshape(B * Ho * Wo, 9 * C))
    return out


def conv3x3_relu_pool(x, w_mat, b):
    """Conv2d(3x3, pad=1) + ReLU + MaxPool2d(2), one pallas_call.  x: (B,H,W,C) NHWC."""
    B, H, W, C = x.shape
    K, Cout = w_mat.shape  # K = 9*C
    Ho, Wo = H // 2, W // 2
    M = B * Ho * Wo
    n_steps = _n_steps_for(M, _CFG)
    tm, m_pad = _tile_rows(M, n_steps)

    # TODO(synk): for large H,W this XLA im2col amplifies activation HBM traffic ~36x;
    # form the 9 shifted taps inside the kernel via pl.ds reads when scaling up.
    pats = _pool_position_patches(x)                                    # 4 x (M, K)
    stacked = jnp.stack([_pad_rows(p, m_pad) for p in pats], axis=0)    # (4, m_pad, K)
    # interleave per row tile so each grid step reads one contiguous (4*tm, K) block
    stacked = stacked.reshape(4, n_steps, tm, K).transpose(1, 0, 2, 3)
    stacked = stacked.reshape(n_steps * 4 * tm, K).astype(jnp.bfloat16)

    flops = 2 * 4 * m_pad * K * Cout
    bytes_acc = 2 * (4 * m_pad * K + K * Cout + m_pad * Cout) + 4 * Cout

    out = pl.pallas_call(
        functools.partial(_conv_pool_kernel, tm=tm),
        out_shape=jax.ShapeDtypeStruct((m_pad, Cout), jnp.bfloat16),
        grid_spec=pltpu.PrefetchScalarGridSpec(
            num_scalar_prefetch=0,
            grid=(n_steps,),
            in_specs=[pl.BlockSpec((4 * tm, K), lambda i: (i, 0)),
                      pl.BlockSpec((K, Cout), lambda i: (0, 0)),
                      pl.BlockSpec((1, Cout), lambda i: (0, 0))],
            out_specs=pl.BlockSpec((tm, Cout), lambda i: (i, 0)),
        ),
        compiler_params=pltpu.CompilerParams(
            dimension_semantics=("parallel",),
            vmem_limit_bytes=_CFG["vmem"]),
        cost_estimate=pl.CostEstimate(
            flops=flops, transcendentals=0, bytes_accessed=bytes_acc),
    )(stacked, w_mat.astype(jnp.bfloat16), b.reshape(1, Cout).astype(jnp.float32))
    return out[:M].reshape(B, Ho, Wo, Cout)


def multi_chain(chains, out_dtypes):
    """Run several (x @ w + b -> act) chains in ONE pallas_call.

    chains: list of (x (M,K), layers [(w (K,N), b (N,)), ...], acts tuple).
    All chains share the grid; each gets its own row tile.
    """
    n_steps = 1
    for x, _, _ in chains:
        n_steps = max(n_steps, _n_steps_for(x.shape[0], _CFG))

    args, in_specs, out_shapes, out_specs = [], [], [], []
    acts_meta, row_counts = [], []
    flops = transc = bytes_acc = 0
    for (x, layers, acts), od in zip(chains, out_dtypes):
        m, k0 = x.shape
        tm, m_pad = _tile_rows(m, n_steps)
        row_counts.append(m)
        args.append(_pad_rows(x, m_pad).astype(jnp.bfloat16))
        in_specs.append(pl.BlockSpec((tm, k0), lambda i: (i, 0)))
        bytes_acc += 2 * m_pad * k0
        for (w, b), act in zip(layers, acts):
            kk, nn = w.shape
            args.append(w.astype(jnp.bfloat16))                      # bf16 MXU operand
            args.append(b.reshape(1, nn).astype(jnp.float32))        # f32 bias (tiny)
            # TODO(synk): pipeline_mode=pl.Buffered(1) would single-buffer these
            # constant-index blocks; left at the default since the bf16 weights fit
            # the VMEM budget comfortably on all generations.
            in_specs.append(pl.BlockSpec((kk, nn), lambda i: (0, 0)))
            in_specs.append(pl.BlockSpec((1, nn), lambda i: (0, 0)))
            flops += 2 * m_pad * kk * nn
            if act in ("tanh", "sigmoid"):
                transc += m_pad * nn
            bytes_acc += 2 * kk * nn + 4 * nn
        n_out = layers[-1][0].shape[1]
        out_shapes.append(jax.ShapeDtypeStruct((m_pad, n_out), od))
        out_specs.append(pl.BlockSpec((tm, n_out), lambda i: (i, 0)))
        bytes_acc += jnp.dtype(od).itemsize * m_pad * n_out
        acts_meta.append(tuple(acts))

    outs = pl.pallas_call(
        functools.partial(_multi_chain_kernel, chains=tuple(acts_meta)),
        out_shape=tuple(out_shapes),
        grid_spec=pltpu.PrefetchScalarGridSpec(
            num_scalar_prefetch=0,
            grid=(n_steps,),
            in_specs=in_specs,
            out_specs=out_specs,
        ),
        compiler_params=pltpu.CompilerParams(
            dimension_semantics=("parallel",),
            vmem_limit_bytes=_CFG["vmem"]),
        cost_estimate=pl.CostEstimate(
            flops=flops, transcendentals=transc, bytes_accessed=bytes_acc),
    )(*args)
    return [o[:m] for o, m in zip(outs, row_counts)]


def decoder_and_fcnn(q, x_enc, x_r, x_s, x_coords):
    """ONE pallas_call: the 4-layer ConvTranspose2d decoder chain AND both FCNN
    invocations (T_pred and T_grid, row-batched), as two independent chains.

    Each ConvTranspose2d(k=2, s=2) is a per-pixel matmul; block-diagonal (bf16)
    weights chain the 4 deconvs so the kernel output is a lane-dense (M, 256) slab
    with columns ordered (ky1,kx1,ky2,kx2,ky3,kx3,ky4,kx4); one XLA transpose at the
    end rebuilds the image.
    """
    B, H4, W4, Cin = x_enc.shape
    M_dec = B * H4 * W4
    dec_layers = [(q[f"d{i}_w"], q[f"d{i}_b"]) for i in (1, 2, 3, 4)]
    dec_chain = (x_enc.reshape(M_dec, Cin), dec_layers,
                 ("relu", "relu", "relu", "sigmoid"))

    Bp, N, _ = x_r.shape
    feats = jnp.concatenate(
        [jnp.concatenate([x_r, x_s], axis=2),
         jnp.concatenate([x_coords, x_s], axis=2)], axis=0).reshape(2 * Bp * N, 4)
    fc_layers = [(q["fc1_w"], q["fc1_b"]),
                 (q["fc2_w"], q["fc2_b"]),
                 (q["fc3_w"], q["fc3_b"])]
    fc_chain = (feats, fc_layers, ("tanh", "tanh", "none"))

    dec_out, fc_out = multi_chain([dec_chain, fc_chain],
                                  out_dtypes=(jnp.float32, jnp.float32))

    # pixel-shuffle: (b,h4,w4,ky1,kx1,ky2,kx2,ky3,kx3,ky4,kx4)
    #   -> (b, h4, ky1, ky2, ky3, ky4, w4, kx1, kx2, kx3, kx4)
    y = dec_out.reshape(B, H4, W4, 2, 2, 2, 2, 2, 2, 2, 2)
    y = jnp.transpose(y, (0, 1, 3, 5, 7, 9, 2, 4, 6, 8, 10))
    c_map = y.reshape(B, 1, 16 * H4, 16 * W4)                     # NCHW, channel = 1

    t = fc_out.reshape(2, Bp, N, 1)
    return c_map, t[0], t[1]


# -------------------------------------------------------------------- params

def init_params(key):
    """Random parameters in native PyTorch layouts."""
    keys = list(jax.random.split(key, 18))
    it = iter(keys)

    def u(shape, fan_in):
        bound = 1.0 / float(fan_in) ** 0.5
        return jax.random.uniform(next(it), shape, jnp.float32, -bound, bound)

    p = {}
    p["conv1_w"], p["conv1_b"] = u((64, 1, 3, 3), 9), u((64,), 9)
    p["conv2_w"], p["conv2_b"] = u((128, 64, 3, 3), 9 * 64), u((128,), 9 * 64)
    p["deconv1_w"], p["deconv1_b"] = u((128, 64, 2, 2), 128 * 4), u((64,), 128 * 4)
    p["deconv2_w"], p["deconv2_b"] = u((64, 32, 2, 2), 64 * 4), u((32,), 64 * 4)
    p["deconv3_w"], p["deconv3_b"] = u((32, 16, 2, 2), 32 * 4), u((16,), 32 * 4)
    p["deconv4_w"], p["deconv4_b"] = u((16, 1, 2, 2), 16 * 4), u((1,), 16 * 4)
    p["fc1_w"], p["fc1_b"] = u((64, 4), 4), u((64,), 4)
    p["fc2_w"], p["fc2_b"] = u((64, 64), 64), u((64,), 64)
    p["fc3_w"], p["fc3_b"] = u((1, 64), 64), u((1,), 64)
    return p


def prepare_params(p):
    """PyTorch-layout weights -> kernel layouts (weights bf16, biases f32)."""
    f32, bf16 = jnp.float32, jnp.bfloat16
    q = {}
    # Conv2d (Cout, Cin, 3, 3) -> (ky, kx, Cin, Cout) -> (9*Cin, Cout)
    for name, src in (("c1", "conv1"), ("c2", "conv2")):
        w = p[src + "_w"].astype(f32)
        co, ci = w.shape[0], w.shape[1]
        q[name + "_w"] = jnp.transpose(w, (2, 3, 1, 0)).reshape(9 * ci, co).astype(bf16)
        q[name + "_b"] = p[src + "_b"].astype(f32)

    # ConvTranspose2d (Cin, Cout, 2, 2) -> (Cin, ky, kx, Cout) -> (Cin, 4*Cout);
    # block-diagonal tiled (1x, 4x, 16x, 64x) so the 4 deconvs chain as one matmul
    # chain.  Stored bf16 to halve the block-diagonal weight DMA.
    def dec_mat(w):
        ci, co = w.shape[0], w.shape[1]
        return jnp.transpose(w.astype(f32), (0, 2, 3, 1)).reshape(ci, 4 * co)

    for idx, reps in zip((1, 2, 3, 4), (1, 4, 16, 64)):
        wm = dec_mat(p[f"deconv{idx}_w"])
        wm = wm if reps == 1 else block_diag(*([wm] * reps))
        q[f"d{idx}_w"] = wm.astype(bf16)
        q[f"d{idx}_b"] = jnp.tile(p[f"deconv{idx}_b"].astype(f32), 4 * reps)

    # Linear (out, in) -> (in, out)
    for idx in (1, 2, 3):
        q[f"fc{idx}_w"] = p[f"fc{idx}_w"].astype(f32).T.astype(bf16)
        q[f"fc{idx}_b"] = p[f"fc{idx}_b"].astype(f32)
    return q


# ------------------------------------------------------------------- forward

def cnn_encoder(q, tof_nchw):
    x = jnp.transpose(tof_nchw, (0, 2, 3, 1)).astype(jnp.float32)  # NCHW -> NHWC
    x = conv3x3_relu_pool(x, q["c1_w"], q["c1_b"])                 # (B, H/2, W/2, 64)
    x = conv3x3_relu_pool(x, q["c2_w"], q["c2_b"])                 # (B, H/4, W/4, 128)
    return x


@jax.jit
def pinn_forward(q, tof_input, x_r, x_s, x_coords):
    x_enc = cnn_encoder(q, tof_input)
    return decoder_and_fcnn(q, x_enc, x_r, x_s, x_coords)


# ----------------------------------------------------- pure-JAX reference model

def _ref_conv3x3_relu_pool(x, w, b):
    B, H, W, _ = x.shape
    xp = jnp.pad(x, ((0, 0), (1, 1), (1, 1), (0, 0)))
    y = jnp.zeros((B, H, W, w.shape[0]), jnp.float32)
    for dy in range(3):
        for dx in range(3):
            y = y + jnp.einsum("bhwc,oc->bhwo",
                               xp[:, dy:dy + H, dx:dx + W, :], w[:, :, dy, dx])
    y = jnp.maximum(y + b, 0.0)
    return jnp.maximum(jnp.maximum(y[:, 0::2, 0::2], y[:, 0::2, 1::2]),
                       jnp.maximum(y[:, 1::2, 0::2], y[:, 1::2, 1::2]))


def _ref_deconv2x2(x, w, b):
    B, H, W, _ = x.shape
    co = w.shape[1]
    y = jnp.einsum("bhwi,iojk->bhwjko", x, w) + b
    return jnp.transpose(y, (0, 1, 3, 2, 4, 5)).reshape(B, 2 * H, 2 * W, co)


def _ref_forward(p, tof, x_r, x_s, x_coords):
    x = jnp.transpose(tof, (0, 2, 3, 1))
    x = _ref_conv3x3_relu_pool(x, p["conv1_w"], p["conv1_b"])
    x = _ref_conv3x3_relu_pool(x, p["conv2_w"], p["conv2_b"])
    x = jnp.maximum(_ref_deconv2x2(x, p["deconv1_w"], p["deconv1_b"]), 0.0)
    x = jnp.maximum(_ref_deconv2x2(x, p["deconv2_w"], p["deconv2_b"]), 0.0)
    x = jnp.maximum(_ref_deconv2x2(x, p["deconv3_w"], p["deconv3_b"]), 0.0)
    x = jax.nn.sigmoid(_ref_deconv2x2(x, p["deconv4_w"], p["deconv4_b"]))
    c_map = jnp.transpose(x, (0, 3, 1, 2))

    def mlp(z):
        h = jnp.tanh(z @ p["fc1_w"].T + p["fc1_b"])
        h = jnp.tanh(h @ p["fc2_w"].T + p["fc2_b"])
        return h @ p["fc3_w"].T + p["fc3_b"]

    return (c_map,
            mlp(jnp.concatenate([x_r, x_s], axis=2)),
            mlp(jnp.concatenate([x_coords, x_s], axis=2)))


# ----------------------------------------------------------------------- main

if __name__ == "__main__":
    key = jax.random.PRNGKey(0)
    kp, k1, k2, k3, k4 = jax.random.split(key, 5)

    torch_params = init_params(kp)             # PyTorch layouts (f32)
    kernel_params = prepare_params(torch_params)

    B, H, W, Npts = 2, 16, 16, 8
    tof_input = jax.random.normal(k1, (B, 1, H, W), jnp.float32)   # NCHW
    x_r = jax.random.normal(k2, (B, Npts, 2), jnp.float32)
    x_s = jax.random.normal(k3, (B, Npts, 2), jnp.float32)
    x_coords = jax.random.normal(k4, (B, Npts, 2), jnp.float32)

    c_map, T_pred, T_grid = jax.block_until_ready(
        pinn_forward(kernel_params, tof_input, x_r, x_s, x_coords))

    assert c_map.shape == (B, 1, 4 * H, 4 * W)      # (2, 1, 64, 64)
    assert T_pred.shape == (B, Npts, 1)
    assert T_grid.shape == (B, Npts, 1)
    assert bool(jnp.all((c_map >= 0.0) & (c_map <= 1.0)))   # sigmoid output range
    assert bool(jnp.all(jnp.isfinite(T_pred))) and bool(jnp.all(jnp.isfinite(T_grid)))

    # Cross-check against a pure-JAX f32 reference (loose tolerance: bf16 MXU
    # operands; layout/ordering bugs would show up as O(1) errors).
    c_ref, tp_ref, tg_ref = _ref_forward(torch_params, tof_input, x_r, x_s, x_coords)
    assert float(jnp.max(jnp.abs(c_map - c_ref))) < 5e-2
    assert float(jnp.max(jnp.abs(T_pred - tp_ref))) < 5e-2
    assert float(jnp.max(jnp.abs(T_grid - tg_ref))) < 5e-2

    print("KERNEL_OK")
</pallas_src>

<mosaic_0001>
module attributes {stable_mosaic.version = 11 : i64} {
  func.func @_conv_pool_kernel(%arg0: i32, %arg1: memref<256x9xbf16, #tpu.memory_space<vmem>>, %arg2: memref<9x64xbf16, #tpu.memory_space<vmem>>, %arg3: memref<1x64xf32, #tpu.memory_space<vmem>>, %arg4: memref<64x64xbf16, #tpu.memory_space<vmem>>) attributes {dimension_semantics = [#tpu.dimension_semantics<parallel>], iteration_bounds = array<i64: 2>, scalar_prefetch = 0 : i64, scratch_operands = 0 : i64, tpu.core_type = #tpu.core_type<tc>, window_params = [{transform_indices = @transform_0, window_bounds = array<i64: 256, 9>}, {pipeline_mode = #tpu.pipeline_mode<synchronous>, transform_indices = @transform_1, window_bounds = array<i64: 9, 64>}, {pipeline_mode = #tpu.pipeline_mode<synchronous>, transform_indices = @transform_2, window_bounds = array<i64: 1, 64>}, {transform_indices = @transform_3, window_bounds = array<i64: 64, 64>}]} {
    %c0 = arith.constant 0 : index
    %c0_0 = arith.constant 0 : index
    %0 = vector.load %arg1[%c0, %c0_0] : memref<256x9xbf16, #tpu.memory_space<vmem>>, vector<256x9xbf16>
    %c0_1 = arith.constant 0 : index
    %c0_2 = arith.constant 0 : index
    %1 = vector.load %arg2[%c0_1, %c0_2] : memref<9x64xbf16, #tpu.memory_space<vmem>>, vector<9x64xbf16>
    %cst = arith.constant dense<0.000000e+00> : vector<256x64xf32>
    %2 = tpu.matmul %0, %1, %cst {dimension_numbers = #tpu.dot_dimension_numbers<[1], [0], [0], [1], [0, 0, 1, 1], [], []>} : vector<256x9xbf16>, vector<9x64xbf16>, vector<256x64xf32> -> vector<256x64xf32>
    %3 = vector.extract_strided_slice %2 {offsets = [0, 0], sizes = [64, 64], strides = [1, 1]} : vector<256x64xf32> to vector<64x64xf32>
    %4 = vector.extract_strided_slice %2 {offsets = [64, 0], sizes = [64, 64], strides = [1, 1]} : vector<256x64xf32> to vector<64x64xf32>
    %5 = arith.maximumf %3, %4 : vector<64x64xf32>
    %6 = vector.extract_strided_slice %2 {offsets = [128, 0], sizes = [64, 64], strides = [1, 1]} : vector<256x64xf32> to vector<64x64xf32>
    %7 = vector.extract_strided_slice %2 {offsets = [192, 0], sizes = [64, 64], strides = [1, 1]} : vector<256x64xf32> to vector<64x64xf32>
    %8 = arith.maximumf %6, %7 : vector<64x64xf32>
    %9 = arith.maximumf %5, %8 : vector<64x64xf32>
    %c0_3 = arith.constant 0 : index
    %c0_4 = arith.constant 0 : index
    %10 = vector.load %arg3[%c0_3, %c0_4] : memref<1x64xf32, #tpu.memory_space<vmem>>, vector<1x64xf32>
    %11 = vector.broadcast %10 : vector<1x64xf32> to vector<64x64xf32>
    %12 = arith.addf %9, %11 : vector<64x64xf32>
    %cst_5 = arith.constant 0.000000e+00 : f32
    %13 = vector.broadcast %cst_5 : f32 to vector<64x64xf32>
    %14 = arith.maximumf %12, %13 : vector<64x64xf32>
    %15 = arith.truncf %14 : vector<64x64xf32> to vector<64x64xbf16>
    %c0_6 = arith.constant 0 : index
    %c0_7 = arith.constant 0 : index
    %16 = vector.load %arg4[%c0_6, %c0_7] : memref<64x64xbf16, #tpu.memory_space<vmem>>, vector<64x64xbf16>
    tpu.vector_store %arg4[%c0_6, %c0_7], %15 {strides = array<i32>} : memref<64x64xbf16, #tpu.memory_space<vmem>>, vector<64x64xbf16>,
    return
  }
  func.func @transform_0(%arg0: i32) -> (i32, i32) {
    %c0_i32 = arith.constant 0 : i32
    %c0_i32_0 = arith.constant 0 : i32
    return %arg0, %c0_i32 : i32, i32
  }
  func.func @transform_1(%arg0: i32) -> (i32, i32) {
    %c0_i32 = arith.constant 0 : i32
    %c0_i32_0 = arith.constant 0 : i32
    %c0_i32_1 = arith.constant 0 : i32
    return %c0_i32, %c0_i32_0 : i32, i32
  }
  func.func @transform_2(%arg0: i32) -> (i32, i32) {
    %c0_i32 = arith.constant 0 : i32
    %c0_i32_0 = arith.constant 0 : i32
    %c0_i32_1 = arith.constant 0 : i32
    return %c0_i32, %c0_i32_0 : i32, i32
  }
  func.func @transform_3(%arg0: i32) -> (i32, i32) {
    %c0_i32 = arith.constant 0 : i32
    %c0_i32_0 = arith.constant 0 : i32
    return %arg0, %c0_i32 : i32, i32
  }
}

module attributes {stable_mosaic.version = 11 : i64} {
  func.func @_conv_pool_kernel(%arg0: i32, %arg1: memref<64x576xbf16, #tpu.memory_space<vmem>>, %arg2: memref<576x128xbf16, #tpu.memory_space<vmem>>, %arg3: memref<1x128xf32, #tpu.memory_space<vmem>>, %arg4: memref<16x128xbf16, #tpu.memory_space<vmem>>) attributes {dimension_semantics = [#tpu.dimension_semantics<parallel>], iteration_bounds = array<i64: 2>, scalar_prefetch = 0 : i64, scratch_operands = 0 : i64, tpu.core_type = #tpu.core_type<tc>, window_params = [{transform_indices = @transform_0, window_bounds = array<i64: 64, 576>}, {pipeline_mode = #tpu.pipeline_mode<synchronous>, transform_indices = @transform_1, window_bounds = array<i64: 576, 128>}, {pipeline_mode = #tpu.pipeline_mode<synchronous>, transform_indices = @transform_2, window_bounds = array<i64: 1, 128>}, {transform_indices = @transform_3, window_bounds = array<i64: 16, 128>}]} {
    %c0 = arith.constant 0 : index
    %c0_0 = arith.constant 0 : index
    %0 = vector.load %arg1[%c0, %c0_0] : memref<64x576xbf16, #tpu.memory_space<vmem>>, vector<64x576xbf16>
    %c0_1 = arith.constant 0 : index
    %c0_2 = arith.constant 0 : index
    %1 = vector.load %arg2[%c0_1, %c0_2] : memref<576x128xbf16, #tpu.memory_space<vmem>>, vector<576x128xbf16>
    %cst = arith.constant dense<0.000000e+00> : vector<64x128xf32>
    %2 = tpu.matmul %0, %1, %cst {dimension_numbers = #tpu.dot_dimension_numbers<[1], [0], [0], [1], [0, 0, 1, 1], [], []>} : vector<64x576xbf16>, vector<576x128xbf16>, vector<64x128xf32> -> vector<64x128xf32>
    %3 = vector.extract_strided_slice %2 {offsets = [0, 0], sizes = [16, 128], strides = [1, 1]} : vector<64x128xf32> to vector<16x128xf32>
    %4 = vector.extract_strided_slice %2 {offsets = [16, 0], sizes = [16, 128], strides = [1, 1]} : vector<64x128xf32> to vector<16x128xf32>
    %5 = arith.maximumf %3, %4 : vector<16x128xf32>
    %6 = vector.extract_strided_slice %2 {offsets = [32, 0], sizes = [16, 128], strides = [1, 1]} : vector<64x128xf32> to vector<16x128xf32>
    %7 = vector.extract_strided_slice %2 {offsets = [48, 0], sizes = [16, 128], strides = [1, 1]} : vector<64x128xf32> to vector<16x128xf32>
    %8 = arith.maximumf %6, %7 : vector<16x128xf32>
    %9 = arith.maximumf %5, %8 : vector<16x128xf32>
    %c0_3 = arith.constant 0 : index
    %c0_4 = arith.constant 0 : index
    %10 = vector.load %arg3[%c0_3, %c0_4] : memref<1x128xf32, #tpu.memory_space<vmem>>, vector<1x128xf32>
    %11 = vector.broadcast %10 : vector<1x128xf32> to vector<16x128xf32>
    %12 = arith.addf %9, %11 : vector<16x128xf32>
    %cst_5 = arith.constant 0.000000e+00 : f32
    %13 = vector.broadcast %cst_5 : f32 to vector<16x128xf32>
    %14 = arith.maximumf %12, %13 : vector<16x128xf32>
    %15 = arith.truncf %14 : vector<16x128xf32> to vector<16x128xbf16>
    %c0_6 = arith.constant 0 : index
    %c0_7 = arith.constant 0 : index
    %16 = vector.load %arg4[%c0_6, %c0_7] : memref<16x128xbf16, #tpu.memory_space<vmem>>, vector<16x128xbf16>
    tpu.vector_store %arg4[%c0_6, %c0_7], %15 {strides = array<i32>} : memref<16x128xbf16, #tpu.memory_space<vmem>>, vector<16x128xbf16>,
    return
  }
  func.func @transform_0(%arg0: i32) -> (i32, i32) {
    %c0_i32 = arith.constant 0 : i32
    %c0_i32_0 = arith.constant 0 : i32
    return %arg0, %c0_i32 : i32, i32
  }
  func.func @transform_1(%arg0: i32) -> (i32, i32) {
    %c0_i32 = arith.constant 0 : i32
    %c0_i32_0 = arith.constant 0 : i32
    %c0_i32_1 = arith.constant 0 : i32
    return %c0_i32, %c0_i32_0 : i32, i32
  }
  func.func @transform_2(%arg0: i32) -> (i32, i32) {
    %c0_i32 = arith.constant 0 : i32
    %c0_i32_0 = arith.constant 0 : i32
    %c0_i32_1 = arith.constant 0 : i32
    return %c0_i32, %c0_i32_0 : i32, i32
  }
  func.func @transform_3(%arg0: i32) -> (i32, i32) {
    %c0_i32 = arith.constant 0 : i32
    %c0_i32_0 = arith.constant 0 : i32
    return %arg0, %c0_i32 : i32, i32
  }
}

module attributes {stable_mosaic.version = 11 : i64} {
  func.func @_multi_chain_kernel(%arg0: i32, %arg1: memref<16x128xbf16, #tpu.memory_space<vmem>>, %arg2: memref<128x256xbf16, #tpu.memory_space<vmem>>, %arg3: memref<1x256xf32, #tpu.memory_space<vmem>>, %arg4: memref<256x512xbf16, #tpu.memory_space<vmem>>, %arg5: memref<1x512xf32, #tpu.memory_space<vmem>>, %arg6: memref<512x1024xbf16, #tpu.memory_space<vmem>>, %arg7: memref<1x1024xf32, #tpu.memory_space<vmem>>, %arg8: memref<1024x256xbf16, #tpu.memory_space<vmem>>, %arg9: memref<1x256xf32, #tpu.memory_space<vmem>>, %arg10: memref<16x4xbf16, #tpu.memory_space<vmem>>, %arg11: memref<4x64xbf16, #tpu.memory_space<vmem>>, %arg12: memref<1x64xf32, #tpu.memory_space<vmem>>, %arg13: memref<64x64xbf16, #tpu.memory_space<vmem>>, %arg14: memref<1x64xf32, #tpu.memory_space<vmem>>, %arg15: memref<64x1xbf16, #tpu.memory_space<vmem>>, %arg16: memref<1x1xf32, #tpu.memory_space<vmem>>, %arg17: memref<16x256xf32, #tpu.memory_space<vmem>>, %arg18: memref<16x1xf32, #tpu.memory_space<vmem>>) attributes {dimension_semantics = [#tpu.dimension_semantics<parallel>], iteration_bounds = array<i64: 2>, scalar_prefetch = 0 : i64, scratch_operands = 0 : i64, tpu.core_type = #tpu.core_type<tc>, window_params = [{transform_indices = @transform_0, window_bounds = array<i64: 16, 128>}, {pipeline_mode = #tpu.pipeline_mode<synchronous>, transform_indices = @transform_1, window_bounds = array<i64: 128, 256>}, {pipeline_mode = #tpu.pipeline_mode<synchronous>, transform_indices = @transform_2, window_bounds = array<i64: 1, 256>}, {pipeline_mode = #tpu.pipeline_mode<synchronous>, transform_indices = @transform_3, window_bounds = array<i64: 256, 512>}, {pipeline_mode = #tpu.pipeline_mode<synchronous>, transform_indices = @transform_4, window_bounds = array<i64: 1, 512>}, {pipeline_mode = #tpu.pipeline_mode<synchronous>, transform_indices = @transform_5, window_bounds = array<i64: 512, 1024>}, {pipeline_mode = #tpu.pipeline_mode<synchronous>, transform_indices = @transform_6, window_bounds = array<i64: 1, 1024>}, {pipeline_mode = #tpu.pipeline_mode<synchronous>, transform_indices = @transform_7, window_bounds = array<i64: 1024, 256>}, {pipeline_mode = #tpu.pipeline_mode<synchronous>, transform_indices = @transform_8, window_bounds = array<i64: 1, 256>}, {transform_indices = @transform_9, window_bounds = array<i64: 16, 4>}, {pipeline_mode = #tpu.pipeline_mode<synchronous>, transform_indices = @transform_10, window_bounds = array<i64: 4, 64>}, {pipeline_mode = #tpu.pipeline_mode<synchronous>, transform_indices = @transform_11, window_bounds = array<i64: 1, 64>}, {pipeline_mode = #tpu.pipeline_mode<synchronous>, transform_indices = @transform_12, window_bounds = array<i64: 64, 64>}, {pipeline_mode = #tpu.pipeline_mode<synchronous>, transform_indices = @transform_13, window_bounds = array<i64: 1, 64>}, {pipeline_mode = #tpu.pipeline_mode<synchronous>, transform_indices = @transform_14, window_bounds = array<i64: 64, 1>}, {pipeline_mode = #tpu.pipeline_mode<synchronous>, transform_indices = @transform_15, window_bounds = array<i64: 1, 1>}, {transform_indices = @transform_16, window_bounds = array<i64: 16, 256>}, {transform_indices = @transform_17, window_bounds = array<i64: 16, 1>}]} {
    %c0 = arith.constant 0 : index
    %c0_0 = arith.constant 0 : index
    %0 = vector.load %arg1[%c0, %c0_0] : memref<16x128xbf16, #tpu.memory_space<vmem>>, vector<16x128xbf16>
    %c0_1 = arith.constant 0 : index
    %c0_2 = arith.constant 0 : index
    %1 = vector.load %arg2[%c0_1, %c0_2] : memref<128x256xbf16, #tpu.memory_space<vmem>>, vector<128x256xbf16>
    %cst = arith.constant dense<0.000000e+00> : vector<16x256xf32>
    %2 = tpu.matmul %0, %1, %cst {dimension_numbers = #tpu.dot_dimension_numbers<[1], [0], [0], [1], [0, 0, 1, 1], [], []>} : vector<16x128xbf16>, vector<128x256xbf16>, vector<16x256xf32> -> vector<16x256xf32>
    %c0_3 = arith.constant 0 : index
    %c0_4 = arith.constant 0 : index
    %3 = vector.load %arg3[%c0_3, %c0_4] : memref<1x256xf32, #tpu.memory_space<vmem>>, vector<1x256xf32>
    %4 = vector.broadcast %3 : vector<1x256xf32> to vector<16x256xf32>
    %5 = arith.addf %2, %4 : vector<16x256xf32>
    %cst_5 = arith.constant 0.000000e+00 : f32
    %6 = vector.broadcast %cst_5 : f32 to vector<16x256xf32>
    %7 = arith.maximumf %5, %6 : vector<16x256xf32>
    %8 = arith.truncf %7 : vector<16x256xf32> to vector<16x256xbf16>
    %c0_6 = arith.constant 0 : index
    %c0_7 = arith.constant 0 : index
    %9 = vector.load %arg4[%c0_6, %c0_7] : memref<256x512xbf16, #tpu.memory_space<vmem>>, vector<256x512xbf16>
    %cst_8 = arith.constant dense<0.000000e+00> : vector<16x512xf32>
    %10 = tpu.matmul %8, %9, %cst_8 {dimension_numbers = #tpu.dot_dimension_numbers<[1], [0], [0], [1], [0, 0, 1, 1], [], []>} : vector<16x256xbf16>, vector<256x512xbf16>, vector<16x512xf32> -> vector<16x512xf32>
    %c0_9 = arith.constant 0 : index
    %c0_10 = arith.constant 0 : index
    %11 = vector.load %arg5[%c0_9, %c0_10] : memref<1x512xf32, #tpu.memory_space<vmem>>, vector<1x512xf32>
    %12 = vector.broadcast %11 : vector<1x512xf32> to vector<16x512xf32>
    %13 = arith.addf %10, %12 : vector<16x512xf32>
    %cst_11 = arith.constant 0.000000e+00 : f32
    %14 = vector.broadcast %cst_11 : f32 to vector<16x512xf32>
    %15 = arith.maximumf %13, %14 : vector<16x512xf32>
    %16 = arith.truncf %15 : vector<16x512xf32> to vector<16x512xbf16>
    %c0_12 = arith.constant 0 : index
    %c0_13 = arith.constant 0 : index
    %17 = vector.load %arg6[%c0_12, %c0_13] : memref<512x1024xbf16, #tpu.memory_space<vmem>>, vector<512x1024xbf16>
    %cst_14 = arith.constant dense<0.000000e+00> : vector<16x1024xf32>
    %18 = tpu.matmul %16, %17, %cst_14 {dimension_numbers = #tpu.dot_dimension_numbers<[1], [0], [0], [1], [0, 0, 1, 1], [], []>} : vector<16x512xbf16>, vector<512x1024xbf16>, vector<16x1024xf32> -> vector<16x1024xf32>
    %c0_15 = arith.constant 0 : index
    %c0_16 = arith.constant 0 : index
    %19 = vector.load %arg7[%c0_15, %c0_16] : memref<1x1024xf32, #tpu.memory_space<vmem>>, vector<1x1024xf32>
    %20 = vector.broadcast %19 : vector<1x1024xf32> to vector<16x1024xf32>
    %21 = arith.addf %18, %20 : vector<16x1024xf32>
    %cst_17 = arith.constant 0.000000e+00 : f32
    %22 = vector.broadcast %cst_17 : f32 to vector<16x1024xf32>
    %23 = arith.maximumf %21, %22 : vector<16x1024xf32>
    %24 = arith.truncf %23 : vector<16x1024xf32> to vector<16x1024xbf16>
    %c0_18 = arith.constant 0 : index
    %c0_19 = arith.constant 0 : index
    %25 = vector.load %arg8[%c0_18, %c0_19] : memref<1024x256xbf16, #tpu.memory_space<vmem>>, vector<1024x256xbf16>
    %cst_20 = arith.constant dense<0.000000e+00> : vector<16x256xf32>
    %26 = tpu.matmul %24, %25, %cst_20 {dimension_numbers = #tpu.dot_dimension_numbers<[1], [0], [0], [1], [0, 0, 1, 1], [], []>} : vector<16x1024xbf16>, vector<1024x256xbf16>, vector<16x256xf32> -> vector<16x256xf32>
    %c0_21 = arith.constant 0 : index
    %c0_22 = arith.constant 0 : index
    %27 = vector.load %arg9[%c0_21, %c0_22] : memref<1x256xf32, #tpu.memory_space<vmem>>, vector<1x256xf32>
    %28 = vector.broadcast %27 : vector<1x256xf32> to vector<16x256xf32>
    %29 = arith.addf %26, %28 : vector<16x256xf32>
    %cst_23 = arith.constant 0.000000e+00 : f32
    %30 = vector.broadcast %cst_23 : f32 to vector<16x256xf32>
    %31 = arith.subf %30, %29 : vector<16x256xf32>
    %32 = math.exp %31 : vector<16x256xf32>
    %cst_24 = arith.constant 1.000000e+00 : f32
    %33 = vector.broadcast %cst_24 : f32 to vector<16x256xf32>
    %34 = arith.addf %33, %32 : vector<16x256xf32>
    %35 = tpu.reciprocal %34 {approx = true} : vector<16x256xf32> -> vector<16x256xf32>
    %cst_25 = arith.constant 0.000000e+00 : f32
    %cst_26 = arith.constant 1.000000e+00 : f32
    %36 = vector.broadcast %cst_25 : f32 to vector<16x256xf32>
    %37 = arith.maximumf %36, %35 : vector<16x256xf32>
    %38 = vector.broadcast %cst_26 : f32 to vector<16x256xf32>
    %39 = arith.minimumf %38, %37 : vector<16x256xf32>
    %c0_27 = arith.constant 0 : index
    %c0_28 = arith.constant 0 : index
    %40 = vector.load %arg17[%c0_27, %c0_28] : memref<16x256xf32, #tpu.memory_space<vmem>>, vector<16x256xf32>
    tpu.vector_store %arg17[%c0_27, %c0_28], %39 {strides = array<i32>} : memref<16x256xf32, #tpu.memory_space<vmem>>, vector<16x256xf32>,
    %c0_29 = arith.constant 0 : index
    %c0_30 = arith.constant 0 : index
    %41 = vector.load %arg10[%c0_29, %c0_30] : memref<16x4xbf16, #tpu.memory_space<vmem>>, vector<16x4xbf16>
    %c0_31 = arith.constant 0 : index
    %c0_32 = arith.constant 0 : index
    %42 = vector.load %arg11[%c0_31, %c0_32] : memref<4x64xbf16, #tpu.memory_space<vmem>>, vector<4x64xbf16>
    %cst_33 = arith.constant dense<0.000000e+00> : vector<16x64xf32>
    %43 = tpu.matmul %41, %42, %cst_33 {dimension_numbers = #tpu.dot_dimension_numbers<[1], [0], [0], [1], [0, 0, 1, 1], [], []>} : vector<16x4xbf16>, vector<4x64xbf16>, vector<16x64xf32> -> vector<16x64xf32>
    %c0_34 = arith.constant 0 : index
    %c0_35 = arith.constant 0 : index
    %44 = vector.load %arg12[%c0_34, %c0_35] : memref<1x64xf32, #tpu.memory_space<vmem>>, vector<1x64xf32>
    %45 = vector.broadcast %44 : vector<1x64xf32> to vector<16x64xf32>
    %46 = arith.addf %43, %45 : vector<16x64xf32>
    %47 = math.tanh %46 : vector<16x64xf32>
    %48 = arith.truncf %47 : vector<16x64xf32> to vector<16x64xbf16>
    %c0_36 = arith.constant 0 : index
    %c0_37 = arith.constant 0 : index
    %49 = vector.load %arg13[%c0_36, %c0_37] : memref<64x64xbf16, #tpu.memory_space<vmem>>, vector<64x64xbf16>
    %cst_38 = arith.constant dense<0.000000e+00> : vector<16x64xf32>
    %50 = tpu.matmul %48, %49, %cst_38 {dimension_numbers = #tpu.dot_dimension_numbers<[1], [0], [0], [1], [0, 0, 1, 1], [], []>} : vector<16x64xbf16>, vector<64x64xbf16>, vector<16x64xf32> -> vector<16x64xf32>
    %c0_39 = arith.constant 0 : index
    %c0_40 = arith.constant 0 : index
    %51 = vector.load %arg14[%c0_39, %c0_40] : memref<1x64xf32, #tpu.memory_space<vmem>>, vector<1x64xf32>
    %52 = vector.broadcast %51 : vector<1x64xf32> to vector<16x64xf32>
    %53 = arith.addf %50, %52 : vector<16x64xf32>
    %54 = math.tanh %53 : vector<16x64xf32>
    %55 = arith.truncf %54 : vector<16x64xf32> to vector<16x64xbf16>
    %c0_41 = arith.constant 0 : index
    %c0_42 = arith.constant 0 : index
    %56 = vector.load %arg15[%c0_41, %c0_42] : memref<64x1xbf16, #tpu.memory_space<vmem>>, vector<64x1xbf16>
    %cst_43 = arith.constant dense<0.000000e+00> : vector<16x1xf32>
    %57 = tpu.matmul %55, %56, %cst_43 {dimension_numbers = #tpu.dot_dimension_numbers<[1], [0], [0], [1], [0, 0, 1, 1], [], []>} : vector<16x64xbf16>, vector<64x1xbf16>, vector<16x1xf32> -> vector<16x1xf32>
    %c0_44 = arith.constant 0 : index
    %c0_45 = arith.constant 0 : index
    %58 = vector.load %arg16[%c0_44, %c0_45] : memref<1x1xf32, #tpu.memory_space<vmem>>, vector<1x1xf32>
    %59 = vector.broadcast %58 : vector<1x1xf32> to vector<16x1xf32>
    %60 = arith.addf %57, %59 : vector<16x1xf32>
    %c0_46 = arith.constant 0 : index
    %c0_47 = arith.constant 0 : index
    %61 = vector.load %arg18[%c0_46, %c0_47] : memref<16x1xf32, #tpu.memory_space<vmem>>, vector<16x1xf32>
    tpu.vector_store %arg18[%c0_46, %c0_47], %60 {strides = array<i32>} : memref<16x1xf32, #tpu.memory_space<vmem>>, vector<16x1xf32>,
    return
  }
  func.func @transform_0(%arg0: i32) -> (i32, i32) {
    %c0_i32 = arith.constant 0 : i32
    %c0_i32_0 = arith.constant 0 : i32
    return %arg0, %c0_i32 : i32, i32
  }
  func.func @transform_1(%arg0: i32) -> (i32, i32) {
    %c0_i32 = arith.constant 0 : i32
    %c0_i32_0 = arith.constant 0 : i32
    %c0_i32_1 = arith.constant 0 : i32
    return %c0_i32, %c0_i32_0 : i32, i32
  }
  func.func @transform_2(%arg0: i32) -> (i32, i32) {
    %c0_i32 = arith.constant 0 : i32
    %c0_i32_0 = arith.constant 0 : i32
    %c0_i32_1 = arith.constant 0 : i32
    return %c0_i32, %c0_i32_0 : i32, i32
  }
  func.func @transform_3(%arg0: i32) -> (i32, i32) {
    %c0_i32 = arith.constant 0 : i32
    %c0_i32_0 = arith.constant 0 : i32
    %c0_i32_1 = arith.constant 0 : i32
    return %c0_i32, %c0_i32_0 : i32, i32
  }
  func.func @transform_4(%arg0: i32) -> (i32, i32) {
    %c0_i32 = arith.constant 0 : i32
    %c0_i32_0 = arith.constant 0 : i32
    %c0_i32_1 = arith.constant 0 : i32
    return %c0_i32, %c0_i32_0 : i32, i32
  }
  func.func @transform_5(%arg0: i32) -> (i32, i32) {
    %c0_i32 = arith.constant 0 : i32
    %c0_i32_0 = arith.constant 0 : i32
    %c0_i32_1 = arith.constant 0 : i32
    return %c0_i32, %c0_i32_0 : i32, i32
  }
  func.func @transform_6(%arg0: i32) -> (i32, i32) {
    %c0_i32 = arith.constant 0 : i32
    %c0_i32_0 = arith.constant 0 : i32
    %c0_i32_1 = arith.constant 0 : i32
    return %c0_i32, %c0_i32_0 : i32, i32
  }
  func.func @transform_7(%arg0: i32) -> (i32, i32) {
    %c0_i32 = arith.constant 0 : i32
    %c0_i32_0 = arith.constant 0 : i32
    %c0_i32_1 = arith.constant 0 : i32
    return %c0_i32, %c0_i32_0 : i32, i32
  }
  func.func @transform_8(%arg0: i32) -> (i32, i32) {
    %c0_i32 = arith.constant 0 : i32
    %c0_i32_0 = arith.constant 0 : i32
    %c0_i32_1 = arith.constant 0 : i32
    return %c0_i32, %c0_i32_0 : i32, i32
  }
  func.func @transform_9(%arg0: i32) -> (i32, i32) {
    %c0_i32 = arith.constant 0 : i32
    %c0_i32_0 = arith.constant 0 : i32
    return %arg0, %c0_i32 : i32, i32
  }
  func.func @transform_10(%arg0: i32) -> (i32, i32) {
    %c0_i32 = arith.constant 0 : i32
    %c0_i32_0 = arith.constant 0 : i32
    %c0_i32_1 = arith.constant 0 : i32
    return %c0_i32, %c0_i32_0 : i32, i32
  }
  func.func @transform_11(%arg0: i32) -> (i32, i32) {
    %c0_i32 = arith.constant 0 : i32
    %c0_i32_0 = arith.constant 0 : i32
    %c0_i32_1 = arith.constant 0 : i32
    return %c0_i32, %c0_i32_0 : i32, i32
  }
  func.func @transform_12(%arg0: i32) -> (i32, i32) {
    %c0_i32 = arith.constant 0 : i32
    %c0_i32_0 = arith.constant 0 : i32
    %c0_i32_1 = arith.constant 0 : i32
    return %c0_i32, %c0_i32_0 : i32, i32
  }
  func.func @transform_13(%arg0: i32) -> (i32, i32) {
    %c0_i32 = arith.constant 0 : i32
    %c0_i32_0 = arith.constant 0 : i32
    %c0_i32_1 = arith.constant 0 : i32
    return %c0_i32, %c0_i32_0 : i32, i32
  }
  func.func @transform_14(%arg0: i32) -> (i32, i32) {
    %c0_i32 = arith.constant 0 : i32
    %c0_i32_0 = arith.constant 0 : i32
    %c0_i32_1 = arith.constant 0 : i32
    return %c0_i32, %c0_i32_0 : i32, i32
  }
  func.func @transform_15(%arg0: i32) -> (i32, i32) {
    %c0_i32 = arith.constant 0 : i32
    %c0_i32_0 = arith.constant 0 : i32
    %c0_i32_1 = arith.constant 0 : i32
    return %c0_i32, %c0_i32_0 : i32, i32
  }
  func.func @transform_16(%arg0: i32) -> (i32, i32) {
    %c0_i32 = arith.constant 0 : i32
    %c0_i32_0 = arith.constant 0 : i32
    return %arg0, %c0_i32 : i32, i32
  }
  func.func @transform_17(%arg0: i32) -> (i32, i32) {
    %c0_i32 = arith.constant 0 : i32
    %c0_i32_0 = arith.constant 0 : i32
    return %arg0, %c0_i32 : i32, i32
  }
}

</mosaic_0001>

<bundles_post_ra>
// kernel: squeeze.2
= control target key start
LH: loop header
LB: loop body
LE: loop exit
PB: predicated region body
PF: predicated region fallthrough
CT: control target
= control target key end

     0   :  { %s85_s0 = inlined_call_operand.vmem [shape: f32[16], index: 0, kind: input, shape index: {}]   ;;  %s86_s1 = inlined_call_operand.hbm [shape: f32[2,8,1], index: 1, kind: output, shape index: {}]  }
   0x1   :  { %v5_v0 = vld [vmem:[%s85_s0] sm:$0x1] }
   0x2   :  { %2 = vsyncpa [#allocation1], 0  ;;  %6 = vst [vmem:[#allocation3] sm:$0x1] %v5_v0  ;;  %vm8_vm0 = vcmask 64512   ;;  %s58_s0 = smov 120  }
   0x3   :  { %s59_s8 = smov [#allocation0]  }
   0x4   :  { %s26_s9 = sshll.u32 %s59_s8, 4  ;;  %s27_s9 = int_to_ptr.vmem [resolvable:$true] %s26_s9 }
   0x5   :  { %s34_s10 = scalar_lea.vmem %s27_s9, 32  ;;  %p39_p1 = scmp.lt.s32.totalorder %s27_s9, %s27_s9 }
   0x6   :  { %p35_p0 = scmp.ne.s32.totalorder %s27_s9, %s34_s10  ;;  %p40_p2 = scmp.lt.s32.totalorder %s34_s10, %s34_s10 }
   0x8   :  { %p41_p3 = por %p40_p2, %p39_p1 }
   0x9   :  { %v10_v1 = vld [vmem:[#allocation3] sm:$0x1]  }
   0xa   :  { %v7_v2 = vld [vmem:[#allocation3] sm:$0x1]   ;;  %11 = vrot.lane.b32.xlu0 %v10_v1, %s58_s0  ;;  %p42_p4 = pnand %p41_p3, %p35_p0 }
   0xb   :  { %9 = vst.msk [vmem:[#allocation2] sm:$0x1] %vm8_vm0, %v7_v2  }
  0x7c   :  { %v12_v3 = vpop.permute.xlu0 %11  }
  0x7d   :  { %15 = vst.msk [vmem:[#allocation2 + $0x1] sm:$0x1] %vm8_vm0, %v12_v3  }
  0x84   :  { %v19_v4 = vld [vmem:[#allocation2] sm:$0x3] }
  0x85   :  { %21 = vst [vmem:[#allocation0] sm:$0x3] %v19_v4 }
  0x86   :  { %45 = shalt.err (!%p42_p4)
}
  0x87   :  { %s46_s13 = scalar_lea.hbm %s86_s1, 32 }
  0x88   :  { %p47_p5 = scmp.ne.s32.totalorder %s86_s1, %s46_s13  ;;  %p50_p6 = scmp.lt.u32.totalorder %s46_s13, %s86_s1 }
  0x8a   :  { %p52_p7 = pnand %p50_p6, %p47_p5 }
  0x8c   :  { %55 = shalt.err (!%p52_p7)
}
  0x8d   :  { %29 = dma.vmem_to_hbm [thread:$0]  %s27_s9, 32, %s86_s1, [#allocation1]  }
  0x8e   :  { %56 = dma.done.wait [#allocation1], 32  }
  0x8f   :  { %57 = vsyncadd [#allocation1], 4294967264 }
  0x90   :  { %31 = vsyncpa [#allocation1], 1 }

// kernel: pinn_forward.3
= control target key start
LH: loop header
LB: loop body
LE: loop exit
PB: predicated region body
PF: predicated region fallthrough
CT: control target
= control target key end

     0   :  { %8 = vsyncpa [#allocation3], 0  ;;  %s1130_s0 = inlined_call_operand.vmem [shape: bf16[512,9], index: 0, kind: input, shape index: {}]   ;;  %s1131_s1 = inlined_call_operand.hbm [shape: bf16[9,64], index: 1, kind: input, shape index: {}]   ;;  %s1132_s2 = inlined_call_operand.hbm [shape: f32[1,64], index: 2, kind: input, shape index: {}]   ;;  %s1133_s3 = inlined_call_operand.vmem [shape: bf16[128,64], index: 3, kind: output, shape index: {}]  }
   0x1   :  { %9 = vsyncpa [#allocation5], 0  ;;  %s969_s12 = smov 0  }
   0x2 LB: > { %s975_s13 = sadd.s32 4294967295, %s942_s12   ;;  %p707_p0 = scmp.ge.s32.totalorder %s942_s12, 1  ;;  %s942_s12 = sphi %s969_s12, %s15_s12  }
   0x3   : > { %p114_p1 = scmp.lt.s32.totalorder %s942_s12, 3  ;;  %s944_s14 = smov [#allocation2]  }
   0x4   : > { %s126_s15 = sshll.u32 %s944_s14, 4  ;;  %p1134_p3 = scmp.eq.s32.totalorder %s975_s13, 0  ;;  %s127_s15 = int_to_ptr.vmem [resolvable:$true] %s126_s15 }
   0x5   : > { %p979_p2 = pnand %p707_p0, %p114_p1  ;;  %s945_s17 = smov [#allocation4]  }
   0x6   : > { %s140_s18 = sshll.u32 %s945_s17, 4  ;;  %s872_s22 = scalar_lea.hbm %s1131_s1, 128  ;;  %s992_s18 = int_to_ptr.vmem [resolvable:$true] %s140_s18 }
   0x7   : > { %s1136_s16 = scalar_select %p979_p2, 1, 0 }
   0x8   : > { %p831_p4 = pneg %p979_p2  ;;  %p873_p6 = scmp.ne.s32.totalorder %s1131_s1, %s872_s22 }
   0x9   : > { %p879_p10 = scmp.lt.u32.totalorder %s872_s22, %s1131_s1 }
   0xa   : > { %p988_p5 = pnand %p1134_p3, %p831_p4 }
   0xc   : > { %p874_p7 = pneg %p988_p5 }
   0xe   : > { %p875_p8 = pnand %p874_p7, %p873_p6 }
  0x10   : > { %p876_p9 = pneg %p875_p8 }
  0x12   : > { %p881_p11 = pnand %p879_p10, %p876_p9 }
  0x14   : > { %884 = shalt.err (!%p881_p11)
}
  0x15   : > { %s885_s27 = scalar_lea.vmem %s127_s15, 128  ;;  %p893_p1 = scmp.lt.s32.totalorder %s127_s15, %s127_s15 }
  0x16   : > { %p886_p12 = scmp.ne.s32.totalorder %s127_s15, %s885_s27  ;;  %p894_p4 = scmp.lt.s32.totalorder %s885_s27, %s885_s27 }
  0x18   : > { %p888_p13 = pnand %p886_p12, %p874_p7  ;;  %p895_p3 = por %p894_p4, %p893_p1 }
  0x1a   : > { %p889_p0 = pneg %p888_p13 }
  0x1c   : > { %p896_p2 = pnand %p895_p3, %p889_p0 }
  0x1e   : > { %899 = shalt.err (!%p896_p2)
}
  0x1f   : > { %s946_s28 = smov 64   ;;  %s947_s29 = smov 4  }
  0x20   : > { %834 = dma.hbm_to_vmem [thread:$0]  (!%p988_p5), %s1131_s1, 128, %s127_s15, [#allocation3], %s946_s28, %s946_s28, %s947_s29  }
  0x21   : > { %s900_s7 = scalar_lea.hbm %s1132_s2, 16 }
  0x22   : > { %p901_p6 = scmp.ne.s32.totalorder %s1132_s2, %s900_s7  ;;  %p907_p8 = scmp.lt.u32.totalorder %s900_s7, %s1132_s2 }
  0x24   : > { %p903_p2 = pnand %p901_p6, %p874_p7 }
  0x26   : > { %p904_p3 = pneg %p903_p2 }
  0x28   : > { %p909_p9 = pnand %p907_p8, %p904_p3 }
  0x2a   : > { %912 = shalt.err (!%p909_p9)
}
  0x2b   : > { %s913_s14 = scalar_lea.vmem %s992_s18, 16  ;;  %s920_s15 = scalar_lea.vmem %s992_s18, 32 }
  0x2c   : > { %p914_p10 = scmp.ne.s32.totalorder %s992_s18, %s913_s14  ;;  %p921_p13 = scmp.lt.s32.totalorder %s992_s18, %s992_s18 }
  0x2d   : > { %p922_p0 = scmp.lt.s32.totalorder %s920_s15, %s913_s14 }
  0x2e   : > { %p916_p11 = pnand %p914_p10, %p874_p7 }
  0x2f   : > { %p923_p1 = por %p922_p0, %p921_p13 }
  0x30   : > { %p917_p12 = pneg %p916_p11 }
  0x32   : > { %p924_p4 = pnand %p923_p1, %p917_p12 }
  0x34   : > { %927 = shalt.err (!%p924_p4)
}
  0x35   : > { %837 = dma.hbm_to_vmem [thread:$0]  (!%p988_p5), %s1132_s2, 16, %s992_s18, [#allocation5]  }
  0x36   : > { %p1138_p6 = scmp.ne.s32.totalorder %s1136_s16, 0 }
  0x37   : > { %p1139_p7 = scmp.eq.s32.totalorder (!%p1138_p6), %s975_s13, 0 }
  0x38   : > { %162 = sbr.rel (%p1138_p6) target bundleno = 327 (0x147), region = 32 }
  0x3f   : > { %933 = dma.done.wait (%p1139_p7), [#allocation3], 128   ;;  %p1140_p2 = pmov %p1139_p7 }
  0x41   : > { %935 = vsyncadd (%p1140_p2), [#allocation3], 4294967168  ;;  %p1141_p3 = pmov %p1140_p2 }
  0x42   : > { %p1142_p8 = pmov %p1140_p2 }
  0x43   : > { %937 = dma.done.wait (%p1141_p3), [#allocation5], 16  }
  0x44   : > { %939 = vsyncadd (%p1142_p8), [#allocation5], 4294967280  ;;  %vm371_vm0 = vcmask 1043456   ;;  %s714_s19 = sshll.u32 %s975_s13, 5  ;;  %vm372_vm1 = vcmask 1044480   ;;  %v948_v0 = vmov 65535  }
  0x45   : > { %p191_p9 = scmp.lt.s32.totalorder %s714_s19, 63  ;;  %v373_v1 = vsel %vm371_vm0, 4294967295, %v948_v0  ;;  %vm322_vm2 = vcmask 72704   ;;  %v855_v3 = vld [vmem:[#allocation2] sm:$0x1f]   ;;  %s716_s23 = sshll.u32 %s975_s13, 3 }
  0x46   : > { %v374_v2 = vsel %vm372_vm1, %v373_v1, 0  ;;  %p197_p5 = scmp.lt.s32.totalorder %s716_s23, 15  ;;  %v751_v43 = vld [vmem:[#allocation4] ss:$0 sm:$0xff]  ;;  %vm618_vm3 = vcmask 519168  }
  0x47   : > { %s1144_s19 = smov (!%p191_p9, %s714_s19), 63  ;;  %v376_v5 = vand.u32 %v855_v3, %v374_v2 }
  0x48   : > { %s715_s16 = sshll.u32 %s1144_s19, 2  ;;  %s1146_s23 = smov (!%p197_p5, %s716_s23), 15 }
  0x49   : > { %s1056_s22 = scalar_lea.vmem %s1130_s0, %s715_s16  ;;  %787 = vmatprep.subr.bf16.mxu0 %v376_v5  ;;  %821 = vmatprep.subr.bf16.mxu1 %v376_v5  ;;  %s717_s13 = sshll.u32 %s1146_s23, 2 }
  0x4a   : > { %v856_v4 = vld [vmem:[%s1056_s22] sm:$0xff]   ;;  %v858_v7 = vld [vmem:[%s1056_s22 + $0x8] sm:$0xff]   ;;  %788 = vmatpush3.bf16.msra.mxu0 %v376_v5  ;;  %822 = vmatpush3.bf16.msra.mxu1 %v376_v5  ;;  %v860_v9 = vld [vmem:[%s1056_s22 + $0x10] sm:$0xff]   ;;  %s1104_s26 = scalar_lea.vmem %s1133_s3, %s717_s13 }
  0x4b   : > { %v857_v6 = vld [vmem:[%s1056_s22 + $0x40] sm:$0xff]   ;;  %789 = vmatprep.mubr.msk.bf16.mxu0 %vm322_vm2, %v856_v4  ;;  %v859_v8 = vld [vmem:[%s1056_s22 + $0x48] sm:$0xff]   ;;  %v861_v10 = vld [vmem:[%s1056_s22 + $0x50] sm:$0xff]  }
  0x4c   : > { %805 = vmatprep.mubr.msk.bf16.mxu1 %vm322_vm2, %v857_v6  ;;  %v862_v11 = vld [vmem:[%s1056_s22 + $0x18] sm:$0xff]   ;;  %v864_v13 = vld [vmem:[%s1056_s22 + $0x20] sm:$0xff]   ;;  %v866_v15 = vld [vmem:[%s1056_s22 + $0x28] sm:$0xff]  }
  0x4d   : > { %790 = vmatmul.mubr.msk.bf16.vlgmr.msra.gmra.mrb[0].mxu0 %vm322_vm2, %v858_v7  ;;  %806 = vmatmul.mubr.msk.bf16.vlgmr.msra.gmra.mrb[0].mxu1 %vm322_vm2, %v859_v8  ;;  %v863_v12 = vld [vmem:[%s1056_s22 + $0x58] sm:$0xff]   ;;  %v865_v14 = vld [vmem:[%s1056_s22 + $0x60] sm:$0xff]   ;;  %v867_v16 = vld [vmem:[%s1056_s22 + $0x68] sm:$0xff]  }
  0x4e   : > { %793 = vmatprep.mubr.msk.bf16.mxu0 %vm322_vm2, %v860_v9  ;;  %809 = vmatprep.mubr.msk.bf16.mxu1 %vm322_vm2, %v861_v10  ;;  %v868_v17 = vld [vmem:[%s1056_s22 + $0x30] sm:$0xff]   ;;  %v870_v19 = vld [vmem:[%s1056_s22 + $0x38] sm:$0xff]  }
  0x4f   : > { %v869_v18 = vld [vmem:[%s1056_s22 + $0x70] sm:$0xff]   ;;  %v871_v20 = vld [vmem:[%s1056_s22 + $0x78] sm:$0xff]  }
  0x55   : > { %794 = vmatmul.mubr.msk.bf16.gmra.mrb[4].mxu0 %vm322_vm2, %v862_v11  ;;  %810 = vmatmul.mubr.msk.bf16.gmra.mrb[4].mxu1 %vm322_vm2, %v863_v12 }
  0x56   : > { %797 = vmatprep.mubr.msk.bf16.mxu0 %vm322_vm2, %v864_v13  ;;  %813 = vmatprep.mubr.msk.bf16.mxu1 %vm322_vm2, %v865_v14 }
  0x5d   : > { %798 = vmatmul.mubr.msk.bf16.gmra.mrb[8].mxu0 %vm322_vm2, %v866_v15  ;;  %814 = vmatmul.mubr.msk.bf16.gmra.mrb[8].mxu1 %vm322_vm2, %v867_v16 }
  0x5e   : > { %801 = vmatprep.mubr.msk.bf16.mxu0 %vm322_vm2, %v868_v17  ;;  %817 = vmatprep.mubr.msk.bf16.mxu1 %vm322_vm2, %v869_v18 }
  0x65   : > { %802 = vmatmul.mubr.msk.bf16.gmra.mrb[12].mxu0 %vm322_vm2, %v870_v19  ;;  %818 = vmatmul.mubr.msk.bf16.gmra.mrb[12].mxu1 %vm322_vm2, %v871_v20 }
 0x120   : > { %v791_v21 = vpop.f32.mrb[0].mxu0  ;;  %v807_v22 = vpop.f32.mrb[0].mxu1 }
 0x121   : > { %v412_v23 = vpop.f32.mrb[1].mxu0  ;;  %v476_v24 = vpop.f32.mrb[1].mxu1 }
 0x122   : > { %v792_v25 = vpop.f32.mrb[2].mxu0  ;;  %v808_v26 = vpop.f32.mrb[2].mxu1 }
 0x123   : > { %v415_v27 = vpop.f32.mrb[3].mxu0  ;;  %v479_v28 = vpop.f32.mrb[3].mxu1 }
 0x128   : > { %v795_v29 = vpop.f32.mrb[4].mxu0  ;;  %v811_v30 = vpop.f32.mrb[4].mxu1 }
 0x129   : > { %v1090_v31 = vpop.f32.mrb[5].mxu0  ;;  %v492_v32 = vpop.f32.mrb[5].mxu1 }
 0x12a   : > { %v1092_v33 = vpop.f32.mrb[6].mxu0  ;;  %v1094_v34 = vpop.f32.mrb[6].mxu1 }
 0x12b   : > { %v1097_v35 = vpop.f32.mrb[7].mxu0  ;;  %v1099_v36 = vpop.f32.mrb[7].mxu1 }
 0x130   : > { %v799_v37 = vpop.f32.mrb[8].mxu0  ;;  %v815_v38 = vpop.f32.mrb[8].mxu1 }
 0x131   : > { %v541_v39 = vmax.f32 %v791_v21, %v799_v37  ;;  %v549_v40 = vmax.f32 %v807_v22, %v815_v38  ;;  %v444_v41 = vpop.f32.mrb[9].mxu0  ;;  %v508_v42 = vpop.f32.mrb[9].mxu1 }
 0x132   : > { %v539_v44 = vmax.f32 %v412_v23, %v444_v41  ;;  %v547_v45 = vmax.f32 %v476_v24, %v508_v42  ;;  %v800_v46 = vpop.f32.mrb[10].mxu0  ;;  %v816_v47 = vpop.f32.mrb[10].mxu1 }
 0x133   : > { %v557_v48 = vmax.f32 %v541_v39, %v549_v40  ;;  %v542_v49 = vmax.f32 %v792_v25, %v800_v46  ;;  %v550_v50 = vmax.f32 %v808_v26, %v816_v47  ;;  %v447_v51 = vpop.f32.mrb[11].mxu0  ;;  %v511_v52 = vpop.f32.mrb[11].mxu1 }
 0x134   : > { %v555_v53 = vmax.f32 %v539_v44, %v547_v45  ;;  %v540_v54 = vmax.f32 %v415_v27, %v447_v51  ;;  %v548_v55 = vmax.f32 %v479_v28, %v511_v52 }
 0x135   : > { %v572_v56 = vadd.f32 %v751_v43, %v557_v48  ;;  %v558_v57 = vmax.f32 %v542_v49, %v550_v50 }
 0x136   : > { %v570_v58 = vadd.f32 %v751_v43, %v555_v53  ;;  %v556_v59 = vmax.f32 %v540_v54, %v548_v55 }
 0x137   : > { %v580_v60 = vmax.f32 %v572_v56, 0.0  ;;  %v573_v61 = vadd.f32 %v751_v43, %v558_v57 }
 0x138   : > { %v578_v62 = vmax.f32 %v570_v58, 0.0  ;;  %v571_v63 = vadd.f32 %v751_v43, %v556_v59  ;;  %v803_v0 = vpop.f32.mrb[12].mxu0  ;;  %v819_v1 = vpop.f32.mrb[12].mxu1 }
 0x139   : > { %v764_v2 = vpack.c.bf16 %v580_v60, %v580_v60  ;;  %v581_v3 = vmax.f32 %v573_v61, 0.0  ;;  %v545_v4 = vmax.f32 %v795_v29, %v803_v0  ;;  %v553_v5 = vmax.f32 %v811_v30, %v819_v1  ;;  %v460_v6 = vpop.f32.mrb[13].mxu0  ;;  %v524_v7 = vpop.f32.mrb[13].mxu1 }
 0x13a   : > { %v762_v8 = vpack.c.bf16 %v578_v62, %v578_v62  ;;  %v579_v9 = vmax.f32 %v571_v63, 0.0  ;;  %v543_v10 = vmax.f32 %v1090_v31, %v460_v6  ;;  %v551_v11 = vmax.f32 %v492_v32, %v524_v7  ;;  %v804_v12 = vpop.f32.mrb[14].mxu0  ;;  %v820_v13 = vpop.f32.mrb[14].mxu1 }
 0x13b   : > { %621 = vst.msk [vmem:[%s1104_s26 + $0x8] sm:$0xf] %vm618_vm3, %v764_v2  ;;  %v765_v14 = vpack.c.bf16 %v581_v3, %v581_v3  ;;  %v561_v15 = vmax.f32 %v545_v4, %v553_v5  ;;  %v546_v16 = vmax.f32 %v1092_v33, %v804_v12  ;;  %v554_v17 = vmax.f32 %v1094_v34, %v820_v13  ;;  %v463_v18 = vpop.f32.mrb[15].mxu0  ;;  %v527_v19 = vpop.f32.mrb[15].mxu1 }
 0x13c   : > { %619 = vst.msk [vmem:[%s1104_s26] sm:$0xf] %vm618_vm3, %v762_v8  ;;  %v763_v20 = vpack.c.bf16 %v579_v9, %v579_v9  ;;  %v559_v21 = vmax.f32 %v543_v10, %v551_v11  ;;  %v544_v22 = vmax.f32 %v1097_v35, %v463_v18  ;;  %v552_v23 = vmax.f32 %v1099_v36, %v527_v19 }
 0x13d   : > { %622 = vst.msk [vmem:[%s1104_s26 + $0xc] sm:$0xf] %vm618_vm3, %v765_v14  ;;  %v576_v24 = vadd.f32 %v751_v43, %v561_v15  ;;  %v562_v25 = vmax.f32 %v546_v16, %v554_v17 }
 0x13e   : > { %620 = vst.msk [vmem:[%s1104_s26 + $0x4] sm:$0xf] %vm618_vm3, %v763_v20  ;;  %v574_v26 = vadd.f32 %v751_v43, %v559_v21  ;;  %v560_v27 = vmax.f32 %v544_v22, %v552_v23 }
 0x13f   : > { %v584_v28 = vmax.f32 %v576_v24, 0.0  ;;  %v577_v29 = vadd.f32 %v751_v43, %v562_v25 }
 0x140   : > { %v582_v30 = vmax.f32 %v574_v26, 0.0  ;;  %v575_v31 = vadd.f32 %v751_v43, %v560_v27 }
 0x141   : > { %v768_v32 = vpack.c.bf16 %v584_v28, %v584_v28  ;;  %v585_v33 = vmax.f32 %v577_v29, 0.0 }
 0x142   : > { %v766_v34 = vpack.c.bf16 %v582_v30, %v582_v30  ;;  %v583_v35 = vmax.f32 %v575_v31, 0.0 }
 0x143   : > { %625 = vst.msk [vmem:[%s1104_s26 + $0x18] sm:$0xf] %vm618_vm3, %v768_v32  ;;  %v769_v36 = vpack.c.bf16 %v585_v33, %v585_v33 }
 0x144   : > { %623 = vst.msk [vmem:[%s1104_s26 + $0x10] sm:$0xf] %vm618_vm3, %v766_v34  ;;  %v767_v37 = vpack.c.bf16 %v583_v35, %v583_v35 }
 0x145   : > { %626 = vst.msk [vmem:[%s1104_s26 + $0x1c] sm:$0xf] %vm618_vm3, %v769_v36 }
 0x146   : > { %624 = vst.msk [vmem:[%s1104_s26 + $0x14] sm:$0xf] %vm618_vm3, %v767_v37 }
 0x147 PF: > { %s15_s12 = sadd.s32 1, %s942_s12  }
 0x148   : > { %p12_p10 = scmp.ge.s32.totalorder %s15_s12, 4  }
 0x14a   :  { %14 = sbr.rel (!%p12_p10) target bundleno = 2 (0x2), region = 71 }
 0x151   :  { %649 = vsyncpa [#allocation3], 1 }
 0x152   :  { %651 = vsyncpa [#allocation3 + $0x1], 1 }
 0x153   :  { %652 = vsyncpa [#allocation5], 1 }

// kernel: pinn_forward.4
= control target key start
LH: loop header
LB: loop body
LE: loop exit
PB: predicated region body
PF: predicated region fallthrough
CT: control target
= control target key end

     0   :  { %s1175_s12 = smov 0   ;;  %s1329_s0 = inlined_call_operand.vmem [shape: bf16[128,576], index: 0, kind: input, shape index: {}]   ;;  %s1330_s1 = inlined_call_operand.vmem [shape: bf16[576,128], index: 1, kind: input, shape index: {}]   ;;  %s1331_s2 = inlined_call_operand.vmem [shape: f32[1,128], index: 2, kind: input, shape index: {}]   ;;  %s1332_s3 = inlined_call_operand.vmem [shape: bf16[32,128], index: 3, kind: output, shape index: {}]  }
   0x1 LB: > { %s881_s13 = sadd.s32 4294967295, %s1153_s12   ;;  %p885_p0 = scmp.ge.s32.totalorder %s1153_s12, 1  ;;  %s1153_s12 = sphi %s1175_s12, %s13_s12  }
   0x2   : > { %p139_p1 = scmp.lt.s32.totalorder %s1153_s12, 3 }
   0x4   : > { %p140_p2 = pnand %p885_p0, %p139_p1 }
   0x5   : > { %v1083_v0 = vld [vmem:[%s1330_s1 + $0x40] sm:$0xff] (!%p140_p2)   ;;  %v1087_v4 = vld [vmem:[%s1330_s1 + $0x48] sm:$0xff] (!%p140_p2)   ;;  %v1091_v8 = vld [vmem:[%s1330_s1 + $0x50] sm:$0xff] (!%p140_p2)   ;;  %s886_s19 = sshll.u32 (!%p140_p2), %s881_s13, 3  ;;  %vm590_vm0 = vcmask (!%p140_p2), 523264   ;;  %s888_s16 = sshll.u32 (!%p140_p2), %s881_s13, 1 }
   0x6   : > { %143 = sbr.rel (%p140_p2) target bundleno = 300 (0x12c), region = 32  ;;  %v1084_v1 = vld [vmem:[%s1330_s1 + $0xc0] sm:$0xff] (!%p140_p2)   ;;  %962 = vmatprep.subr.bf16.mxu0 (!%p140_p2), %v1083_v0  ;;  %v1088_v5 = vld [vmem:[%s1330_s1 + $0xc8] sm:$0xff] (!%p140_p2)   ;;  %v1092_v9 = vld [vmem:[%s1330_s1 + $0xd0] sm:$0xff] (!%p140_p2)   ;;  %p165_p3 = scmp.lt.s32.totalorder (!%p140_p2), %s886_s19, 15 }
   0x7   : > { %v1085_v2 = vld [vmem:[%s1330_s1] sm:$0xff] (!%p140_p2)   ;;  %1002 = vmatprep.subr.bf16.mxu1 (!%p140_p2), %v1084_v1  ;;  %v1089_v6 = vld [vmem:[%s1330_s1 + $0x8] sm:$0xff] (!%p140_p2)   ;;  %v1093_v10 = vld [vmem:[%s1330_s1 + $0x10] sm:$0xff] (!%p140_p2)   ;;  %p172_p4 = scmp.lt.s32.totalorder (!%p140_p2), %s888_s16, 3 }
   0x8   : > { %v1086_v3 = vld [vmem:[%s1330_s1 + $0x80] sm:$0xff] (!%p140_p2)   ;;  %963 = vmatpush3.bf16.msra.mxu0 (!%p140_p2), %v1085_v2  ;;  %v1090_v7 = vld [vmem:[%s1330_s1 + $0x88] sm:$0xff] (!%p140_p2)   ;;  %v1094_v11 = vld [vmem:[%s1330_s1 + $0x90] sm:$0xff] (!%p140_p2)  }
   0x9   : > { %1003 = vmatpush3.bf16.msra.mxu1 (!%p140_p2), %v1086_v3  ;;  %964 = vmatprep.subr.bf16.mxu0 (!%p140_p2), %v1087_v4  ;;  %v1095_v12 = vld [vmem:[%s1330_s1 + $0x58] sm:$0xff] (!%p140_p2)   ;;  %v1099_v16 = vld [vmem:[%s1330_s1 + $0x60] sm:$0xff] (!%p140_p2)   ;;  %v1103_v20 = vld [vmem:[%s1330_s1 + $0x68] sm:$0xff] (!%p140_p2)  }
   0xa   : > { %1004 = vmatprep.subr.bf16.mxu1 (!%p140_p2), %v1088_v5  ;;  %v1096_v13 = vld [vmem:[%s1330_s1 + $0xd8] sm:$0xff] (!%p140_p2)   ;;  %v1100_v17 = vld [vmem:[%s1330_s1 + $0xe0] sm:$0xff] (!%p140_p2)   ;;  %v1104_v21 = vld [vmem:[%s1330_s1 + $0xe8] sm:$0xff] (!%p140_p2)  }
   0xb   : > { %v1097_v14 = vld [vmem:[%s1330_s1 + $0x18] sm:$0xff] (!%p140_p2)   ;;  %v1101_v18 = vld [vmem:[%s1330_s1 + $0x20] sm:$0xff] (!%p140_p2)   ;;  %v1105_v22 = vld [vmem:[%s1330_s1 + $0x28] sm:$0xff] (!%p140_p2)  }
   0xc   : > { %965 = vmatpush3.bf16.msra.mxu0 (!%p140_p2), %v1089_v6  ;;  %v1098_v15 = vld [vmem:[%s1330_s1 + $0x98] sm:$0xff] (!%p140_p2)   ;;  %v1102_v19 = vld [vmem:[%s1330_s1 + $0xa0] sm:$0xff] (!%p140_p2)   ;;  %v1106_v23 = vld [vmem:[%s1330_s1 + $0xa8] sm:$0xff] (!%p140_p2)  }
   0xd   : > { %1005 = vmatpush3.bf16.msra.mxu1 %v1090_v7  ;;  %966 = vmatprep.subr.bf16.mxu0 %v1091_v8  ;;  %s1334_s19 = smov (!%p165_p3, %s886_s19), 15  ;;  %v1107_v24 = vld [vmem:[%s1330_s1 + $0x70] sm:$0xff]   ;;  %v1111_v28 = vld [vmem:[%s1330_s1 + $0x78] sm:$0xff]   ;;  %v1121_v36 = vld [vmem:[%s1330_s1 + $0x100] sm:$0xff]   ;;  %s1336_s16 = smov (!%p172_p4, %s888_s16), 3 }
   0xe   : > { %1006 = vmatprep.subr.bf16.mxu1 %v1092_v9  ;;  %v1108_v25 = vld [vmem:[%s1330_s1 + $0xf0] sm:$0xff]   ;;  %s1074_s17 = smul.u32 20, %s1334_s19  ;;  %v1112_v29 = vld [vmem:[%s1330_s1 + $0xf8] sm:$0xff]   ;;  %v1128_v39 = vld [vmem:[%s1330_s1 + $0x108] sm:$0xff]   ;;  %s889_s18 = sshll.u32 %s1336_s16, 2 }
   0xf   : > { %v1109_v26 = vld [vmem:[%s1330_s1 + $0x30] sm:$0xff]   ;;  %v1113_v30 = vld [vmem:[%s1330_s1 + $0x38] sm:$0xff]   ;;  %s175_s22 = scalar_lea.vmem %s1332_s3, %s889_s18 }
  0x10   : > { %967 = vmatpush3.bf16.msra.mxu0 %v1093_v10  ;;  %v1110_v27 = vld [vmem:[%s1330_s1 + $0xb0] sm:$0xff]   ;;  %s1278_s28 = scalar_lea.vmem %s1329_s0, %s1074_s17  ;;  %v1114_v31 = vld [vmem:[%s1330_s1 + $0xb8] sm:$0xff]  }
  0x11   : > { %1007 = vmatpush3.bf16.msra.mxu1 %v1094_v11  ;;  %968 = vmatprep.subr.bf16.mxu0 %v1095_v12  ;;  %v1115_v32 = vld [vmem:[%s1278_s28] ss:$20 sps:$4 sm:$0xff]   ;;  %v1117_v33 = vld [vmem:[%s1278_s28 + $0x4] ss:$20 sps:$4 sm:$0xff]   ;;  %v1118_v34 = vld [vmem:[%s1278_s28 + $0x8] ss:$20 sps:$4 sm:$0xff]  }
  0x12   : > { %1008 = vmatprep.subr.bf16.mxu1 %v1096_v13  ;;  %v1120_v35 = vld [vmem:[%s1278_s28 + $0xc] ss:$20 sps:$4 sm:$0xff]   ;;  %635 = vmatprep.mubr.bf16.mxu0 %v1117_v33  ;;  %v1124_v38 = vld [vmem:[%s1278_s28 + $0x34] ss:$20 sps:$4 sm:$0xff]   ;;  %v1127_v41 = vld [vmem:[%s1278_s28 + $0x30] ss:$20 sps:$4 sm:$0xff]  }
  0x13   : > { %700 = vmatprep.mubr.bf16.mxu1 %v1120_v35  ;;  %v1122_v37 = vld [vmem:[%s1278_s28 + $0x2c] ss:$20 sps:$4 sm:$0xff]   ;;  %v1126_v40 = vld [vmem:[%s1278_s28 + $0x28] ss:$20 sps:$4 sm:$0xff]   ;;  %v1135_v44 = vld [vmem:[%s1330_s1 + $0x110] sm:$0xff]  }
  0x14   : > { %969 = vmatpush3.bf16.msra.mxu0 %v1097_v14  ;;  %v1129_v42 = vld [vmem:[%s1278_s28 + $0x54] ss:$20 sps:$4 sm:$0xff]   ;;  %v1131_v43 = vld [vmem:[%s1278_s28 + $0x5c] ss:$20 sps:$4 sm:$0xff]   ;;  %v1134_v47 = vld [vmem:[%s1278_s28 + $0x58] ss:$20 sps:$4 sm:$0xff]  }
  0x15   : > { %1009 = vmatpush3.bf16.msra.mxu1 %v1098_v15  ;;  %970 = vmatprep.subr.bf16.mxu0 %v1099_v16  ;;  %v1142_v45 = vld [vmem:[%s1330_s1 + $0x118] sm:$0xff]   ;;  %v1133_v46 = vld [vmem:[%s1278_s28 + $0x50] ss:$20 sps:$4 sm:$0xff]   ;;  %v1141_v51 = vld [vmem:[%s1278_s28 + $0x80] ss:$20 sps:$4 sm:$0xff]  }
  0x16   : > { %1010 = vmatprep.subr.bf16.mxu1 %v1100_v17  ;;  %v1136_v48 = vld [vmem:[%s1278_s28 + $0x7c] ss:$20 sps:$4 sm:$0xff]   ;;  %v1138_v49 = vld [vmem:[%s1278_s28 + $0x84] ss:$20 sps:$4 sm:$0xff]   ;;  %v1144_v53 = vld [vmem:[%s1278_s28 + $0x60] ss:$20 sps:$4 sm:$0xff]  }
  0x17   : > { %v1140_v50 = vld [vmem:[%s1278_s28 + $0x78] ss:$20 sps:$4 sm:$0xff]   ;;  %v1143_v52 = vld [vmem:[%s1278_s28 + $0x10] ss:$20 sps:$4 sm:$0xff]   ;;  %v1146_v55 = vld [vmem:[%s1278_s28 + $0x88] ss:$20 sps:$4 sm:$0xff]  }
  0x18   : > { %971 = vmatpush3.bf16.msra.mxu0 %v1101_v18  ;;  %v1145_v54 = vld [vmem:[%s1278_s28 + $0x38] ss:$20 sps:$4 sm:$0xff]  }
  0x19   : > { %1011 = vmatpush3.bf16.msra.mxu1 %v1102_v19  ;;  %972 = vmatprep.subr.bf16.mxu0 %v1103_v20 }
  0x1a   : > { %1012 = vmatprep.subr.bf16.mxu1 %v1104_v21 }
  0x1c   : > { %973 = vmatpush3.bf16.msra.mxu0 %v1105_v22 }
  0x1d   : > { %1013 = vmatpush3.bf16.msra.mxu1 %v1106_v23  ;;  %974 = vmatprep.subr.bf16.mxu0 %v1107_v24 }
  0x1e   : > { %1014 = vmatprep.subr.bf16.mxu1 %v1108_v25 }
  0x20   : > { %975 = vmatpush3.bf16.msra.mxu0 %v1109_v26 }
  0x21   : > { %1015 = vmatpush3.bf16.msra.mxu1 %v1110_v27  ;;  %976 = vmatprep.subr.bf16.mxu0 %v1111_v28 }
  0x22   : > { %1016 = vmatprep.subr.bf16.mxu1 %v1112_v29 }
  0x24   : > { %977 = vmatpush3.bf16.msra.mxu0 %v1113_v30 }
  0x25   : > { %1017 = vmatpush3.bf16.msra.mxu1 %v1114_v31  ;;  %1050 = vmatprep.subr.bf16.mxu0 %v1121_v36 }
  0x26   : > { %1066 = vmatprep.subr.bf16.mxu1 %v1121_v36 }
  0x27   : > { %636 = vmatmul.mubr.bf16.vlgmr.msra.gmra.mrb[0].mxu0 %v1115_v32 }
  0x28   : > { %701 = vmatmul.mubr.bf16.vlgmr.msra.gmra.mrb[0].mxu1 %v1118_v34  ;;  %1051 = vmatpush3.bf16.msra.mxu0 %v1121_v36 }
  0x29   : > { %1070 = vmatpush3.bf16.msra.mxu1 %v1121_v36  ;;  %643 = vmatprep.mubr.bf16.mxu0 %v1122_v37 }
  0x2a   : > { %708 = vmatprep.mubr.bf16.mxu1 %v1124_v38  ;;  %1052 = vmatprep.subr.bf16.mxu0 %v1128_v39 }
  0x2b   : > { %1067 = vmatprep.subr.bf16.mxu1 %v1128_v39 }
  0x2c   : > { %1053 = vmatpush3.bf16.msra.mxu0 %v1128_v39 }
  0x2d   : > { %1071 = vmatpush3.bf16.msra.mxu1 %v1128_v39  ;;  %1054 = vmatprep.subr.bf16.mxu0 %v1135_v44 }
  0x2e   : > { %1068 = vmatprep.subr.bf16.mxu1 %v1135_v44 }
  0x2f   : > { %644 = vmatmul.mubr.bf16.gmra.mrb[4].mxu0 %v1126_v40 }
  0x30   : > { %709 = vmatmul.mubr.bf16.gmra.mrb[4].mxu1 %v1127_v41  ;;  %651 = vmatprep.mubr.bf16.mxu0 %v1129_v42 }
  0x31   : > { %716 = vmatprep.mubr.bf16.mxu1 %v1131_v43  ;;  %1055 = vmatpush3.bf16.msra.mxu0 %v1135_v44 }
  0x32   : > { %1072 = vmatpush3.bf16.msra.mxu1 %v1135_v44  ;;  %1056 = vmatprep.subr.bf16.mxu0 %v1142_v45 }
  0x33   : > { %1069 = vmatprep.subr.bf16.mxu1 %v1142_v45 }
  0x35   : > { %1057 = vmatpush3.bf16.msra.mxu0 %v1142_v45 }
  0x36   : > { %1073 = vmatpush3.bf16.msra.mxu1 %v1142_v45 }
  0x37   : > { %652 = vmatmul.mubr.bf16.gmra.mrb[8].mxu0 %v1133_v46 }
  0x38   : > { %717 = vmatmul.mubr.bf16.gmra.mrb[8].mxu1 %v1134_v47  ;;  %659 = vmatprep.mubr.bf16.mxu0 %v1136_v48 }
  0x39   : > { %724 = vmatprep.mubr.bf16.mxu1 %v1138_v49 }
  0x3f   : > { %660 = vmatmul.mubr.bf16.gmra.mrb[12].mxu0 %v1140_v50 }
  0x40   : > { %725 = vmatmul.mubr.bf16.gmra.mrb[12].mxu1 %v1141_v51  ;;  %1058 = vmatprep.mubr.msk.bf16.mxu0 %vm590_vm0, %v1143_v52 }
  0x41   : > { %1062 = vmatprep.mubr.msk.bf16.mxu1 %vm590_vm0, %v1144_v53 }
  0x47   : > { %1059 = vmatmul.mubr.msk.bf16.vlgmr.msra.gmra.mrb[16].mxu0 %vm590_vm0, %v1145_v54 }
  0x48   : > { %1063 = vmatmul.mubr.msk.bf16.vlgmr.msra.gmra.mrb[16].mxu1 %vm590_vm0, %v1146_v55 }
  0xfa   : > { %v978_v56 = vpop.f32.mrb[0].mxu0 }
  0xfb   : > { %v1018_v57 = vpop.f32.mrb[0].mxu1  ;;  %v979_v58 = vpop.f32.mrb[1].mxu0 }
  0xfc   : > { %v980_v59 = vadd.f32 %v979_v58, %v978_v56  ;;  %v1019_v60 = vpop.f32.mrb[1].mxu1  ;;  %v981_v61 = vpop.f32.mrb[2].mxu0 }
  0xfd   : > { %v1020_v62 = vadd.f32 %v1019_v60, %v1018_v57  ;;  %v1021_v63 = vpop.f32.mrb[2].mxu1  ;;  %v982_v0 = vpop.f32.mrb[3].mxu0 }
  0xfe   : > { %v983_v1 = vadd.f32 %v982_v0, %v981_v61  ;;  %v1022_v2 = vpop.f32.mrb[3].mxu1 }
  0xff   : > { %v1023_v3 = vadd.f32 %v1022_v2, %v1021_v63  ;;  %v703_v4 = vadd.f32 %v1020_v62, %v980_v59  ;;  %v950_v2 = vld [vmem:[%s1331_s2] ss:$0 sm:$0xff] }
 0x101   : > { %v706_v5 = vadd.f32 %v1023_v3, %v983_v1 }
 0x102   : > { %v984_v6 = vpop.f32.mrb[4].mxu0 }
 0x103   : > { %v1024_v7 = vpop.f32.mrb[4].mxu1  ;;  %v985_v8 = vpop.f32.mrb[5].mxu0 }
 0x104   : > { %v986_v9 = vadd.f32 %v985_v8, %v984_v6  ;;  %v1025_v10 = vpop.f32.mrb[5].mxu1  ;;  %v987_v11 = vpop.f32.mrb[6].mxu0 }
 0x105   : > { %v1026_v12 = vadd.f32 %v1025_v10, %v1024_v7  ;;  %v1027_v13 = vpop.f32.mrb[6].mxu1  ;;  %v988_v14 = vpop.f32.mrb[7].mxu0 }
 0x106   : > { %v989_v15 = vadd.f32 %v988_v14, %v987_v11  ;;  %v1028_v16 = vpop.f32.mrb[7].mxu1 }
 0x107   : > { %v1029_v17 = vadd.f32 %v1028_v16, %v1027_v13  ;;  %v711_v18 = vadd.f32 %v1026_v12, %v986_v9 }
 0x109   : > { %v714_v19 = vadd.f32 %v1029_v17, %v989_v15 }
 0x10a   : > { %v990_v20 = vpop.f32.mrb[8].mxu0 }
 0x10b   : > { %v1030_v21 = vpop.f32.mrb[8].mxu1  ;;  %v991_v22 = vpop.f32.mrb[9].mxu0 }
 0x10c   : > { %v992_v23 = vadd.f32 %v991_v22, %v990_v20  ;;  %v1031_v24 = vpop.f32.mrb[9].mxu1  ;;  %v993_v25 = vpop.f32.mrb[10].mxu0 }
 0x10d   : > { %v1032_v26 = vadd.f32 %v1031_v24, %v1030_v21  ;;  %v1033_v27 = vpop.f32.mrb[10].mxu1  ;;  %v994_v28 = vpop.f32.mrb[11].mxu0 }
 0x10e   : > { %v995_v29 = vadd.f32 %v994_v28, %v993_v25  ;;  %v1034_v30 = vpop.f32.mrb[11].mxu1 }
 0x10f   : > { %v1035_v31 = vadd.f32 %v1034_v30, %v1033_v27  ;;  %v719_v32 = vadd.f32 %v1032_v26, %v992_v23 }
 0x111   : > { %v722_v33 = vadd.f32 %v1035_v31, %v995_v29 }
 0x112   : > { %v996_v34 = vpop.f32.mrb[12].mxu0 }
 0x113   : > { %v1036_v35 = vpop.f32.mrb[12].mxu1  ;;  %v997_v36 = vpop.f32.mrb[13].mxu0 }
 0x114   : > { %v998_v37 = vadd.f32 %v997_v36, %v996_v34  ;;  %v1037_v38 = vpop.f32.mrb[13].mxu1  ;;  %v999_v39 = vpop.f32.mrb[14].mxu0 }
 0x115   : > { %v1038_v40 = vadd.f32 %v1037_v38, %v1036_v35  ;;  %v1039_v41 = vpop.f32.mrb[14].mxu1  ;;  %v1000_v42 = vpop.f32.mrb[15].mxu0 }
 0x116   : > { %v1001_v43 = vadd.f32 %v1000_v42, %v999_v39  ;;  %v1040_v44 = vpop.f32.mrb[15].mxu1 }
 0x117   : > { %v1041_v45 = vadd.f32 %v1040_v44, %v1039_v41  ;;  %v727_v46 = vadd.f32 %v1038_v40, %v998_v37 }
 0x119   : > { %v730_v47 = vadd.f32 %v1041_v45, %v1001_v43 }
 0x11a   : > { %v1060_v48 = vpop.f32.mrb[16].mxu0 }
 0x11b   : > { %v776_v49 = vadd.f32 %v1060_v48, %v711_v18  ;;  %v1064_v50 = vpop.f32.mrb[16].mxu1  ;;  %v767_v51 = vpop.f32.mrb[17].mxu0 }
 0x11c   : > { %v792_v52 = vadd.f32 %v1064_v50, %v727_v46  ;;  %v768_v53 = vadd.f32 %v767_v51, %v703_v4  ;;  %v783_v54 = vpop.f32.mrb[17].mxu1  ;;  %v1061_v55 = vpop.f32.mrb[18].mxu0 }
 0x11d   : > { %v784_v56 = vadd.f32 %v783_v54, %v719_v32  ;;  %v779_v57 = vadd.f32 %v1061_v55, %v714_v19  ;;  %v1065_v58 = vpop.f32.mrb[18].mxu1  ;;  %v770_v59 = vpop.f32.mrb[19].mxu0 }
 0x11e   : > { %v798_v60 = vmax.f32 %v768_v53, %v776_v49  ;;  %v795_v61 = vadd.f32 %v1065_v58, %v730_v47  ;;  %v771_v62 = vadd.f32 %v770_v59, %v706_v5  ;;  %v786_v63 = vpop.f32.mrb[19].mxu1 }
 0x11f   : > { %v800_v0 = vmax.f32 %v784_v56, %v792_v52  ;;  %v787_v1 = vadd.f32 %v786_v63, %v722_v33 }
 0x120   : > { %v799_v3 = vmax.f32 %v771_v62, %v779_v57 }
 0x121   : > { %v802_v6 = vmax.f32 %v798_v60, %v800_v0  ;;  %v801_v4 = vmax.f32 %v787_v1, %v795_v61 }
 0x123   : > { %v811_v7 = vadd.f32 %v950_v2, %v802_v6  ;;  %v803_v8 = vmax.f32 %v799_v3, %v801_v4 }
 0x125   : > { %v812_v9 = vadd.f32 %v950_v2, %v803_v8  ;;  %v813_v10 = vmax.f32 %v811_v7, 0.0 }
 0x127   : > { %v814_v11 = vmax.f32 %v812_v9, 0.0 }
 0x129   : > { %v960_v5 = vpack.c.bf16 %v814_v11, %v813_v10 }
 0x12b   : > { %961 = vst [vmem:[%s175_s22] sm:$0xff] %v960_v5  }
 0x12c PF: > { %s13_s12 = sadd.s32 1, %s1153_s12  }
 0x12d   : > { %p10_p5 = scmp.ge.s32.totalorder %s13_s12, 4  }
 0x12f   :  { %12 = sbr.rel (!%p10_p5) target bundleno = 1 (0x1), region = 62 }

// kernel: pinn_forward.5
= control target key start
LH: loop header
LB: loop body
LE: loop exit
PB: predicated region body
PF: predicated region fallthrough
CT: control target
= control target key end

     0   :  { %s5584_s26 = smov 0   ;;  %s7171_s0 = inlined_call_operand.vmem [shape: bf16[32,128], index: 0, kind: input, shape index: {}]   ;;  %s7172_s1 = inlined_call_operand.vmem [shape: bf16[128,256], index: 1, kind: input, shape index: {}]   ;;  %s7173_s2 = inlined_call_operand.vmem [shape: f32[1,256], index: 2, kind: input, shape index: {}]   ;;  %s7174_s3 = inlined_call_operand.vmem [shape: bf16[256,512], index: 3, kind: input, shape index: {}]   ;;  %s7175_s4 = inlined_call_operand.vmem [shape: f32[1,512], index: 4, kind: input, shape index: {}]   ;;  %s7176_s5 = inlined_call_operand.vmem [shape: bf16[512,1024], index: 5, kind: input, shape index: {}]   ;;  %s7177_s6 = inlined_call_operand.vmem [shape: f32[1,1024], index: 6, kind: input, shape index: {}]   ;;  %s7178_s7 = inlined_call_operand.vmem [shape: bf16[1024,256], index: 7, kind: input, shape index: {}]   ;;  %s7179_s8 = inlined_call_operand.vmem [shape: f32[1,256], index: 8, kind: input, shape index: {}]   ;;  %s7180_s9 = inlined_call_operand.vmem [shape: bf16[32,4], index: 9, kind: input, shape index: {}]   ;;  %s7181_s10 = inlined_call_operand.vmem [shape: bf16[4,64], index: 10, kind: input, shape index: {}]   ;;  %s7182_s11 = inlined_call_operand.vmem [shape: f32[1,64], index: 11, kind: input, shape index: {}]   ;;  %s7183_s12 = inlined_call_operand.vmem [shape: bf16[64,64], index: 12, kind: input, shape index: {}]   ;;  %s7184_s13 = inlined_call_operand.vmem [shape: f32[1,64], index: 13, kind: input, shape index: {}]   ;;  %s7185_s14 = inlined_call_operand.vmem [shape: bf16[64,1], index: 14, kind: input, shape index: {}]   ;;  %s7186_s15 = inlined_call_operand.<no memory space> [shape: f32[1,1], index: 15, kind: input, shape index: {}]   ;;  %s7187_s16 = inlined_call_operand.vmem [shape: f32[32,256], index: 16, kind: output, shape index: {0}]   ;;  %s7188_s17 = inlined_call_operand.vmem [shape: f32[32,1], index: 17, kind: output, shape index: {1}]  }
   0x1   :  { %7191 = sst [smem:[#allocation4_spill]] %s7171_s0  ;;  %v23_v0 = vstv %s7186_s15 }
   0x2   :  { %7192 = sst [smem:[#allocation5_spill]] %s7172_s1  ;;  %24 = vst [vmem:[#allocation2] sm:$0x1] %v23_v0 }
   0x3 LB: > { %7193 = sst [smem:[#allocation3_spill]] %s5486_s26  ;;  %s4536_s27 = sadd.s32 4294967295, %s5486_s26   ;;  %s5486_s26 = sphi %s5584_s26, %s30_s26  }
   0x4   : > { %p4540_p0 = scmp.ge.s32.totalorder %s5486_s26, 1  ;;  %p504_p1 = scmp.lt.s32.totalorder %s5486_s26, 3 }
   0x6   : > { %p505_p2 = pnand %p4540_p0, %p504_p1 }
   0x7   : > { %s7194_s0 = sld [smem:[#allocation5_spill]] (!%p505_p2)  ;;  %s4541_s15 = sshll.u32 (!%p505_p2), %s4536_s27, 1  ;;  %v5488_v3 = vmov (!%p505_p2), 0   ;;  %v5162_v18 = vld [vmem:[%s7174_s3 + $0x4] ss:$16 sps:$4 sm:$0xff] (!%p505_p2)   ;;  %vm4211_vm0 = vcmask (!%p505_p2), 1041408  }
   0x8   : > { %508 = sbr.rel (%p505_p2) target bundleno = 1366 (0x556), region = 84  ;;  %741 = vmatprep.mubr.bf16.mxu0 (!%p505_p2), %v5488_v3  ;;  %p568_p3 = scmp.lt.s32.totalorder (!%p505_p2), %s4541_s15, 3  ;;  %v5160_v20 = vld [vmem:[%s7174_s3] ss:$16 sps:$4 sm:$0xff] (!%p505_p2)   ;;  %v5165_v21 = vld [vmem:[%s7174_s3 + $0x24] ss:$16 sps:$4 sm:$0xff] (!%p505_p2)  }
   0x9   : > { %s7195_s19 = sld [smem:[#allocation4_spill]] (!%p505_p2)  ;;  %v5163_v22 = vld [vmem:[%s7174_s3 + $0x20] ss:$16 sps:$4 sm:$0xff] (!%p505_p2)   ;;  %v5168_v23 = vld [vmem:[%s7174_s3 + $0x44] ss:$16 sps:$4 sm:$0xff] (!%p505_p2)   ;;  %vm5490_vm1 = vmmov (!%p505_p2), 0  }
   0xa   : > { %v5166_v24 = vld [vmem:[%s7174_s3 + $0x40] ss:$16 sps:$4 sm:$0xff] (!%p505_p2)   ;;  %v5171_v25 = vld [vmem:[%s7174_s3 + $0x64] ss:$16 sps:$4 sm:$0xff] (!%p505_p2)   ;;  %v5210_v51 = vld [vmem:[%s7174_s3 + $0xc] ss:$16 sps:$4 sm:$0xff] (!%p505_p2)  }
   0xb   : > { %v5169_v26 = vld [vmem:[%s7174_s3 + $0x60] ss:$16 sps:$4 sm:$0xff] (!%p505_p2)   ;;  %v5174_v27 = vld [vmem:[%s7174_s3 + $0x84] ss:$16 sps:$4 sm:$0xff] (!%p505_p2)   ;;  %vm4207_vm2 = vcmask (!%p505_p2), 31744   ;;  %vm4298_vm3 = vcmask (!%p505_p2), 523264  }
   0xc   : > { %v5172_v28 = vld [vmem:[%s7174_s3 + $0x80] ss:$16 sps:$4 sm:$0xff] (!%p505_p2)   ;;  %v5177_v29 = vld [vmem:[%s7174_s3 + $0xa4] ss:$16 sps:$4 sm:$0xff] (!%p505_p2)   ;;  %vm4429_vm4 = vcmask (!%p505_p2), 7168  }
   0xd   : > { %v5134_v1 = vld [vmem:[%s7194_s0 + $0x4] ss:$8 sps:$4 sm:$0xff] (!%p505_p2)   ;;  %v5136_v2 = vld [vmem:[%s7194_s0] ss:$8 sps:$4 sm:$0xff] (!%p505_p2)   ;;  %v5137_v4 = vld [vmem:[%s7194_s0 + $0x14] ss:$8 sps:$4 sm:$0xff] (!%p505_p2)  }
   0xe   : > { %709 = vmatprep.subr.bf16.mxu0 (!%p505_p2), %v5134_v1  ;;  %v5139_v5 = vld [vmem:[%s7194_s0 + $0x10] ss:$8 sps:$4 sm:$0xff] (!%p505_p2)   ;;  %v5140_v6 = vld [vmem:[%s7194_s0 + $0x24] ss:$8 sps:$4 sm:$0xff] (!%p505_p2)   ;;  %v5142_v7 = vld [vmem:[%s7194_s0 + $0x20] ss:$8 sps:$4 sm:$0xff] (!%p505_p2)  }
   0xf   : > { %710 = vmatpush1.bf16.msra.mxu0 %v5136_v2  ;;  %s7198_s15 = smov (!%p568_p3, %s4541_s15), 3  ;;  %v5143_v8 = vld [vmem:[%s7194_s0 + $0x34] ss:$8 sps:$4 sm:$0xff]   ;;  %v5145_v9 = vld [vmem:[%s7194_s0 + $0x30] ss:$8 sps:$4 sm:$0xff]   ;;  %v1262_v52 = vld [vmem:[%s7176_s5] sm:$0xff] }
  0x10   : > { %711 = vmatprep.subr.bf16.mxu0 %v5137_v4  ;;  %s4542_s24 = sshll.u32 %s7198_s15, 2  ;;  %v5146_v10 = vld [vmem:[%s7194_s0 + $0x44] ss:$8 sps:$4 sm:$0xff]   ;;  %v5148_v11 = vld [vmem:[%s7194_s0 + $0x40] ss:$8 sps:$4 sm:$0xff]   ;;  %s4549_s30 = sshll.u32 %s7198_s15, 3 }
  0x11   : > { %s571_s1 = scalar_lea.vmem %s7195_s19, %s4542_s24  ;;  %s5622_s22 = scalar_lea.vmem %s7180_s9, %s4542_s24  ;;  %v5149_v12 = vld [vmem:[%s7194_s0 + $0x54] ss:$8 sps:$4 sm:$0xff]   ;;  %v5151_v13 = vld [vmem:[%s7194_s0 + $0x50] ss:$8 sps:$4 sm:$0xff]   ;;  %v5152_v14 = vld [vmem:[%s7194_s0 + $0x64] ss:$8 sps:$4 sm:$0xff]  }
  0x12   : > { %v5154_v15 = vld [vmem:[%s7194_s0 + $0x60] ss:$8 sps:$4 sm:$0xff]   ;;  %v5155_v16 = vld [vmem:[%s7194_s0 + $0x74] ss:$8 sps:$4 sm:$0xff]   ;;  %v5157_v17 = vld [vmem:[%s7194_s0 + $0x70] ss:$8 sps:$4 sm:$0xff]   ;;  %s590_s19 = scalar_lea.vmem %s7188_s17, %s4549_s30 }
  0x13   : > { %712 = vmatpush1.bf16.msra.mxu0 %v5139_v5  ;;  %v5158_v19 = vld [vmem:[%s571_s1] sm:$0xff]   ;;  %s5032_s1 = sshll.u32 %s7198_s15, 4 }
  0x14   : > { %713 = vmatprep.subr.bf16.mxu0 %v5140_v6  ;;  %v5175_v30 = vld [vmem:[%s7174_s3 + $0xa0] ss:$16 sps:$4 sm:$0xff]   ;;  %v5180_v31 = vld [vmem:[%s7174_s3 + $0xc4] ss:$16 sps:$4 sm:$0xff]  }
  0x15   : > { %v5178_v32 = vld [vmem:[%s7174_s3 + $0xc0] ss:$16 sps:$4 sm:$0xff]   ;;  %v5183_v33 = vld [vmem:[%s7174_s3 + $0xe4] ss:$16 sps:$4 sm:$0xff]  }
  0x16   : > { %v5181_v34 = vld [vmem:[%s7174_s3 + $0xe0] ss:$16 sps:$4 sm:$0xff]   ;;  %v5186_v35 = vld [vmem:[%s7174_s3 + $0x104] ss:$16 sps:$4 sm:$0xff]  }
  0x17   : > { %714 = vmatpush1.bf16.msra.mxu0 %v5142_v7  ;;  %v5184_v36 = vld [vmem:[%s7174_s3 + $0x100] ss:$16 sps:$4 sm:$0xff]   ;;  %v5189_v37 = vld [vmem:[%s7174_s3 + $0x124] ss:$16 sps:$4 sm:$0xff]  }
  0x18   : > { %715 = vmatprep.subr.bf16.mxu0 %v5143_v8  ;;  %v5187_v38 = vld [vmem:[%s7174_s3 + $0x120] ss:$16 sps:$4 sm:$0xff]   ;;  %v5192_v39 = vld [vmem:[%s7174_s3 + $0x144] ss:$16 sps:$4 sm:$0xff]  }
  0x19   : > { %v5190_v40 = vld [vmem:[%s7174_s3 + $0x140] ss:$16 sps:$4 sm:$0xff]   ;;  %v5195_v41 = vld [vmem:[%s7174_s3 + $0x164] ss:$16 sps:$4 sm:$0xff]  }
  0x1a   : > { %v5193_v42 = vld [vmem:[%s7174_s3 + $0x160] ss:$16 sps:$4 sm:$0xff]   ;;  %v5198_v43 = vld [vmem:[%s7174_s3 + $0x184] ss:$16 sps:$4 sm:$0xff]  }
  0x1b   : > { %716 = vmatpush1.bf16.msra.mxu0 %v5145_v9  ;;  %v5196_v44 = vld [vmem:[%s7174_s3 + $0x180] ss:$16 sps:$4 sm:$0xff]   ;;  %v5201_v45 = vld [vmem:[%s7174_s3 + $0x1a4] ss:$16 sps:$4 sm:$0xff]  }
  0x1c   : > { %717 = vmatprep.subr.bf16.mxu0 %v5146_v10  ;;  %v5199_v46 = vld [vmem:[%s7174_s3 + $0x1a0] ss:$16 sps:$4 sm:$0xff]   ;;  %v5204_v47 = vld [vmem:[%s7174_s3 + $0x1c4] ss:$16 sps:$4 sm:$0xff]  }
  0x1d   : > { %v5202_v48 = vld [vmem:[%s7174_s3 + $0x1c0] ss:$16 sps:$4 sm:$0xff]   ;;  %v5207_v49 = vld [vmem:[%s7174_s3 + $0x1e4] ss:$16 sps:$4 sm:$0xff]  }
  0x1e   : > { %v5205_v50 = vld [vmem:[%s7174_s3 + $0x1e0] ss:$16 sps:$4 sm:$0xff]  }
  0x1f   : > { %718 = vmatpush1.bf16.msra.mxu0 %v5148_v11  ;;  %v1266_v53 = vld [vmem:[%s7176_s5 + $0x20] sm:$0xff] }
  0x20   : > { %719 = vmatprep.subr.bf16.mxu0 %v5149_v12  ;;  %v4632_v54 = vcombine.high %v1262_v52, %v1266_v53  ;;  %v4631_v55 = vcombine.low %v1262_v52, %v1266_v53  ;;  %v1270_v56 = vld [vmem:[%s7176_s5 + $0x40] sm:$0xff] }
  0x21   : > { %v1274_v57 = vld [vmem:[%s7176_s5 + $0x60] sm:$0xff] }
  0x22   : > { %v4640_v58 = vcombine.high %v1270_v56, %v1274_v57  ;;  %2840 = vmatprep.subr.bf16.mxu1 %v4632_v54  ;;  %v4639_v59 = vcombine.low %v1270_v56, %v1274_v57  ;;  %v1278_v60 = vld [vmem:[%s7176_s5 + $0x80] sm:$0xff] }
  0x23   : > { %720 = vmatpush1.bf16.msra.mxu0 %v5151_v13  ;;  %2841 = vmatpush1.bf16.msra.mxu1 %v4631_v55  ;;  %v1282_v61 = vld [vmem:[%s7176_s5 + $0xa0] sm:$0xff] }
  0x24   : > { %721 = vmatprep.subr.bf16.mxu0 %v5152_v14  ;;  %2842 = vmatprep.subr.bf16.mxu1 %v4640_v58  ;;  %v4648_v62 = vcombine.high %v1278_v60, %v1282_v61  ;;  %v4647_v63 = vcombine.low %v1278_v60, %v1282_v61  ;;  %v1286_v0 = vld [vmem:[%s7176_s5 + $0xc0] sm:$0xff] }
  0x25   : > { %v1290_v1 = vld [vmem:[%s7176_s5 + $0xe0] sm:$0xff] }
  0x26   : > { %v4656_v2 = vcombine.high %v1286_v0, %v1290_v1  ;;  %v4655_v3 = vcombine.low %v1286_v0, %v1290_v1  ;;  %v1294_v4 = vld [vmem:[%s7176_s5 + $0x100] sm:$0xff]  ;;  %v5208_v1 = vld [vmem:[%s7174_s3 + $0x8] ss:$16 sps:$4 sm:$0xff]  }
  0x27   : > { %722 = vmatpush1.bf16.msra.mxu0 %v5154_v15  ;;  %2843 = vmatpush1.bf16.msra.mxu1 %v4639_v59  ;;  %v1298_v5 = vld [vmem:[%s7176_s5 + $0x120] sm:$0xff] }
  0x28   : > { %723 = vmatprep.subr.bf16.mxu0 %v5155_v16  ;;  %2844 = vmatprep.subr.bf16.mxu1 %v4648_v62  ;;  %v4664_v6 = vcombine.high %v1294_v4, %v1298_v5  ;;  %v4663_v7 = vcombine.low %v1294_v4, %v1298_v5  ;;  %v1302_v8 = vld [vmem:[%s7176_s5 + $0x140] sm:$0xff]  ;;  %v5216_v4 = vld [vmem:[%s7174_s3 + $0x4c] ss:$16 sps:$4 sm:$0xff]   ;;  %v5214_v5 = vld [vmem:[%s7174_s3 + $0x48] ss:$16 sps:$4 sm:$0xff]  }
  0x29   : > { %v1306_v9 = vld [vmem:[%s7176_s5 + $0x160] sm:$0xff] }
  0x2a   : > { %v4672_v10 = vcombine.high %v1302_v8, %v1306_v9  ;;  %v4671_v11 = vcombine.low %v1302_v8, %v1306_v9  ;;  %v1310_v12 = vld [vmem:[%s7176_s5 + $0x180] sm:$0xff]  ;;  %v5222_v8 = vld [vmem:[%s7174_s3 + $0x8c] ss:$16 sps:$4 sm:$0xff]   ;;  %v5220_v9 = vld [vmem:[%s7174_s3 + $0x88] ss:$16 sps:$4 sm:$0xff]  }
  0x2b   : > { %724 = vmatpush1.bf16.msra.mxu0 %v5157_v17  ;;  %2845 = vmatpush1.bf16.msra.mxu1 %v4647_v63  ;;  %v1314_v13 = vld [vmem:[%s7176_s5 + $0x1a0] sm:$0xff] }
  0x2c   : > { %1164 = vmatprep.subr.bf16.mxu0 %v5162_v18  ;;  %2846 = vmatprep.subr.bf16.mxu1 %v4656_v2  ;;  %v4680_v14 = vcombine.high %v1310_v12, %v1314_v13  ;;  %v4679_v15 = vcombine.low %v1310_v12, %v1314_v13  ;;  %v1318_v16 = vld [vmem:[%s7176_s5 + $0x1c0] sm:$0xff]  ;;  %v5213_v2 = vld [vmem:[%s7174_s3 + $0x2c] ss:$16 sps:$4 sm:$0xff]   ;;  %v5226_v13 = vld [vmem:[%s7174_s3 + $0xc8] ss:$16 sps:$4 sm:$0xff]  }
  0x2d   : > { %v1322_v17 = vld [vmem:[%s7176_s5 + $0x1e0] sm:$0xff]  ;;  %v5228_v12 = vld [vmem:[%s7174_s3 + $0xcc] ss:$16 sps:$4 sm:$0xff]  }
  0x2e   : > { %742 = vmatmul.mubr.bf16.vlgmr.msra.gmra.mrb[0].mxu0 %v5158_v19  ;;  %v4688_v18 = vcombine.high %v1318_v16, %v1322_v17  ;;  %v4687_v19 = vcombine.low %v1318_v16, %v1322_v17  ;;  %v5234_v16 = vld [vmem:[%s7174_s3 + $0x10c] ss:$16 sps:$4 sm:$0xff]   ;;  %v5232_v17 = vld [vmem:[%s7174_s3 + $0x108] ss:$16 sps:$4 sm:$0xff]  }
  0x2f   : > { %1165 = vmatpush1.bf16.msra.mxu0 %v5160_v20  ;;  %2847 = vmatpush1.bf16.msra.mxu1 %v4655_v3  ;;  %v1326_v20 = vld [vmem:[%s7176_s5 + $0x200] sm:$0xff]  ;;  %v5211_v3 = vld [vmem:[%s7174_s3 + $0x28] ss:$16 sps:$4 sm:$0xff]  }
  0x30   : > { %1166 = vmatprep.subr.bf16.mxu0 %v5165_v21  ;;  %2848 = vmatprep.subr.bf16.mxu1 %v4664_v6  ;;  %v1330_v21 = vld [vmem:[%s7176_s5 + $0x220] sm:$0xff]  ;;  %v5219_v6 = vld [vmem:[%s7174_s3 + $0x6c] ss:$16 sps:$4 sm:$0xff]  }
  0x33   : > { %1167 = vmatpush1.bf16.msra.mxu0 %v5163_v22  ;;  %2849 = vmatpush1.bf16.msra.mxu1 %v4663_v7  ;;  %v4696_v22 = vcombine.high %v1326_v20, %v1330_v21  ;;  %v5217_v7 = vld [vmem:[%s7174_s3 + $0x68] ss:$16 sps:$4 sm:$0xff]  }
  0x34   : > { %1168 = vmatprep.subr.bf16.mxu0 %v5168_v23  ;;  %2850 = vmatprep.subr.bf16.mxu1 %v4672_v10  ;;  %v4695_v23 = vcombine.low %v1326_v20, %v1330_v21  ;;  %v5225_v10 = vld [vmem:[%s7174_s3 + $0xac] ss:$16 sps:$4 sm:$0xff]   ;;  %v5238_v21 = vld [vmem:[%s7174_s3 + $0x148] ss:$16 sps:$4 sm:$0xff]  }
  0x35   : > { %v5240_v20 = vld [vmem:[%s7174_s3 + $0x14c] ss:$16 sps:$4 sm:$0xff]  }
  0x37   : > { %1169 = vmatpush1.bf16.msra.mxu0 %v5166_v24  ;;  %2851 = vmatpush1.bf16.msra.mxu1 %v4671_v11  ;;  %v1334_v24 = vld [vmem:[%s7176_s5 + $0x240] sm:$0xff]  ;;  %v5223_v11 = vld [vmem:[%s7174_s3 + $0xa8] ss:$16 sps:$4 sm:$0xff]  }
  0x38   : > { %1170 = vmatprep.subr.bf16.mxu0 %v5171_v25  ;;  %2852 = vmatprep.subr.bf16.mxu1 %v4680_v14  ;;  %v1338_v25 = vld [vmem:[%s7176_s5 + $0x260] sm:$0xff]  ;;  %v5231_v14 = vld [vmem:[%s7174_s3 + $0xec] ss:$16 sps:$4 sm:$0xff]  }
  0x3b   : > { %1171 = vmatpush1.bf16.msra.mxu0 %v5169_v26  ;;  %2853 = vmatpush1.bf16.msra.mxu1 %v4679_v15  ;;  %v4704_v26 = vcombine.high %v1334_v24, %v1338_v25  ;;  %v5229_v15 = vld [vmem:[%s7174_s3 + $0xe8] ss:$16 sps:$4 sm:$0xff]  }
  0x3c   : > { %1172 = vmatprep.subr.bf16.mxu0 %v5174_v27  ;;  %2854 = vmatprep.subr.bf16.mxu1 %v4688_v18  ;;  %v4703_v27 = vcombine.low %v1334_v24, %v1338_v25  ;;  %v5237_v18 = vld [vmem:[%s7174_s3 + $0x12c] ss:$16 sps:$4 sm:$0xff]   ;;  %v5244_v25 = vld [vmem:[%s7174_s3 + $0x188] ss:$16 sps:$4 sm:$0xff]  }
  0x3d   : > { %v5246_v24 = vld [vmem:[%s7174_s3 + $0x18c] ss:$16 sps:$4 sm:$0xff]  }
  0x3f   : > { %1173 = vmatpush1.bf16.msra.mxu0 %v5172_v28  ;;  %2855 = vmatpush1.bf16.msra.mxu1 %v4687_v19  ;;  %v1342_v28 = vld [vmem:[%s7176_s5 + $0x280] sm:$0xff]  ;;  %v5235_v19 = vld [vmem:[%s7174_s3 + $0x128] ss:$16 sps:$4 sm:$0xff]  }
  0x40   : > { %1174 = vmatprep.subr.bf16.mxu0 %v5177_v29  ;;  %2856 = vmatprep.subr.bf16.mxu1 %v4696_v22  ;;  %v1346_v29 = vld [vmem:[%s7176_s5 + $0x2a0] sm:$0xff]  ;;  %v5243_v22 = vld [vmem:[%s7174_s3 + $0x16c] ss:$16 sps:$4 sm:$0xff]  }
  0x43   : > { %1175 = vmatpush1.bf16.msra.mxu0 %v5175_v30  ;;  %2857 = vmatpush1.bf16.msra.mxu1 %v4695_v23  ;;  %v613_v30 = vlaneseq  ;;  %v5241_v23 = vld [vmem:[%s7174_s3 + $0x168] ss:$16 sps:$4 sm:$0xff]  }
  0x44   : > { %1176 = vmatprep.subr.bf16.mxu0 %v5180_v31  ;;  %2858 = vmatprep.subr.bf16.mxu1 %v4704_v26  ;;  %v4712_v31 = vcombine.high %v1342_v28, %v1346_v29  ;;  %v5249_v26 = vld [vmem:[%s7174_s3 + $0x1ac] ss:$16 sps:$4 sm:$0xff]  }
  0x47   : > { %1177 = vmatpush1.bf16.msra.mxu0 %v5178_v32  ;;  %2859 = vmatpush1.bf16.msra.mxu1 %v4703_v27  ;;  %v4711_v32 = vcombine.low %v1342_v28, %v1346_v29  ;;  %v5247_v27 = vld [vmem:[%s7174_s3 + $0x1a8] ss:$16 sps:$4 sm:$0xff]   ;;  %v5252_v28 = vld [vmem:[%s7174_s3 + $0x1cc] ss:$16 sps:$4 sm:$0xff]  }
  0x48   : > { %1178 = vmatprep.subr.bf16.mxu0 %v5183_v33  ;;  %2860 = vmatprep.subr.bf16.mxu1 %v4712_v31  ;;  %v1350_v33 = vld [vmem:[%s7176_s5 + $0x2c0] sm:$0xff]  ;;  %v5250_v29 = vld [vmem:[%s7174_s3 + $0x1c8] ss:$16 sps:$4 sm:$0xff]  }
  0x49   : > { %v1263_v31 = vld [vmem:[%s7176_s5 + $0x8] sm:$0xff] }
  0x4b   : > { %1179 = vmatpush1.bf16.msra.mxu0 %v5181_v34  ;;  %v1354_v34 = vld [vmem:[%s7176_s5 + $0x2e0] sm:$0xff]  ;;  %2861 = vmatpush1.bf16.msra.mxu1 %v4711_v32  ;;  %v1267_v32 = vld [vmem:[%s7176_s5 + $0x28] sm:$0xff] }
  0x4c   : > { %1180 = vmatprep.subr.bf16.mxu0 %v5186_v35  ;;  %v5822_v35 = vshrl.u32 %v613_v30, 7  ;;  %v5255_v30 = vld [vmem:[%s7174_s3 + $0x1ec] ss:$16 sps:$4 sm:$0xff]  }
  0x4f   : > { %1181 = vmatpush1.bf16.msra.mxu0 %v5184_v36  ;;  %v4720_v36 = vcombine.high %v1350_v33, %v1354_v34 }
  0x50   : > { %1182 = vmatprep.subr.bf16.mxu0 %v5189_v37  ;;  %v4719_v37 = vcombine.low %v1350_v33, %v1354_v34  ;;  %v5253_v33 = vld [vmem:[%s7174_s3 + $0x1e8] ss:$16 sps:$4 sm:$0xff]   ;;  %v4634_v34 = vcombine.high %v1263_v31, %v1267_v32 }
  0x51   : > { %2862 = vmatprep.subr.bf16.mxu1 %v4720_v36  ;;  %v1271_v36 = vld [vmem:[%s7176_s5 + $0x48] sm:$0xff] }
  0x52   : > { %2863 = vmatpush1.bf16.msra.mxu1 %v4719_v37  ;;  %v1275_v37 = vld [vmem:[%s7176_s5 + $0x68] sm:$0xff] }
  0x53   : > { %1183 = vmatpush1.bf16.msra.mxu0 %v5187_v38  ;;  %v1358_v38 = vld [vmem:[%s7176_s5 + $0x300] sm:$0xff] }
  0x54   : > { %1184 = vmatprep.subr.bf16.mxu0 %v5192_v39  ;;  %v1362_v39 = vld [vmem:[%s7176_s5 + $0x320] sm:$0xff] }
  0x57   : > { %1185 = vmatpush1.bf16.msra.mxu0 %v5190_v40  ;;  %v5831_v40 = vsub.s32 0, %v5822_v35 }
  0x58   : > { %1186 = vmatprep.subr.bf16.mxu0 %v5195_v41  ;;  %v4728_v41 = vcombine.high %v1358_v38, %v1362_v39 }
  0x5a   : > { %2864 = vmatprep.subr.bf16.mxu1 %v4728_v41  ;;  %v1279_v41 = vld [vmem:[%s7176_s5 + $0x88] sm:$0xff] }
  0x5b   : > { %1187 = vmatpush1.bf16.msra.mxu0 %v5193_v42  ;;  %v611_v42 = vld [vmem:[%s7173_s2] sm:$0x3] }
  0x5c   : > { %1188 = vmatprep.subr.bf16.mxu0 %v5198_v43  ;;  %v5837_v43 = vsub.s32 1, %v5822_v35 }
  0x5f   : > { %1189 = vmatpush1.bf16.msra.mxu0 %v5196_v44  ;;  %v4727_v44 = vcombine.low %v1358_v38, %v1362_v39  ;;  %v4633_v38 = vcombine.low %v1263_v31, %v1267_v32  ;;  %v4642_v39 = vcombine.high %v1271_v36, %v1275_v37 }
  0x60   : > { %1190 = vmatprep.subr.bf16.mxu0 %v5201_v45  ;;  %v1366_v45 = vld [vmem:[%s7176_s5 + $0x340] sm:$0xff] }
  0x61   : > { %2865 = vmatpush1.bf16.msra.mxu1 %v4727_v44  ;;  %v4641_v44 = vcombine.low %v1271_v36, %v1275_v37 }
  0x63   : > { %1191 = vmatpush1.bf16.msra.mxu0 %v5199_v46  ;;  %v1370_v46 = vld [vmem:[%s7176_s5 + $0x360] sm:$0xff] }
  0x64   : > { %1192 = vmatprep.subr.bf16.mxu0 %v5204_v47  ;;  %v616_v47 = vrot.slane %v611_v42, %v5831_v40 }
  0x67   : > { %1193 = vmatpush1.bf16.msra.mxu0 %v5202_v48  ;;  %v4736_v48 = vcombine.high %v1366_v45, %v1370_v46 }
  0x68   : > { %1194 = vmatprep.subr.bf16.mxu0 %v5207_v49  ;;  %v620_v49 = vrot.slane %v611_v42, %v5837_v43  ;;  %v1283_v42 = vld [vmem:[%s7176_s5 + $0xa8] sm:$0xff] }
  0x69   : > { %2866 = vmatprep.subr.bf16.mxu1 %v4736_v48  ;;  %v4649_v48 = vcombine.low %v1279_v41, %v1283_v42 }
  0x6b   : > { %1195 = vmatpush1.bf16.msra.mxu0 %v5205_v50  ;;  %v4735_v50 = vcombine.low %v1366_v45, %v1370_v46  ;;  %v4650_v45 = vcombine.high %v1279_v41, %v1283_v42  ;;  %v1287_v46 = vld [vmem:[%s7176_s5 + $0xc8] sm:$0xff] }
  0x6c   : > { %1207 = vmatprep.subr.bf16.mxu0 %v5210_v51 }
  0x6d   : > { %2867 = vmatpush1.bf16.msra.mxu1 %v4735_v50  ;;  %v1295_v50 = vld [vmem:[%s7176_s5 + $0x108] sm:$0xff] }
 0x101   : > { %v743_v51 = vpop.f32.mrb[0].mxu0 }
 0x102   : > { %v744_v52 = vadd.f32 %v743_v51, %v616_v47  ;;  %v745_v53 = vpop.f32.mrb[1].mxu0  ;;  %v1299_v51 = vld [vmem:[%s7176_s5 + $0x128] sm:$0xff] }
 0x103   : > { %v746_v54 = vadd.f32 %v745_v53, %v620_v49  ;;  %v747_v55 = vpop.f32.mrb[2].mxu0  ;;  %v4666_v53 = vcombine.high %v1295_v50, %v1299_v51 }
 0x104   : > { %v748_v56 = vadd.f32 %v747_v55, %v616_v47  ;;  %v749_v57 = vpop.f32.mrb[3].mxu0  ;;  %v752_v59 = vmax.f32 %v744_v52, 0.0  ;;  %v1291_v47 = vld [vmem:[%s7176_s5 + $0xe8] sm:$0xff] }
 0x105   : > { %v750_v58 = vadd.f32 %v749_v57, %v620_v49  ;;  %v753_v61 = vmax.f32 %v746_v54, 0.0  ;;  %v4658_v49 = vcombine.high %v1287_v46, %v1291_v47  ;;  %v4657_v52 = vcombine.low %v1287_v46, %v1291_v47  ;;  %v1303_v54 = vld [vmem:[%s7176_s5 + $0x148] sm:$0xff] }
 0x106   : > { %v754_v60 = vmax.f32 %v748_v56, 0.0  ;;  %v1307_v55 = vld [vmem:[%s7176_s5 + $0x168] sm:$0xff]  ;;  %v4665_v56 = vcombine.low %v1295_v50, %v1299_v51 }
 0x107   : > { %v755_v62 = vmax.f32 %v750_v58, 0.0  ;;  %v4674_v57 = vcombine.high %v1303_v54, %v1307_v55  ;;  %v1311_v58 = vld [vmem:[%s7176_s5 + $0x188] sm:$0xff] }
 0x108   : > { %v5847_v63 = vpack.c.bf16 %v754_v60, %v752_v59  ;;  %v1315_v59 = vld [vmem:[%s7176_s5 + $0x1a8] sm:$0xff]  ;;  %v4673_v60 = vcombine.low %v1303_v54, %v1307_v55  ;;  %v6083_v54 = vld [vmem:[%s7175_s4] sm:$0xf] }
 0x109   : > { %v757_v0 = vpack.c.bf16 %v755_v62, %v753_v61  ;;  %v4682_v61 = vcombine.high %v1311_v58, %v1315_v59  ;;  %v1319_v62 = vld [vmem:[%s7176_s5 + $0x1c8] sm:$0xff]  ;;  %v827_v55 = vrot.slane %v6083_v54, %v5831_v40 }
 0x10b   : > { %1196 = vmatprep.mubr.bf16.mxu0 %v757_v0 }
 0x10c   : > { %1197 = vmatmul.mubr.bf16.vlgmr.msra.gmra.mrb[4].mxu0 %v5847_v63 }
 0x10d   : > { %1208 = vmatpush1.bf16.msra.mxu0 %v5208_v1  ;;  %1239 = vmatprep.mubr.bf16.mxu0 %v757_v0  ;;  %v1374_v0 = vld [vmem:[%s7176_s5 + $0x380] sm:$0xff] }
 0x10e   : > { %1209 = vmatprep.subr.bf16.mxu0 %v5213_v2  ;;  %v1378_v1 = vld [vmem:[%s7176_s5 + $0x3a0] sm:$0xff] }
 0x10f   : > { %v4744_v2 = vcombine.high %v1374_v0, %v1378_v1 }
 0x111   : > { %1210 = vmatpush1.bf16.msra.mxu0 %v5211_v3  ;;  %v4681_v3 = vcombine.low %v1311_v58, %v1315_v59  ;;  %2868 = vmatprep.subr.bf16.mxu1 %v4744_v2 }
 0x112   : > { %1211 = vmatprep.subr.bf16.mxu0 %v5216_v4  ;;  %v4743_v4 = vcombine.low %v1374_v0, %v1378_v1 }
 0x114   : > { %2869 = vmatpush1.bf16.msra.mxu1 %v4743_v4 }
 0x115   : > { %1212 = vmatpush1.bf16.msra.mxu0 %v5214_v5 }
 0x116   : > { %1213 = vmatprep.subr.bf16.mxu0 %v5219_v6  ;;  %v1327_v6 = vld [vmem:[%s7176_s5 + $0x208] sm:$0xff] }
 0x119   : > { %1214 = vmatpush1.bf16.msra.mxu0 %v5217_v7  ;;  %v1331_v7 = vld [vmem:[%s7176_s5 + $0x228] sm:$0xff] }
 0x11a   : > { %1215 = vmatprep.subr.bf16.mxu0 %v5222_v8  ;;  %v1382_v8 = vld [vmem:[%s7176_s5 + $0x3c0] sm:$0xff] }
 0x11d   : > { %1216 = vmatpush1.bf16.msra.mxu0 %v5220_v9  ;;  %v1386_v9 = vld [vmem:[%s7176_s5 + $0x3e0] sm:$0xff] }
 0x11e   : > { %1217 = vmatprep.subr.bf16.mxu0 %v5225_v10  ;;  %v4752_v10 = vcombine.high %v1382_v8, %v1386_v9 }
 0x120   : > { %2870 = vmatprep.subr.bf16.mxu1 %v4752_v10 }
 0x121   : > { %1218 = vmatpush1.bf16.msra.mxu0 %v5223_v11 }
 0x122   : > { %1219 = vmatprep.subr.bf16.mxu0 %v5228_v12  ;;  %v4751_v12 = vcombine.low %v1382_v8, %v1386_v9  ;;  %v1403_v8 = vld [vmem:[%s7176_s5 + $0x468] sm:$0xff] }
 0x124   : > { %2871 = vmatpush1.bf16.msra.mxu1 %v4751_v12 }
 0x125   : > { %1220 = vmatpush1.bf16.msra.mxu0 %v5226_v13  ;;  %v4698_v13 = vcombine.high %v1327_v6, %v1331_v7 }
 0x126   : > { %1221 = vmatprep.subr.bf16.mxu0 %v5231_v14  ;;  %v1335_v14 = vld [vmem:[%s7176_s5 + $0x248] sm:$0xff] }
 0x129   : > { %1222 = vmatpush1.bf16.msra.mxu0 %v5229_v15  ;;  %v1339_v15 = vld [vmem:[%s7176_s5 + $0x268] sm:$0xff] }
 0x12a   : > { %1223 = vmatprep.subr.bf16.mxu0 %v5234_v16  ;;  %v6019_v16 = vld [vmem:[%s7176_s5 + $0x400] sm:$0xff] }
 0x12d   : > { %1224 = vmatpush1.bf16.msra.mxu0 %v5232_v17  ;;  %v6024_v17 = vld [vmem:[%s7176_s5 + $0x420] sm:$0xff] }
 0x12e   : > { %1225 = vmatprep.subr.bf16.mxu0 %v5237_v18  ;;  %v6029_v18 = vld [vmem:[%s7176_s5 + $0x408] sm:$0xff] }
 0x131   : > { %1226 = vmatpush1.bf16.msra.mxu0 %v5235_v19  ;;  %v4760_v19 = vcombine.high %v6019_v16, %v6024_v17 }
 0x132   : > { %1227 = vmatprep.subr.bf16.mxu0 %v5240_v20  ;;  %v6036_v20 = vld [vmem:[%s7176_s5 + $0x428] sm:$0xff] }
 0x133   : > { %2883 = vmatprep.subr.bf16.mxu1 %v4760_v19  ;;  %v1411_v19 = vld [vmem:[%s7176_s5 + $0x4a8] sm:$0xff] }
 0x135   : > { %1228 = vmatpush1.bf16.msra.mxu0 %v5238_v21  ;;  %v4697_v21 = vcombine.low %v1327_v6, %v1331_v7  ;;  %v1402_v6 = vld [vmem:[%s7176_s5 + $0x460] sm:$0xff]  ;;  %v1399_v7 = vld [vmem:[%s7176_s5 + $0x448] sm:$0xff] }
 0x136   : > { %1229 = vmatprep.subr.bf16.mxu0 %v5243_v22  ;;  %v4759_v22 = vcombine.low %v6019_v16, %v6024_v17  ;;  %v4770_v12 = vcombine.high %v1399_v7, %v1403_v8  ;;  %v1415_v16 = vld [vmem:[%s7176_s5 + $0x4c8] sm:$0xff] }
 0x137   : > { %v1419_v17 = vld [vmem:[%s7176_s5 + $0x4e8] sm:$0xff] }
 0x139   : > { %1230 = vmatpush1.bf16.msra.mxu0 %v5241_v23  ;;  %v4761_v23 = vcombine.low %v6029_v18, %v6036_v20 }
 0x13a   : > { %1231 = vmatprep.subr.bf16.mxu0 %v5246_v24  ;;  %v4706_v24 = vcombine.high %v1335_v14, %v1339_v15 }
 0x13d   : > { %1232 = vmatpush1.bf16.msra.mxu0 %v5244_v25  ;;  %v1343_v25 = vld [vmem:[%s7176_s5 + $0x288] sm:$0xff] }
 0x13e   : > { %1233 = vmatprep.subr.bf16.mxu0 %v5249_v26  ;;  %v1347_v26 = vld [vmem:[%s7176_s5 + $0x2a8] sm:$0xff] }
 0x13f   : > { %v4713_v31 = vcombine.low %v1343_v25, %v1347_v26 }
 0x141   : > { %1234 = vmatpush1.bf16.msra.mxu0 %v5247_v27  ;;  %v4705_v27 = vcombine.low %v1335_v14, %v1339_v15  ;;  %v1410_v14 = vld [vmem:[%s7176_s5 + $0x4a0] sm:$0xff]  ;;  %v1407_v15 = vld [vmem:[%s7176_s5 + $0x488] sm:$0xff] }
 0x142   : > { %1235 = vmatprep.subr.bf16.mxu0 %v5252_v28  ;;  %v4714_v28 = vcombine.high %v1343_v25, %v1347_v26  ;;  %v4778_v26 = vcombine.high %v1407_v15, %v1411_v19 }
 0x145   : > { %1236 = vmatpush1.bf16.msra.mxu0 %v5250_v29  ;;  %v1351_v29 = vld [vmem:[%s7176_s5 + $0x2c8] sm:$0xff] }
 0x146   : > { %1237 = vmatprep.subr.bf16.mxu0 %v5255_v30  ;;  %v1355_v30 = vld [vmem:[%s7176_s5 + $0x2e8] sm:$0xff] }
 0x147   : > { %v4722_v32 = vcombine.high %v1351_v29, %v1355_v30  ;;  %v4721_v36 = vcombine.low %v1351_v29, %v1355_v30  ;;  %v1422_v29 = vld [vmem:[%s7176_s5 + $0x500] sm:$0xff] }
 0x148   : > { %v1426_v30 = vld [vmem:[%s7176_s5 + $0x520] sm:$0xff] }
 0x149   : > { %1238 = vmatpush1.bf16.msra.mxu0 %v5253_v33  ;;  %v1359_v33 = vld [vmem:[%s7176_s5 + $0x308] sm:$0xff] }
 0x14a   : > { %2926 = vmatprep.subr.bf16.mxu0 %v4634_v34  ;;  %v1363_v34 = vld [vmem:[%s7176_s5 + $0x328] sm:$0xff] }
 0x14b   : > { %v4730_v37 = vcombine.high %v1359_v33, %v1363_v34  ;;  %v4729_v41 = vcombine.low %v1359_v33, %v1363_v34  ;;  %v4785_v34 = vcombine.low %v1415_v16, %v1419_v17 }
 0x14c   : > { %1240 = vmatmul.mubr.bf16.vlgmr.msra.gmra.mrb[8].mxu0 %v5847_v63  ;;  %v1323_v63 = vld [vmem:[%s7176_s5 + $0x1e8] sm:$0xff] }
 0x14d   : > { %2927 = vmatpush1.bf16.msra.mxu0 %v4633_v38  ;;  %v4690_v5 = vcombine.high %v1319_v62, %v1323_v63  ;;  %v4689_v11 = vcombine.low %v1319_v62, %v1323_v63  ;;  %v1367_v38 = vld [vmem:[%s7176_s5 + $0x348] sm:$0xff] }
 0x14e   : > { %2928 = vmatprep.subr.bf16.mxu0 %v4642_v39  ;;  %v1371_v39 = vld [vmem:[%s7176_s5 + $0x368] sm:$0xff] }
 0x14f   : > { %v4738_v42 = vcombine.high %v1367_v38, %v1371_v39  ;;  %v4737_v46 = vcombine.low %v1367_v38, %v1371_v39  ;;  %v1430_v38 = vld [vmem:[%s7176_s5 + $0x540] sm:$0xff] }
 0x150   : > { %v1434_v39 = vld [vmem:[%s7176_s5 + $0x560] sm:$0xff] }
 0x151   : > { %2929 = vmatpush1.bf16.msra.mxu0 %v4641_v44  ;;  %v1375_v44 = vld [vmem:[%s7176_s5 + $0x388] sm:$0xff] }
 0x152   : > { %2930 = vmatprep.subr.bf16.mxu0 %v4650_v45  ;;  %v1379_v45 = vld [vmem:[%s7176_s5 + $0x3a8] sm:$0xff] }
 0x153   : > { %v4746_v47 = vcombine.high %v1375_v44, %v1379_v45  ;;  %v4745_v50 = vcombine.low %v1375_v44, %v1379_v45  ;;  %v4791_v44 = vcombine.low %v1422_v29, %v1426_v30 }
 0x155   : > { %2931 = vmatpush1.bf16.msra.mxu0 %v4649_v48  ;;  %v1383_v48 = vld [vmem:[%s7176_s5 + $0x3c8] sm:$0xff] }
 0x156   : > { %2932 = vmatprep.subr.bf16.mxu0 %v4658_v49  ;;  %v1387_v49 = vld [vmem:[%s7176_s5 + $0x3e8] sm:$0xff] }
 0x157   : > { %v4754_v51 = vcombine.high %v1383_v48, %v1387_v49 }
 0x159   : > { %2933 = vmatpush1.bf16.msra.mxu0 %v4657_v52  ;;  %v4753_v52 = vcombine.low %v1383_v48, %v1387_v49  ;;  %v1438_v48 = vld [vmem:[%s7176_s5 + $0x580] sm:$0xff] }
 0x15a   : > { %2934 = vmatprep.subr.bf16.mxu0 %v4666_v53  ;;  %v4762_v53 = vcombine.high %v6029_v18, %v6036_v20  ;;  %v4777_v20 = vcombine.low %v1407_v15, %v1411_v19  ;;  %v1442_v49 = vld [vmem:[%s7176_s5 + $0x5a0] sm:$0xff] }
 0x15d   : > { %2935 = vmatpush1.bf16.msra.mxu0 %v4665_v56  ;;  %v831_v56 = vrot.slane %v6083_v54, %v5837_v43 }
 0x15e   : > { %2936 = vmatprep.subr.bf16.mxu0 %v4674_v57 }
 0x161   : > { %2937 = vmatpush1.bf16.msra.mxu0 %v4673_v60 }
 0x162   : > { %2938 = vmatprep.subr.bf16.mxu0 %v4682_v61 }
 0x165   : > { %2939 = vmatpush1.bf16.msra.mxu0 %v4681_v3  ;;  %v1398_v3 = vld [vmem:[%s7176_s5 + $0x440] sm:$0xff] }
 0x166   : > { %2940 = vmatprep.subr.bf16.mxu0 %v4690_v5 }
 0x169   : > { %2941 = vmatpush1.bf16.msra.mxu0 %v4689_v11  ;;  %v4768_v11 = vcombine.high %v1398_v3, %v1402_v6 }
 0x16a   : > { %2942 = vmatprep.subr.bf16.mxu0 %v4698_v13  ;;  %v1406_v13 = vld [vmem:[%s7176_s5 + $0x480] sm:$0xff] }
 0x16b   : > { %v4776_v25 = vcombine.high %v1406_v13, %v1410_v14  ;;  %v4775_v18 = vcombine.low %v1406_v13, %v1410_v14  ;;  %v1463_v13 = vld [vmem:[%s7176_s5 + $0x648] sm:$0xff] }
 0x16c   : > { %v1467_v14 = vld [vmem:[%s7176_s5 + $0x668] sm:$0xff] }
 0x16d   : > { %2943 = vmatpush1.bf16.msra.mxu0 %v4697_v21  ;;  %v4767_v21 = vcombine.low %v1398_v3, %v1402_v6  ;;  %v1455_v3 = vld [vmem:[%s7176_s5 + $0x608] sm:$0xff] }
 0x16e   : > { %2944 = vmatprep.subr.bf16.mxu0 %v4706_v24  ;;  %v4769_v24 = vcombine.low %v1399_v7, %v1403_v8 }
 0x171   : > { %2945 = vmatpush1.bf16.msra.mxu0 %v4705_v27  ;;  %v1414_v27 = vld [vmem:[%s7176_s5 + $0x4c0] sm:$0xff] }
 0x172   : > { %2946 = vmatprep.subr.bf16.mxu0 %v4714_v28  ;;  %v1418_v28 = vld [vmem:[%s7176_s5 + $0x4e0] sm:$0xff] }
 0x173   : > { %v4783_v33 = vcombine.low %v1414_v27, %v1418_v28 }
 0x175   : > { %2947 = vmatpush1.bf16.msra.mxu0 %v4713_v31  ;;  %v1423_v31 = vld [vmem:[%s7176_s5 + $0x508] sm:$0xff] }
 0x176   : > { %2948 = vmatprep.subr.bf16.mxu0 %v4722_v32  ;;  %v1427_v32 = vld [vmem:[%s7176_s5 + $0x528] sm:$0xff] }
 0x177   : > { %v4793_v45 = vcombine.low %v1423_v31, %v1427_v32 }
 0x179   : > { %2949 = vmatpush1.bf16.msra.mxu0 %v4721_v36  ;;  %v4792_v36 = vcombine.high %v1422_v29, %v1426_v30  ;;  %v1479_v29 = vld [vmem:[%s7176_s5 + $0x6c8] sm:$0xff] }
 0x17a   : > { %2950 = vmatprep.subr.bf16.mxu0 %v4730_v37  ;;  %v4794_v37 = vcombine.high %v1423_v31, %v1427_v32  ;;  %v1483_v30 = vld [vmem:[%s7176_s5 + $0x6e8] sm:$0xff] }
 0x17d   : > { %2951 = vmatpush1.bf16.msra.mxu0 %v4729_v41  ;;  %v1431_v41 = vld [vmem:[%s7176_s5 + $0x548] sm:$0xff] }
 0x17e   : > { %2952 = vmatprep.subr.bf16.mxu0 %v4738_v42  ;;  %v1435_v42 = vld [vmem:[%s7176_s5 + $0x568] sm:$0xff] }
 0x181   : > { %2953 = vmatpush1.bf16.msra.mxu0 %v4737_v46  ;;  %v4800_v46 = vcombine.high %v1430_v38, %v1434_v39 }
 0x182   : > { %2954 = vmatprep.subr.bf16.mxu0 %v4746_v47  ;;  %v4802_v47 = vcombine.high %v1431_v41, %v1435_v42 }
 0x185   : > { %2955 = vmatpush1.bf16.msra.mxu0 %v4745_v50  ;;  %v1439_v50 = vld [vmem:[%s7176_s5 + $0x588] sm:$0xff] }
 0x186   : > { %2956 = vmatprep.subr.bf16.mxu0 %v4754_v51  ;;  %v1443_v51 = vld [vmem:[%s7176_s5 + $0x5a8] sm:$0xff] }
 0x189   : > { %2957 = vmatpush1.bf16.msra.mxu0 %v4753_v52  ;;  %v4799_v52 = vcombine.low %v1430_v38, %v1434_v39  ;;  %v1487_v38 = vld [vmem:[%s7176_s5 + $0x708] sm:$0xff] }
 0x18a   : > { %2969 = vmatprep.subr.bf16.mxu0 %v4762_v53  ;;  %v4801_v53 = vcombine.low %v1431_v41, %v1435_v42  ;;  %v1491_v39 = vld [vmem:[%s7176_s5 + $0x728] sm:$0xff]  ;;  %v4849_v42 = vcombine.low %v1479_v29, %v1483_v30 }
 0x1df   : > { %v1198_v57 = vpop.f32.mrb[4].mxu0 }
 0x1e0   : > { %v1199_v58 = vadd.f32 %v1198_v57, %v827_v55  ;;  %v1200_v59 = vpop.f32.mrb[5].mxu0  ;;  %v1446_v57 = vld [vmem:[%s7176_s5 + $0x5c0] sm:$0xff] }
 0x1e1   : > { %v1201_v60 = vadd.f32 %v1200_v59, %v831_v56  ;;  %v1202_v61 = vpop.f32.mrb[6].mxu0  ;;  %v1447_v59 = vld [vmem:[%s7176_s5 + $0x5c8] sm:$0xff] }
 0x1e2   : > { %v1203_v62 = vadd.f32 %v1202_v61, %v827_v55  ;;  %v1204_v63 = vpop.f32.mrb[7].mxu0  ;;  %v1250_v1 = vmax.f32 %v1199_v58, 0.0  ;;  %v4808_v55 = vcombine.high %v1438_v48, %v1442_v49  ;;  %v1450_v58 = vld [vmem:[%s7176_s5 + $0x5e0] sm:$0xff]  ;;  %v4807_v61 = vcombine.low %v1438_v48, %v1442_v49  ;;  %v1495_v48 = vld [vmem:[%s7176_s5 + $0x748] sm:$0xff] }
 0x1e3   : > { %v1205_v0 = vadd.f32 %v1204_v63, %v831_v56  ;;  %v1251_v4 = vmax.f32 %v1201_v60, 0.0  ;;  %v4810_v56 = vcombine.high %v1439_v50, %v1443_v51  ;;  %v1451_v60 = vld [vmem:[%s7176_s5 + $0x5e8] sm:$0xff]  ;;  %v4816_v63 = vcombine.high %v1446_v57, %v1450_v58 }
 0x1e4   : > { %v1254_v2 = vmax.f32 %v1203_v62, 0.0  ;;  %v4809_v62 = vcombine.low %v1439_v50, %v1443_v51  ;;  %v4817_v6 = vcombine.low %v1447_v59, %v1451_v60  ;;  %v1499_v49 = vld [vmem:[%s7176_s5 + $0x768] sm:$0xff]  ;;  %v4857_v51 = vcombine.low %v1487_v38, %v1491_v39 }
 0x1e5   : > { %v1255_v5 = vmax.f32 %v1205_v0, 0.0  ;;  %v4818_v0 = vcombine.high %v1447_v59, %v1451_v60  ;;  %v1503_v59 = vld [vmem:[%s7176_s5 + $0x788] sm:$0xff] }
 0x1e6   : > { %v6101_v9 = vpack.c.bf16 %v1254_v2, %v1250_v1  ;;  %v1454_v1 = vld [vmem:[%s7176_s5 + $0x600] sm:$0xff]  ;;  %v1507_v60 = vld [vmem:[%s7176_s5 + $0x7a8] sm:$0xff] }
 0x1e7   : > { %v6103_v10 = vpack.c.bf16 %v1255_v5, %v1251_v4  ;;  %v1458_v2 = vld [vmem:[%s7176_s5 + $0x620] sm:$0xff]  ;;  %v1459_v4 = vld [vmem:[%s7176_s5 + $0x628] sm:$0xff]  ;;  %v4815_v5 = vcombine.low %v1446_v57, %v1450_v58  ;;  %v838_v57 = vsub.s32 3, %v5822_v35 }
 0x1e8   : > { %v4824_v7 = vcombine.high %v1454_v1, %v1458_v2  ;;  %v4826_v8 = vcombine.high %v1455_v3, %v1459_v4  ;;  %v4823_v15 = vcombine.low %v1454_v1, %v1458_v2  ;;  %v4825_v19 = vcombine.low %v1455_v3, %v1459_v4  ;;  %v1506_v58 = vld [vmem:[%s7176_s5 + $0x7a0] sm:$0xff] }
 0x1e9   : > { %2872 = vmatprep.mubr.bf16.mxu1 %v6103_v10  ;;  %2958 = vmatprep.mubr.bf16.mxu0 %v6103_v10  ;;  %v4874_v1 = vcombine.high %v1503_v59, %v1507_v60  ;;  %v1510_v2 = vld [vmem:[%s7176_s5 + $0x7c0] sm:$0xff]  ;;  %v839_v3 = vrot.slane %v6083_v54, %v838_v57 }
 0x1ea   : > { %2873 = vmatmul.mubr.bf16.vlgmr.msra.gmra.mrb[0].mxu1 %v6101_v9  ;;  %2959 = vmatmul.mubr.bf16.vlgmr.msra.gmra.mrb[12].mxu0 %v6101_v9  ;;  %v1514_v4 = vld [vmem:[%s7176_s5 + $0x7e0] sm:$0xff] }
 0x1eb   : > { %2884 = vmatpush1.bf16.msra.mxu1 %v4759_v22  ;;  %2970 = vmatpush1.bf16.msra.mxu0 %v4761_v23  ;;  %v4784_v22 = vcombine.high %v1414_v27, %v1418_v28  ;;  %v4786_v23 = vcombine.high %v1415_v16, %v1419_v17  ;;  %v1471_v27 = vld [vmem:[%s7176_s5 + $0x688] sm:$0xff]  ;;  %v4833_v17 = vcombine.low %v1463_v13, %v1467_v14 }
 0x1ec   : > { %2885 = vmatprep.subr.bf16.mxu1 %v4768_v11  ;;  %2971 = vmatprep.subr.bf16.mxu0 %v4770_v12  ;;  %v1462_v11 = vld [vmem:[%s7176_s5 + $0x640] sm:$0xff]  ;;  %v1475_v28 = vld [vmem:[%s7176_s5 + $0x6a8] sm:$0xff] }
 0x1ed   : > { %v1466_v12 = vld [vmem:[%s7176_s5 + $0x660] sm:$0xff]  ;;  %v4841_v32 = vcombine.low %v1471_v27, %v1475_v28 }
 0x1ee   : > { %v4831_v16 = vcombine.low %v1462_v11, %v1466_v12 }
 0x1ef   : > { %2886 = vmatpush1.bf16.msra.mxu1 %v4767_v21  ;;  %2972 = vmatpush1.bf16.msra.mxu0 %v4769_v24  ;;  %v4832_v21 = vcombine.high %v1462_v11, %v1466_v12  ;;  %v4834_v24 = vcombine.high %v1463_v13, %v1467_v14  ;;  %v4873_v11 = vcombine.low %v1503_v59, %v1507_v60 }
 0x1f0   : > { %2887 = vmatprep.subr.bf16.mxu1 %v4776_v25  ;;  %2973 = vmatprep.subr.bf16.mxu0 %v4778_v26  ;;  %v1470_v25 = vld [vmem:[%s7176_s5 + $0x680] sm:$0xff] }
 0x1f1   : > { %v1474_v26 = vld [vmem:[%s7176_s5 + $0x6a0] sm:$0xff] }
 0x1f2   : > { %v4839_v31 = vcombine.low %v1470_v25, %v1474_v26 }
 0x1f3   : > { %2888 = vmatpush1.bf16.msra.mxu1 %v4775_v18  ;;  %2974 = vmatpush1.bf16.msra.mxu0 %v4777_v20  ;;  %v4840_v18 = vcombine.high %v1470_v25, %v1474_v26  ;;  %v4842_v20 = vcombine.high %v1471_v27, %v1475_v28  ;;  %v1265_v25 = vld [vmem:[%s7176_s5 + $0x18] sm:$0xff] }
 0x1f4   : > { %2889 = vmatprep.subr.bf16.mxu1 %v4784_v22  ;;  %2975 = vmatprep.subr.bf16.mxu0 %v4786_v23  ;;  %v1478_v22 = vld [vmem:[%s7176_s5 + $0x6c0] sm:$0xff]  ;;  %v1269_v26 = vld [vmem:[%s7176_s5 + $0x38] sm:$0xff] }
 0x1f5   : > { %v1482_v23 = vld [vmem:[%s7176_s5 + $0x6e0] sm:$0xff] }
 0x1f6   : > { %v4847_v41 = vcombine.low %v1478_v22, %v1482_v23 }
 0x1f7   : > { %2890 = vmatpush1.bf16.msra.mxu1 %v4783_v33  ;;  %2976 = vmatpush1.bf16.msra.mxu0 %v4785_v34  ;;  %v4848_v33 = vcombine.high %v1478_v22, %v1482_v23  ;;  %v4850_v34 = vcombine.high %v1479_v29, %v1483_v30  ;;  %v4638_v29 = vcombine.high %v1265_v25, %v1269_v26 }
 0x1f8   : > { %2891 = vmatprep.subr.bf16.mxu1 %v4792_v36  ;;  %2977 = vmatprep.subr.bf16.mxu0 %v4794_v37  ;;  %v1486_v36 = vld [vmem:[%s7176_s5 + $0x700] sm:$0xff] }
 0x1f9   : > { %v1490_v37 = vld [vmem:[%s7176_s5 + $0x720] sm:$0xff] }
 0x1fa   : > { %v4855_v50 = vcombine.low %v1486_v36, %v1490_v37 }
 0x1fb   : > { %2892 = vmatpush1.bf16.msra.mxu1 %v4791_v44  ;;  %2978 = vmatpush1.bf16.msra.mxu0 %v4793_v45  ;;  %v4856_v44 = vcombine.high %v1486_v36, %v1490_v37  ;;  %v4858_v45 = vcombine.high %v1487_v38, %v1491_v39  ;;  %v1273_v36 = vld [vmem:[%s7176_s5 + $0x58] sm:$0xff] }
 0x1fc   : > { %2893 = vmatprep.subr.bf16.mxu1 %v4800_v46  ;;  %2979 = vmatprep.subr.bf16.mxu0 %v4802_v47  ;;  %v1494_v46 = vld [vmem:[%s7176_s5 + $0x740] sm:$0xff]  ;;  %v1277_v37 = vld [vmem:[%s7176_s5 + $0x78] sm:$0xff] }
 0x1fd   : > { %v1498_v47 = vld [vmem:[%s7176_s5 + $0x760] sm:$0xff] }
 0x1ff   : > { %2894 = vmatpush1.bf16.msra.mxu1 %v4799_v52  ;;  %2980 = vmatpush1.bf16.msra.mxu0 %v4801_v53  ;;  %v4864_v52 = vcombine.high %v1494_v46, %v1498_v47  ;;  %v4866_v53 = vcombine.high %v1495_v48, %v1499_v49 }
 0x200   : > { %2895 = vmatprep.subr.bf16.mxu1 %v4808_v55  ;;  %2981 = vmatprep.subr.bf16.mxu0 %v4810_v56  ;;  %v834_v55 = vsub.s32 2, %v5822_v35  ;;  %v1502_v56 = vld [vmem:[%s7176_s5 + $0x780] sm:$0xff] }
 0x203   : > { %2896 = vmatpush1.bf16.msra.mxu1 %v4807_v61  ;;  %2982 = vmatpush1.bf16.msra.mxu0 %v4809_v62  ;;  %v4863_v61 = vcombine.low %v1494_v46, %v1498_v47  ;;  %v4865_v62 = vcombine.low %v1495_v48, %v1499_v49  ;;  %v1284_v46 = vld [vmem:[%s7176_s5 + $0xb0] sm:$0xff]  ;;  %v1281_v47 = vld [vmem:[%s7176_s5 + $0x98] sm:$0xff] }
 0x204   : > { %2897 = vmatprep.subr.bf16.mxu1 %v4816_v63  ;;  %2983 = vmatprep.subr.bf16.mxu0 %v4818_v0  ;;  %v835_v63 = vrot.slane %v6083_v54, %v834_v55  ;;  %v4872_v0 = vcombine.high %v1502_v56, %v1506_v58  ;;  %v4880_v54 = vcombine.high %v1510_v2, %v1514_v4  ;;  %v1285_v48 = vld [vmem:[%s7176_s5 + $0xb8] sm:$0xff] }
 0x205   : > { %v4653_v60 = vcombine.low %v1281_v47, %v1285_v48 }
 0x207   : > { %2898 = vmatpush1.bf16.msra.mxu1 %v4815_v5  ;;  %2984 = vmatpush1.bf16.msra.mxu0 %v4817_v6  ;;  %v1511_v5 = vld [vmem:[%s7176_s5 + $0x7c8] sm:$0xff] }
 0x208   : > { %2899 = vmatprep.subr.bf16.mxu1 %v4824_v7  ;;  %2985 = vmatprep.subr.bf16.mxu0 %v4826_v8  ;;  %v1515_v6 = vld [vmem:[%s7176_s5 + $0x7e8] sm:$0xff]  ;;  %v4871_v8 = vcombine.low %v1502_v56, %v1506_v58  ;;  %v1292_v56 = vld [vmem:[%s7176_s5 + $0xf0] sm:$0xff]  ;;  %v1289_v58 = vld [vmem:[%s7176_s5 + $0xd8] sm:$0xff] }
 0x209   : > { %v4882_v14 = vcombine.high %v1511_v5, %v1515_v6 }
 0x20b   : > { %2900 = vmatpush1.bf16.msra.mxu1 %v4823_v15  ;;  %2986 = vmatpush1.bf16.msra.mxu0 %v4825_v19  ;;  %v1264_v15 = vld [vmem:[%s7176_s5 + $0x10] sm:$0xff] }
 0x20c   : > { %2901 = vmatprep.subr.bf16.mxu1 %v4832_v21  ;;  %2987 = vmatprep.subr.bf16.mxu0 %v4834_v24  ;;  %v1268_v24 = vld [vmem:[%s7176_s5 + $0x30] sm:$0xff] }
 0x20d   : > { %v4636_v23 = vcombine.high %v1264_v15, %v1268_v24  ;;  %v4635_v39 = vcombine.low %v1264_v15, %v1268_v24  ;;  %v1313_v24 = vld [vmem:[%s7176_s5 + $0x198] sm:$0xff] }
 0x20f   : > { %2902 = vmatpush1.bf16.msra.mxu1 %v4831_v16  ;;  %2988 = vmatpush1.bf16.msra.mxu0 %v4833_v17  ;;  %v4879_v17 = vcombine.low %v1510_v2, %v1514_v4  ;;  %v1301_v2 = vld [vmem:[%s7176_s5 + $0x138] sm:$0xff] }
 0x210   : > { %2903 = vmatprep.subr.bf16.mxu1 %v4840_v18  ;;  %2989 = vmatprep.subr.bf16.mxu0 %v4842_v20  ;;  %v4881_v18 = vcombine.low %v1511_v5, %v1515_v6 }
 0x213   : > { %2904 = vmatpush1.bf16.msra.mxu1 %v4839_v31  ;;  %2990 = vmatpush1.bf16.msra.mxu0 %v4841_v32  ;;  %v1272_v32 = vld [vmem:[%s7176_s5 + $0x50] sm:$0xff] }
 0x214   : > { %2905 = vmatprep.subr.bf16.mxu1 %v4848_v33  ;;  %2991 = vmatprep.subr.bf16.mxu0 %v4850_v34  ;;  %v1276_v34 = vld [vmem:[%s7176_s5 + $0x70] sm:$0xff] }
 0x215   : > { %v4643_v49 = vcombine.low %v1272_v32, %v1276_v34 }
 0x217   : > { %2906 = vmatpush1.bf16.msra.mxu1 %v4847_v41  ;;  %2992 = vmatpush1.bf16.msra.mxu0 %v4849_v42  ;;  %v4637_v41 = vcombine.low %v1265_v25, %v1269_v26  ;;  %v4644_v42 = vcombine.high %v1272_v32, %v1276_v34  ;;  %v1317_v25 = vld [vmem:[%s7176_s5 + $0x1b8] sm:$0xff]  ;;  %v1328_v32 = vld [vmem:[%s7176_s5 + $0x210] sm:$0xff] }
 0x218   : > { %2907 = vmatprep.subr.bf16.mxu1 %v4856_v44  ;;  %2993 = vmatprep.subr.bf16.mxu0 %v4858_v45  ;;  %v4646_v44 = vcombine.high %v1273_v36, %v1277_v37  ;;  %v1280_v45 = vld [vmem:[%s7176_s5 + $0x90] sm:$0xff] }
 0x219   : > { %v4651_v59 = vcombine.low %v1280_v45, %v1284_v46  ;;  %v1332_v34 = vld [vmem:[%s7176_s5 + $0x230] sm:$0xff] }
 0x21b   : > { %2908 = vmatpush1.bf16.msra.mxu1 %v4855_v50  ;;  %2994 = vmatpush1.bf16.msra.mxu0 %v4857_v51  ;;  %v4645_v50 = vcombine.low %v1273_v36, %v1277_v37  ;;  %v4652_v51 = vcombine.high %v1280_v45, %v1284_v46  ;;  %v1329_v36 = vld [vmem:[%s7176_s5 + $0x218] sm:$0xff]  ;;  %v1336_v45 = vld [vmem:[%s7176_s5 + $0x250] sm:$0xff] }
 0x21c   : > { %2909 = vmatprep.subr.bf16.mxu1 %v4864_v52  ;;  %2995 = vmatprep.subr.bf16.mxu0 %v4866_v53  ;;  %v4654_v52 = vcombine.high %v1281_v47, %v1285_v48  ;;  %v1288_v53 = vld [vmem:[%s7176_s5 + $0xd0] sm:$0xff]  ;;  %v1333_v37 = vld [vmem:[%s7176_s5 + $0x238] sm:$0xff] }
 0x21d   : > { %v1340_v46 = vld [vmem:[%s7176_s5 + $0x270] sm:$0xff]  ;;  %v1337_v47 = vld [vmem:[%s7176_s5 + $0x258] sm:$0xff] }
 0x21e   : > { %v1341_v48 = vld [vmem:[%s7176_s5 + $0x278] sm:$0xff] }
 0x21f   : > { %v1241_v7 = vpop.f32.mrb[8].mxu0  ;;  %2910 = vmatpush1.bf16.msra.mxu1 %v4863_v61  ;;  %2996 = vmatpush1.bf16.msra.mxu0 %v4865_v62  ;;  %v4660_v61 = vcombine.high %v1288_v53, %v1292_v56 }
 0x220   : > { %v1242_v12 = vadd.f32 %v1241_v7, %v835_v63  ;;  %v1243_v13 = vpop.f32.mrb[9].mxu0  ;;  %2911 = vmatprep.subr.bf16.mxu1 %v4872_v0  ;;  %2997 = vmatprep.subr.bf16.mxu0 %v4874_v1  ;;  %v1300_v0 = vld [vmem:[%s7176_s5 + $0x130] sm:$0xff]  ;;  %v1297_v1 = vld [vmem:[%s7176_s5 + $0x118] sm:$0xff] }
 0x221   : > { %v1244_v19 = vadd.f32 %v1243_v13, %v839_v3  ;;  %v1245_v21 = vpop.f32.mrb[10].mxu0  ;;  %v4670_v6 = vcombine.high %v1297_v1, %v1301_v2  ;;  %v1304_v7 = vld [vmem:[%s7176_s5 + $0x150] sm:$0xff] }
 0x222   : > { %v1246_v27 = vadd.f32 %v1245_v21, %v835_v63  ;;  %v1247_v28 = vpop.f32.mrb[11].mxu0  ;;  %v1252_v20 = vmax.f32 %v1242_v12, 0.0  ;;  %v1296_v63 = vld [vmem:[%s7176_s5 + $0x110] sm:$0xff]  ;;  %v1309_v12 = vld [vmem:[%s7176_s5 + $0x178] sm:$0xff] }
 0x223   : > { %v1248_v16 = vadd.f32 %v1247_v28, %v839_v3  ;;  %2912 = vmatpush1.bf16.msra.mxu1 %v4871_v8  ;;  %2998 = vmatpush1.bf16.msra.mxu0 %v4873_v11  ;;  %v1253_v30 = vmax.f32 %v1244_v19, 0.0  ;;  %v4659_v3 = vcombine.low %v1288_v53, %v1292_v56  ;;  %v4668_v5 = vcombine.high %v1296_v63, %v1300_v0  ;;  %v1308_v8 = vld [vmem:[%s7176_s5 + $0x170] sm:$0xff]  ;;  %v1305_v11 = vld [vmem:[%s7176_s5 + $0x158] sm:$0xff] }
 0x224   : > { %v1256_v22 = vmax.f32 %v1246_v27, 0.0  ;;  %2913 = vmatprep.subr.bf16.mxu1 %v4880_v54  ;;  %2999 = vmatprep.subr.bf16.mxu0 %v4882_v14  ;;  %v4667_v13 = vcombine.low %v1296_v63, %v1300_v0  ;;  %v4669_v54 = vcombine.low %v1297_v1, %v1301_v2  ;;  %v4676_v14 = vcombine.high %v1304_v7, %v1308_v8  ;;  %v1312_v19 = vld [vmem:[%s7176_s5 + $0x190] sm:$0xff]  ;;  %v1353_v1 = vld [vmem:[%s7176_s5 + $0x2d8] sm:$0xff] }
 0x225   : > { %v1257_v31 = vmax.f32 %v1248_v16, 0.0  ;;  %v4678_v15 = vcombine.high %v1305_v11, %v1309_v12  ;;  %v1316_v21 = vld [vmem:[%s7176_s5 + $0x1b0] sm:$0xff]  ;;  %v4675_v26 = vcombine.low %v1304_v7, %v1308_v8  ;;  %v4677_v27 = vcombine.low %v1305_v11, %v1309_v12  ;;  %v1357_v2 = vld [vmem:[%s7176_s5 + $0x2f8] sm:$0xff] }
 0x226   : > { %v6306_v33 = vpack.c.bf16 %v1256_v22, %v1252_v20  ;;  %v4684_v28 = vcombine.high %v1312_v19, %v1316_v21  ;;  %v4686_v16 = vcombine.high %v1313_v24, %v1317_v25  ;;  %v1321_v20 = vld [vmem:[%s7176_s5 + $0x1d8] sm:$0xff]  ;;  %v1344_v53 = vld [vmem:[%s7176_s5 + $0x290] sm:$0xff] }
 0x227   : > { %v6317_v38 = vpack.c.bf16 %v1257_v31, %v1253_v30  ;;  %2914 = vmatpush1.bf16.msra.mxu1 %v4879_v17  ;;  %3000 = vmatpush1.bf16.msra.mxu0 %v4881_v18  ;;  %v1320_v17 = vld [vmem:[%s7176_s5 + $0x1d0] sm:$0xff]  ;;  %v1325_v22 = vld [vmem:[%s7176_s5 + $0x1f8] sm:$0xff] }
 0x228   : > { %3012 = vmatprep.subr.bf16.mxu1 %v4636_v23  ;;  %3098 = vmatprep.subr.bf16.mxu0 %v4638_v29  ;;  %v1324_v18 = vld [vmem:[%s7176_s5 + $0x1f0] sm:$0xff]  ;;  %v4683_v23 = vcombine.low %v1312_v19, %v1316_v21  ;;  %v4685_v29 = vcombine.low %v1313_v24, %v1317_v25  ;;  %v4694_v31 = vcombine.high %v1321_v20, %v1325_v22  ;;  %v1361_v11 = vld [vmem:[%s7176_s5 + $0x318] sm:$0xff] }
 0x229   : > { %2915 = vmatprep.mubr.bf16.mxu1 %v6317_v38  ;;  %3001 = vmatprep.mubr.bf16.mxu0 %v6317_v38  ;;  %v4692_v30 = vcombine.high %v1320_v17, %v1324_v18  ;;  %v1348_v56 = vld [vmem:[%s7176_s5 + $0x2b0] sm:$0xff]  ;;  %v1365_v12 = vld [vmem:[%s7176_s5 + $0x338] sm:$0xff] }
 0x22a   : > { %2916 = vmatmul.mubr.bf16.vlgmr.msra.gmra.mrb[0].mxu1 %v6306_v33  ;;  %3002 = vmatmul.mubr.bf16.vlgmr.msra.gmra.mrb[12].mxu0 %v6306_v33  ;;  %v1352_v63 = vld [vmem:[%s7176_s5 + $0x2d0] sm:$0xff]  ;;  %v1369_v24 = vld [vmem:[%s7176_s5 + $0x358] sm:$0xff] }
 0x22b   : > { %3013 = vmatpush1.bf16.msra.mxu1 %v4635_v39  ;;  %3044 = vmatprep.mubr.bf16.mxu1 %v6103_v10  ;;  %v4691_v39 = vcombine.low %v1320_v17, %v1324_v18  ;;  %v1356_v0 = vld [vmem:[%s7176_s5 + $0x2f0] sm:$0xff]  ;;  %v1373_v25 = vld [vmem:[%s7176_s5 + $0x378] sm:$0xff] }
 0x22c   : > { %3099 = vmatpush1.bf16.msra.mxu0 %v4637_v41  ;;  %3130 = vmatprep.mubr.bf16.mxu0 %v6103_v10  ;;  %v1293_v10 = vld [vmem:[%s7176_s5 + $0xf8] sm:$0xff]  ;;  %v4693_v41 = vcombine.low %v1321_v20, %v1325_v22  ;;  %v1360_v7 = vld [vmem:[%s7176_s5 + $0x310] sm:$0xff] }
 0x22d   : > { %3014 = vmatprep.subr.bf16.mxu1 %v4644_v42  ;;  %3100 = vmatprep.subr.bf16.mxu0 %v4646_v44  ;;  %v4662_v62 = vcombine.high %v1289_v58, %v1293_v10  ;;  %v4661_v4 = vcombine.low %v1289_v58, %v1293_v10  ;;  %v4700_v42 = vcombine.high %v1328_v32, %v1332_v34  ;;  %v1345_v58 = vld [vmem:[%s7176_s5 + $0x298] sm:$0xff]  ;;  %v1364_v8 = vld [vmem:[%s7176_s5 + $0x330] sm:$0xff] }
 0x22e   : > { %v4702_v44 = vcombine.high %v1329_v36, %v1333_v37  ;;  %v1349_v10 = vld [vmem:[%s7176_s5 + $0x2b8] sm:$0xff]  ;;  %v1368_v19 = vld [vmem:[%s7176_s5 + $0x350] sm:$0xff] }
 0x22f   : > { %3015 = vmatpush1.bf16.msra.mxu1 %v4643_v49  ;;  %v4699_v49 = vcombine.low %v1328_v32, %v1332_v34  ;;  %v1372_v21 = vld [vmem:[%s7176_s5 + $0x370] sm:$0xff]  ;;  %v1377_v20 = vld [vmem:[%s7176_s5 + $0x398] sm:$0xff] }
 0x230   : > { %3101 = vmatpush1.bf16.msra.mxu0 %v4645_v50  ;;  %3016 = vmatprep.subr.bf16.mxu1 %v4652_v51  ;;  %v4701_v50 = vcombine.low %v1329_v36, %v1333_v37  ;;  %v4708_v51 = vcombine.high %v1336_v45, %v1340_v46  ;;  %v1376_v17 = vld [vmem:[%s7176_s5 + $0x390] sm:$0xff]  ;;  %v1381_v22 = vld [vmem:[%s7176_s5 + $0x3b8] sm:$0xff] }
 0x231   : > { %3102 = vmatprep.subr.bf16.mxu0 %v4654_v52  ;;  %v4710_v52 = vcombine.high %v1337_v47, %v1341_v48  ;;  %v1380_v18 = vld [vmem:[%s7176_s5 + $0x3b0] sm:$0xff]  ;;  %v1385_v36 = vld [vmem:[%s7176_s5 + $0x3d8] sm:$0xff] }
 0x232   : > { %v1384_v32 = vld [vmem:[%s7176_s5 + $0x3d0] sm:$0xff]  ;;  %v1389_v37 = vld [vmem:[%s7176_s5 + $0x3f8] sm:$0xff] }
 0x233   : > { %3017 = vmatpush1.bf16.msra.mxu1 %v4651_v59  ;;  %v4707_v59 = vcombine.low %v1336_v45, %v1340_v46  ;;  %v1388_v34 = vld [vmem:[%s7176_s5 + $0x3f0] sm:$0xff] }
 0x234   : > { %3103 = vmatpush1.bf16.msra.mxu0 %v4653_v60  ;;  %3018 = vmatprep.subr.bf16.mxu1 %v4660_v61  ;;  %v4709_v60 = vcombine.low %v1337_v47, %v1341_v48  ;;  %v4716_v61 = vcombine.high %v1344_v53, %v1348_v56  ;;  %v1392_v45 = vld [vmem:[%s7176_s5 + $0x410] sm:$0xff]  ;;  %v1393_v47 = vld [vmem:[%s7176_s5 + $0x418] sm:$0xff] }
 0x235   : > { %3104 = vmatprep.subr.bf16.mxu0 %v4662_v62  ;;  %v4718_v62 = vcombine.high %v1345_v58, %v1349_v10  ;;  %v1396_v46 = vld [vmem:[%s7176_s5 + $0x430] sm:$0xff]  ;;  %v1397_v48 = vld [vmem:[%s7176_s5 + $0x438] sm:$0xff] }
 0x237   : > { %3019 = vmatpush1.bf16.msra.mxu1 %v4659_v3  ;;  %v4715_v3 = vcombine.low %v1344_v53, %v1348_v56  ;;  %v1400_v53 = vld [vmem:[%s7176_s5 + $0x450] sm:$0xff] }
 0x238   : > { %3105 = vmatpush1.bf16.msra.mxu0 %v4661_v4  ;;  %3020 = vmatprep.subr.bf16.mxu1 %v4668_v5  ;;  %v4717_v4 = vcombine.low %v1345_v58, %v1349_v10  ;;  %v4724_v5 = vcombine.high %v1352_v63, %v1356_v0  ;;  %v1404_v56 = vld [vmem:[%s7176_s5 + $0x470] sm:$0xff]  ;;  %v4763_v58 = vcombine.low %v1392_v45, %v1396_v46  ;;  %v1401_v10 = vld [vmem:[%s7176_s5 + $0x458] sm:$0xff] }
 0x239   : > { %3106 = vmatprep.subr.bf16.mxu0 %v4670_v6  ;;  %v4726_v6 = vcombine.high %v1353_v1, %v1357_v2 }
 0x23b   : > { %3021 = vmatpush1.bf16.msra.mxu1 %v4667_v13  ;;  %v4723_v13 = vcombine.low %v1352_v63, %v1356_v0  ;;  %v1412_v63 = vld [vmem:[%s7176_s5 + $0x4b0] sm:$0xff] }
 0x23c   : > { %3107 = vmatpush1.bf16.msra.mxu0 %v4669_v54  ;;  %3022 = vmatprep.subr.bf16.mxu1 %v4676_v14  ;;  %v4725_v54 = vcombine.low %v1353_v1, %v1357_v2  ;;  %v4732_v14 = vcombine.high %v1360_v7, %v1364_v8  ;;  %v1409_v1 = vld [vmem:[%s7176_s5 + $0x498] sm:$0xff] }
 0x23d   : > { %3108 = vmatprep.subr.bf16.mxu0 %v4678_v15  ;;  %v4734_v15 = vcombine.high %v1361_v11, %v1365_v12  ;;  %v1413_v2 = vld [vmem:[%s7176_s5 + $0x4b8] sm:$0xff] }
 0x23f   : > { %3023 = vmatpush1.bf16.msra.mxu1 %v4675_v26  ;;  %v4731_v26 = vcombine.low %v1360_v7, %v1364_v8  ;;  %v1416_v7 = vld [vmem:[%s7176_s5 + $0x4d0] sm:$0xff] }
 0x240   : > { %3109 = vmatpush1.bf16.msra.mxu0 %v4677_v27  ;;  %3024 = vmatprep.subr.bf16.mxu1 %v4684_v28  ;;  %v4733_v27 = vcombine.low %v1361_v11, %v1365_v12  ;;  %v4740_v28 = vcombine.high %v1368_v19, %v1372_v21  ;;  %v1420_v8 = vld [vmem:[%s7176_s5 + $0x4f0] sm:$0xff]  ;;  %v1421_v11 = vld [vmem:[%s7176_s5 + $0x4f8] sm:$0xff]  ;;  %v4781_v12 = vcombine.low %v1409_v1, %v1413_v2 }
 0x241   : > { %3110 = vmatprep.subr.bf16.mxu0 %v4686_v16  ;;  %v4742_v16 = vcombine.high %v1369_v24, %v1373_v25 }
 0x243   : > { %3025 = vmatpush1.bf16.msra.mxu1 %v4683_v23  ;;  %v4739_v23 = vcombine.low %v1368_v19, %v1372_v21  ;;  %v1425_v19 = vld [vmem:[%s7176_s5 + $0x518] sm:$0xff] }
 0x244   : > { %3111 = vmatpush1.bf16.msra.mxu0 %v4685_v29  ;;  %3026 = vmatprep.subr.bf16.mxu1 %v4692_v30  ;;  %v4741_v29 = vcombine.low %v1369_v24, %v1373_v25  ;;  %v4748_v30 = vcombine.high %v1376_v17, %v1380_v18  ;;  %v1429_v21 = vld [vmem:[%s7176_s5 + $0x538] sm:$0xff]  ;;  %v4787_v24 = vcombine.low %v1416_v7, %v1420_v8 }
 0x245   : > { %3112 = vmatprep.subr.bf16.mxu0 %v4694_v31  ;;  %v4750_v31 = vcombine.high %v1377_v20, %v1381_v22 }
 0x247   : > { %3027 = vmatpush1.bf16.msra.mxu1 %v4691_v39  ;;  %v4747_v39 = vcombine.low %v1376_v17, %v1380_v18  ;;  %v1433_v17 = vld [vmem:[%s7176_s5 + $0x558] sm:$0xff] }
 0x248   : > { %3113 = vmatpush1.bf16.msra.mxu0 %v4693_v41  ;;  %3028 = vmatprep.subr.bf16.mxu1 %v4700_v42  ;;  %v4749_v41 = vcombine.low %v1377_v20, %v1381_v22  ;;  %v4756_v42 = vcombine.high %v1384_v32, %v1388_v34  ;;  %v1437_v18 = vld [vmem:[%s7176_s5 + $0x578] sm:$0xff]  ;;  %v4797_v22 = vcombine.low %v1425_v19, %v1429_v21 }
 0x249   : > { %3114 = vmatprep.subr.bf16.mxu0 %v4702_v44  ;;  %v4758_v44 = vcombine.high %v1385_v36, %v1389_v37 }
 0x24b   : > { %3029 = vmatpush1.bf16.msra.mxu1 %v4699_v49  ;;  %v4755_v49 = vcombine.low %v1384_v32, %v1388_v34  ;;  %v1441_v32 = vld [vmem:[%s7176_s5 + $0x598] sm:$0xff] }
 0x24c   : > { %3115 = vmatpush1.bf16.msra.mxu0 %v4701_v50  ;;  %3030 = vmatprep.subr.bf16.mxu1 %v4708_v51  ;;  %v4757_v50 = vcombine.low %v1385_v36, %v1389_v37  ;;  %v4764_v51 = vcombine.high %v1392_v45, %v1396_v46  ;;  %v1445_v34 = vld [vmem:[%s7176_s5 + $0x5b8] sm:$0xff]  ;;  %v4805_v37 = vcombine.low %v1433_v17, %v1437_v18 }
 0x24d   : > { %3116 = vmatprep.subr.bf16.mxu0 %v4710_v52  ;;  %v4766_v52 = vcombine.high %v1393_v47, %v1397_v48  ;;  %v1449_v45 = vld [vmem:[%s7176_s5 + $0x5d8] sm:$0xff] }
 0x24e   : > { %v1453_v46 = vld [vmem:[%s7176_s5 + $0x5f8] sm:$0xff] }
 0x24f   : > { %3031 = vmatpush1.bf16.msra.mxu1 %v4707_v59  ;;  %v1405_v59 = vld [vmem:[%s7176_s5 + $0x478] sm:$0xff] }
 0x250   : > { %3117 = vmatpush1.bf16.msra.mxu0 %v4709_v60  ;;  %3032 = vmatprep.subr.bf16.mxu1 %v4716_v61  ;;  %v4765_v60 = vcombine.low %v1393_v47, %v1397_v48  ;;  %v4772_v61 = vcombine.high %v1400_v53, %v1404_v56  ;;  %v4774_v0 = vcombine.high %v1401_v10, %v1405_v59 }
 0x251   : > { %3118 = vmatprep.subr.bf16.mxu0 %v4718_v62  ;;  %v1408_v62 = vld [vmem:[%s7176_s5 + $0x490] sm:$0xff]  ;;  %v4813_v48 = vcombine.low %v1441_v32, %v1445_v34 }
 0x253   : > { %3033 = vmatpush1.bf16.msra.mxu1 %v4715_v3  ;;  %v4771_v3 = vcombine.low %v1400_v53, %v1404_v56  ;;  %v1457_v53 = vld [vmem:[%s7176_s5 + $0x618] sm:$0xff] }
 0x254   : > { %3119 = vmatpush1.bf16.msra.mxu0 %v4717_v4  ;;  %3034 = vmatprep.subr.bf16.mxu1 %v4724_v5  ;;  %v4773_v4 = vcombine.low %v1401_v10, %v1405_v59  ;;  %v4780_v5 = vcombine.high %v1408_v62, %v1412_v63  ;;  %v1461_v56 = vld [vmem:[%s7176_s5 + $0x638] sm:$0xff]  ;;  %v4821_v10 = vcombine.low %v1449_v45, %v1453_v46 }
 0x255   : > { %3120 = vmatprep.subr.bf16.mxu0 %v4726_v6  ;;  %v4782_v6 = vcombine.high %v1409_v1, %v1413_v2  ;;  %v4829_v2 = vcombine.low %v1457_v53, %v1461_v56 }
 0x257   : > { %3035 = vmatpush1.bf16.msra.mxu1 %v4723_v13  ;;  %v4788_v13 = vcombine.high %v1416_v7, %v1420_v8  ;;  %v1473_v7 = vld [vmem:[%s7176_s5 + $0x698] sm:$0xff] }
 0x258   : > { %3121 = vmatpush1.bf16.msra.mxu0 %v4725_v54  ;;  %3036 = vmatprep.subr.bf16.mxu1 %v4732_v14  ;;  %v1424_v14 = vld [vmem:[%s7176_s5 + $0x510] sm:$0xff]  ;;  %v1477_v8 = vld [vmem:[%s7176_s5 + $0x6b8] sm:$0xff] }
 0x259   : > { %3122 = vmatprep.subr.bf16.mxu0 %v4734_v15  ;;  %v1428_v15 = vld [vmem:[%s7176_s5 + $0x530] sm:$0xff] }
 0x25a   : > { %v4795_v20 = vcombine.low %v1424_v14, %v1428_v15 }
 0x25b   : > { %3037 = vmatpush1.bf16.msra.mxu1 %v4731_v26  ;;  %v4796_v26 = vcombine.high %v1424_v14, %v1428_v15  ;;  %v1481_v14 = vld [vmem:[%s7176_s5 + $0x6d8] sm:$0xff] }
 0x25c   : > { %3123 = vmatpush1.bf16.msra.mxu0 %v4733_v27  ;;  %3038 = vmatprep.subr.bf16.mxu1 %v4740_v28  ;;  %v4798_v27 = vcombine.high %v1425_v19, %v1429_v21  ;;  %v1432_v28 = vld [vmem:[%s7176_s5 + $0x550] sm:$0xff]  ;;  %v1485_v15 = vld [vmem:[%s7176_s5 + $0x6f8] sm:$0xff]  ;;  %v4845_v21 = vcombine.low %v1473_v7, %v1477_v8 }
 0x25d   : > { %3124 = vmatprep.subr.bf16.mxu0 %v4742_v16  ;;  %v1436_v16 = vld [vmem:[%s7176_s5 + $0x570] sm:$0xff] }
 0x25e   : > { %v4803_v36 = vcombine.low %v1432_v28, %v1436_v16 }
 0x25f   : > { %3039 = vmatpush1.bf16.msra.mxu1 %v4739_v23  ;;  %v4804_v23 = vcombine.high %v1432_v28, %v1436_v16  ;;  %v1489_v28 = vld [vmem:[%s7176_s5 + $0x718] sm:$0xff] }
 0x260   : > { %3125 = vmatpush1.bf16.msra.mxu0 %v4741_v29  ;;  %3040 = vmatprep.subr.bf16.mxu1 %v4748_v30  ;;  %v4806_v29 = vcombine.high %v1433_v17, %v1437_v18  ;;  %v1440_v30 = vld [vmem:[%s7176_s5 + $0x590] sm:$0xff]  ;;  %v1493_v16 = vld [vmem:[%s7176_s5 + $0x738] sm:$0xff]  ;;  %v4853_v18 = vcombine.low %v1481_v14, %v1485_v15 }
 0x261   : > { %3126 = vmatprep.subr.bf16.mxu0 %v4750_v31  ;;  %v1444_v31 = vld [vmem:[%s7176_s5 + $0x5b0] sm:$0xff] }
 0x262   : > { %v4811_v47 = vcombine.low %v1440_v30, %v1444_v31 }
 0x263   : > { %3041 = vmatpush1.bf16.msra.mxu1 %v4747_v39  ;;  %v4812_v39 = vcombine.high %v1440_v30, %v1444_v31  ;;  %v1497_v30 = vld [vmem:[%s7176_s5 + $0x758] sm:$0xff] }
 0x264   : > { %3127 = vmatpush1.bf16.msra.mxu0 %v4749_v41  ;;  %3042 = vmatprep.subr.bf16.mxu1 %v4756_v42  ;;  %v4814_v41 = vcombine.high %v1441_v32, %v1445_v34  ;;  %v1448_v42 = vld [vmem:[%s7176_s5 + $0x5d0] sm:$0xff]  ;;  %v1501_v31 = vld [vmem:[%s7176_s5 + $0x778] sm:$0xff]  ;;  %v4861_v34 = vcombine.low %v1489_v28, %v1493_v16 }
 0x265   : > { %3128 = vmatprep.subr.bf16.mxu0 %v4758_v44  ;;  %v1452_v44 = vld [vmem:[%s7176_s5 + $0x5f0] sm:$0xff] }
 0x267   : > { %3043 = vmatpush1.bf16.msra.mxu1 %v4755_v49  ;;  %v4820_v49 = vcombine.high %v1448_v42, %v1452_v44 }
 0x268   : > { %3129 = vmatpush1.bf16.msra.mxu0 %v4757_v50  ;;  %3055 = vmatprep.subr.bf16.mxu1 %v4764_v51  ;;  %v4822_v50 = vcombine.high %v1449_v45, %v1453_v46  ;;  %v1456_v51 = vld [vmem:[%s7176_s5 + $0x610] sm:$0xff]  ;;  %v4869_v46 = vcombine.low %v1497_v30, %v1501_v31 }
 0x269   : > { %3141 = vmatprep.subr.bf16.mxu0 %v4766_v52  ;;  %v1460_v52 = vld [vmem:[%s7176_s5 + $0x630] sm:$0xff] }
 0x26a   : > { %3045 = vmatmul.mubr.bf16.vlgmr.msra.gmra.mrb[4].mxu1 %v6101_v9  ;;  %v4828_v59 = vcombine.high %v1456_v51, %v1460_v52  ;;  %v4827_v1 = vcombine.low %v1456_v51, %v1460_v52  ;;  %v1513_v51 = vld [vmem:[%s7176_s5 + $0x7d8] sm:$0xff] }
 0x26b   : > { %3131 = vmatmul.mubr.bf16.vlgmr.msra.gmra.mrb[16].mxu0 %v6101_v9  ;;  %3056 = vmatpush1.bf16.msra.mxu1 %v4763_v58  ;;  %v1417_v9 = vld [vmem:[%s7176_s5 + $0x4d8] sm:$0xff]  ;;  %v4819_v58 = vcombine.low %v1448_v42, %v1452_v44 }
 0x26c   : > { %3087 = vmatprep.mubr.bf16.mxu1 %v6317_v38  ;;  %3142 = vmatpush1.bf16.msra.mxu0 %v4765_v60  ;;  %v4790_v54 = vcombine.high %v1417_v9, %v1421_v11  ;;  %v4789_v25 = vcombine.low %v1417_v9, %v1421_v11  ;;  %v4830_v60 = vcombine.high %v1457_v53, %v1461_v56  ;;  %v1505_v42 = vld [vmem:[%s7176_s5 + $0x798] sm:$0xff] }
 0x26d   : > { %3173 = vmatprep.mubr.bf16.mxu0 %v6317_v38  ;;  %3057 = vmatprep.subr.bf16.mxu1 %v4772_v61  ;;  %v4779_v38 = vcombine.low %v1408_v62, %v1412_v63  ;;  %v1464_v61 = vld [vmem:[%s7176_s5 + $0x650] sm:$0xff]  ;;  %v1465_v63 = vld [vmem:[%s7176_s5 + $0x658] sm:$0xff] }
 0x26e   : > { %3143 = vmatprep.subr.bf16.mxu0 %v4774_v0  ;;  %v1468_v62 = vld [vmem:[%s7176_s5 + $0x670] sm:$0xff]  ;;  %v1469_v0 = vld [vmem:[%s7176_s5 + $0x678] sm:$0xff] }
 0x26f   : > { %3058 = vmatpush1.bf16.msra.mxu1 %v4771_v3  ;;  %v4836_v3 = vcombine.high %v1464_v61, %v1468_v62  ;;  %v4835_v9 = vcombine.low %v1464_v61, %v1468_v62  ;;  %v4837_v11 = vcombine.low %v1465_v63, %v1469_v0  ;;  %v1509_v44 = vld [vmem:[%s7176_s5 + $0x7b8] sm:$0xff]  ;;  %v5258_v61 = vld [vmem:[%s7178_s7 + $0x4] ss:$8 sps:$4 sm:$0xff]   ;;  %v4194_v62 = vld [vmem:[%s7181_s10] sm:$0x3] }
 0x270   : > { %3144 = vmatpush1.bf16.msra.mxu0 %v4773_v4  ;;  %3059 = vmatprep.subr.bf16.mxu1 %v4780_v5  ;;  %v4838_v4 = vcombine.high %v1465_v63, %v1469_v0  ;;  %v1472_v5 = vld [vmem:[%s7176_s5 + $0x690] sm:$0xff]  ;;  %v1517_v52 = vld [vmem:[%s7176_s5 + $0x7f8] sm:$0xff]  ;;  %v4877_v56 = vcombine.low %v1505_v42, %v1509_v44  ;;  %v5256_v63 = vld [vmem:[%s7178_s7] ss:$8 sps:$4 sm:$0xff]   ;;  %v5489_v0 = vmov 0.0  }
 0x271   : > { %3145 = vmatprep.subr.bf16.mxu0 %v4782_v6  ;;  %v1476_v6 = vld [vmem:[%s7176_s5 + $0x6b0] sm:$0xff] }
 0x272   : > { %v4843_v19 = vcombine.low %v1472_v5, %v1476_v6 }
 0x273   : > { %3060 = vmatpush1.bf16.msra.mxu1 %v4779_v38  ;;  %v4844_v38 = vcombine.high %v1472_v5, %v1476_v6  ;;  %v5159_v5 = vld [vmem:[%s5622_s22] sm:$0xff]   ;;  %v5267_v6 = vld [vmem:[%s7178_s7 + $0x34] ss:$8 sps:$4 sm:$0xff]   ;;  %s584_s22 = scalar_lea.vmem %s7187_s16, %s5032_s1 }
 0x274   : > { %3146 = vmatpush1.bf16.msra.mxu0 %v4781_v12  ;;  %3061 = vmatprep.subr.bf16.mxu1 %v4788_v13  ;;  %v4846_v12 = vcombine.high %v1473_v7, %v1477_v8  ;;  %v1480_v13 = vld [vmem:[%s7176_s5 + $0x6d0] sm:$0xff]  ;;  %v5270_v8 = vld [vmem:[%s7178_s7 + $0x44] ss:$8 sps:$4 sm:$0xff]  }
 0x275   : > { %3147 = vmatprep.subr.bf16.mxu0 %v4790_v54  ;;  %v1484_v54 = vld [vmem:[%s7176_s5 + $0x6f0] sm:$0xff] }
 0x276   : > { %v4851_v17 = vcombine.low %v1480_v13, %v1484_v54  ;;  %v5265_v7 = vld [vmem:[%s7178_s7 + $0x30] ss:$8 sps:$4 sm:$0xff]  }
 0x277   : > { %3062 = vmatpush1.bf16.msra.mxu1 %v4787_v24  ;;  %v4852_v24 = vcombine.high %v1480_v13, %v1484_v54  ;;  %v5274_v13 = vld [vmem:[%s7178_s7 + $0x60] ss:$8 sps:$4 sm:$0xff]   ;;  %v5279_v54 = vld [vmem:[%s7178_s7 + $0x74] ss:$8 sps:$4 sm:$0xff]  }
 0x278   : > { %3148 = vmatpush1.bf16.msra.mxu0 %v4789_v25  ;;  %3063 = vmatprep.subr.bf16.mxu1 %v4796_v26  ;;  %v4854_v25 = vcombine.high %v1481_v14, %v1485_v15  ;;  %v1488_v26 = vld [vmem:[%s7176_s5 + $0x710] sm:$0xff]  ;;  %v5282_v15 = vld [vmem:[%s7178_s7 + $0x84] ss:$8 sps:$4 sm:$0xff]  }
 0x279   : > { %3149 = vmatprep.subr.bf16.mxu0 %v4798_v27  ;;  %v1492_v27 = vld [vmem:[%s7176_s5 + $0x730] sm:$0xff] }
 0x27a   : > { %v4859_v32 = vcombine.low %v1488_v26, %v1492_v27  ;;  %v5277_v14 = vld [vmem:[%s7178_s7 + $0x70] ss:$8 sps:$4 sm:$0xff]  }
 0x27b   : > { %3064 = vmatpush1.bf16.msra.mxu1 %v4795_v20  ;;  %v4860_v20 = vcombine.high %v1488_v26, %v1492_v27  ;;  %v5286_v26 = vld [vmem:[%s7178_s7 + $0xa0] ss:$8 sps:$4 sm:$0xff]   ;;  %v5291_v27 = vld [vmem:[%s7178_s7 + $0xb4] ss:$8 sps:$4 sm:$0xff]  }
 0x27c   : > { %3150 = vmatpush1.bf16.msra.mxu0 %v4797_v22  ;;  %3065 = vmatprep.subr.bf16.mxu1 %v4804_v23  ;;  %v4862_v22 = vcombine.high %v1489_v28, %v1493_v16  ;;  %v1496_v23 = vld [vmem:[%s7176_s5 + $0x750] sm:$0xff]  ;;  %v5294_v16 = vld [vmem:[%s7178_s7 + $0xc4] ss:$8 sps:$4 sm:$0xff]  }
 0x27d   : > { %3151 = vmatprep.subr.bf16.mxu0 %v4806_v29  ;;  %v1500_v29 = vld [vmem:[%s7176_s5 + $0x770] sm:$0xff] }
 0x27e   : > { %v4867_v45 = vcombine.low %v1496_v23, %v1500_v29  ;;  %v5289_v28 = vld [vmem:[%s7178_s7 + $0xb0] ss:$8 sps:$4 sm:$0xff]  }
 0x27f   : > { %3066 = vmatpush1.bf16.msra.mxu1 %v4803_v36  ;;  %v4868_v36 = vcombine.high %v1496_v23, %v1500_v29  ;;  %v5298_v23 = vld [vmem:[%s7178_s7 + $0xe0] ss:$8 sps:$4 sm:$0xff]   ;;  %v5303_v29 = vld [vmem:[%s7178_s7 + $0xf4] ss:$8 sps:$4 sm:$0xff]  }
 0x280   : > { %3152 = vmatpush1.bf16.msra.mxu0 %v4805_v37  ;;  %3067 = vmatprep.subr.bf16.mxu1 %v4812_v39  ;;  %v4870_v37 = vcombine.high %v1497_v30, %v1501_v31  ;;  %v1504_v39 = vld [vmem:[%s7176_s5 + $0x790] sm:$0xff]  ;;  %v5306_v31 = vld [vmem:[%s7178_s7 + $0x104] ss:$8 sps:$4 sm:$0xff]  }
 0x281   : > { %3153 = vmatprep.subr.bf16.mxu0 %v4814_v41  ;;  %v1508_v41 = vld [vmem:[%s7176_s5 + $0x7b0] sm:$0xff] }
 0x282   : > { %v4875_v53 = vcombine.low %v1504_v39, %v1508_v41  ;;  %v5301_v30 = vld [vmem:[%s7178_s7 + $0xf0] ss:$8 sps:$4 sm:$0xff]  }
 0x283   : > { %3068 = vmatpush1.bf16.msra.mxu1 %v4811_v47  ;;  %v4876_v47 = vcombine.high %v1504_v39, %v1508_v41 }
 0x284   : > { %3154 = vmatpush1.bf16.msra.mxu0 %v4813_v48  ;;  %3069 = vmatprep.subr.bf16.mxu1 %v4820_v49  ;;  %v4878_v48 = vcombine.high %v1505_v42, %v1509_v44  ;;  %v1512_v49 = vld [vmem:[%s7176_s5 + $0x7d0] sm:$0xff] }
 0x285   : > { %3155 = vmatprep.subr.bf16.mxu0 %v4822_v50  ;;  %v1516_v50 = vld [vmem:[%s7176_s5 + $0x7f0] sm:$0xff] }
 0x287   : > { %3070 = vmatpush1.bf16.msra.mxu1 %v4819_v58  ;;  %v4884_v58 = vcombine.high %v1512_v49, %v1516_v50 }
 0x288   : > { %3156 = vmatpush1.bf16.msra.mxu0 %v4821_v10  ;;  %3071 = vmatprep.subr.bf16.mxu1 %v4828_v59  ;;  %v4886_v10 = vcombine.high %v1513_v51, %v1517_v52  ;;  %v4883_v59 = vcombine.low %v1512_v49, %v1516_v50 }
 0x289   : > { %3157 = vmatprep.subr.bf16.mxu0 %v4830_v60  ;;  %v4885_v60 = vcombine.low %v1513_v51, %v1517_v52 }
 0x28b   : > { %3072 = vmatpush1.bf16.msra.mxu1 %v4827_v1  ;;  %v4213_v1 = vsel %vm4211_vm0, %v4194_v62, 0 }
 0x28c   : > { %3158 = vmatpush1.bf16.msra.mxu0 %v4829_v2  ;;  %3073 = vmatprep.subr.bf16.mxu1 %v4836_v3  ;;  %v5261_v2 = vld [vmem:[%s7178_s7 + $0x14] ss:$8 sps:$4 sm:$0xff]   ;;  %v5259_v3 = vld [vmem:[%s7178_s7 + $0x10] ss:$8 sps:$4 sm:$0xff]  }
 0x28d   : > { %3159 = vmatprep.subr.bf16.mxu0 %v4838_v4  ;;  %v5264_v4 = vld [vmem:[%s7178_s7 + $0x24] ss:$8 sps:$4 sm:$0xff]  }
 0x28f   : > { %3074 = vmatpush1.bf16.msra.mxu1 %v4835_v9  ;;  %v5268_v9 = vld [vmem:[%s7178_s7 + $0x40] ss:$8 sps:$4 sm:$0xff]  }
 0x290   : > { %3160 = vmatpush1.bf16.msra.mxu0 %v4837_v11  ;;  %3075 = vmatprep.subr.bf16.mxu1 %v4844_v38  ;;  %v5273_v11 = vld [vmem:[%s7178_s7 + $0x54] ss:$8 sps:$4 sm:$0xff]   ;;  %v5271_v38 = vld [vmem:[%s7178_s7 + $0x50] ss:$8 sps:$4 sm:$0xff]  }
 0x291   : > { %3161 = vmatprep.subr.bf16.mxu0 %v4846_v12  ;;  %v5276_v12 = vld [vmem:[%s7178_s7 + $0x64] ss:$8 sps:$4 sm:$0xff]  }
 0x293   : > { %3076 = vmatpush1.bf16.msra.mxu1 %v4843_v19  ;;  %v5280_v19 = vld [vmem:[%s7178_s7 + $0x80] ss:$8 sps:$4 sm:$0xff]  }
 0x294   : > { %3162 = vmatpush1.bf16.msra.mxu0 %v4845_v21  ;;  %3077 = vmatprep.subr.bf16.mxu1 %v4852_v24  ;;  %v5285_v21 = vld [vmem:[%s7178_s7 + $0x94] ss:$8 sps:$4 sm:$0xff]   ;;  %v5283_v24 = vld [vmem:[%s7178_s7 + $0x90] ss:$8 sps:$4 sm:$0xff]  }
 0x295   : > { %3163 = vmatprep.subr.bf16.mxu0 %v4854_v25  ;;  %v5288_v25 = vld [vmem:[%s7178_s7 + $0xa4] ss:$8 sps:$4 sm:$0xff]  }
 0x297   : > { %3078 = vmatpush1.bf16.msra.mxu1 %v4851_v17  ;;  %v5292_v17 = vld [vmem:[%s7178_s7 + $0xc0] ss:$8 sps:$4 sm:$0xff]  }
 0x298   : > { %3164 = vmatpush1.bf16.msra.mxu0 %v4853_v18  ;;  %3079 = vmatprep.subr.bf16.mxu1 %v4860_v20  ;;  %v5297_v18 = vld [vmem:[%s7178_s7 + $0xd4] ss:$8 sps:$4 sm:$0xff]   ;;  %v5295_v20 = vld [vmem:[%s7178_s7 + $0xd0] ss:$8 sps:$4 sm:$0xff]  }
 0x299   : > { %3165 = vmatprep.subr.bf16.mxu0 %v4862_v22  ;;  %v5300_v22 = vld [vmem:[%s7178_s7 + $0xe4] ss:$8 sps:$4 sm:$0xff]  }
 0x29b   : > { %3080 = vmatpush1.bf16.msra.mxu1 %v4859_v32  ;;  %v6803_v32 = vld [vmem:[%s7177_s6] sm:$0xff] }
 0x29c   : > { %3166 = vmatpush1.bf16.msra.mxu0 %v4861_v34  ;;  %3081 = vmatprep.subr.bf16.mxu1 %v4868_v36  ;;  %v1523_v34 = vrot.slane %v6803_v32, %v5831_v40  ;;  %v1531_v36 = vrot.slane %v6803_v32, %v834_v55  ;;  %v1535_v39 = vrot.slane %v6803_v32, %v838_v57 }
 0x29d   : > { %3167 = vmatprep.subr.bf16.mxu0 %v4870_v37  ;;  %v1527_v37 = vrot.slane %v6803_v32, %v5837_v43 }
 0x29f   : > { %3082 = vmatpush1.bf16.msra.mxu1 %v4867_v45 }
 0x2a0   : > { %3168 = vmatpush1.bf16.msra.mxu0 %v4869_v46  ;;  %3083 = vmatprep.subr.bf16.mxu1 %v4876_v47 }
 0x2a1   : > { %3169 = vmatprep.subr.bf16.mxu0 %v4878_v48 }
 0x2a3   : > { %3084 = vmatpush1.bf16.msra.mxu1 %v4875_v53 }
 0x2a4   : > { %3170 = vmatpush1.bf16.msra.mxu0 %v4877_v56  ;;  %3085 = vmatprep.subr.bf16.mxu1 %v4884_v58 }
 0x2a5   : > { %3171 = vmatprep.subr.bf16.mxu0 %v4886_v10 }
 0x2a7   : > { %3086 = vmatpush1.bf16.msra.mxu1 %v4883_v59 }
 0x2a8   : > { %3172 = vmatpush1.bf16.msra.mxu0 %v4885_v60  ;;  %3988 = vmatprep.subr.bf16.mxu1 %v5258_v61 }
 0x2a9   : > { %5045 = vmatprep.subr.bf16.mxu0 %v5489_v0 }
 0x2aa   : > { %3088 = vmatmul.mubr.bf16.vlgmr.msra.gmra.mrb[4].mxu1 %v6306_v33 }
 0x2ab   : > { %3174 = vmatmul.mubr.bf16.vlgmr.msra.gmra.mrb[16].mxu0 %v6306_v33  ;;  %3989 = vmatpush1.bf16.msra.mxu1 %v5256_v63  ;;  %v5262_v33 = vld [vmem:[%s7178_s7 + $0x20] ss:$8 sps:$4 sm:$0xff]  }
 0x2ac   : > { %5046 = vmatpush3.bf16.msra.mxu0 %v4213_v1  ;;  %5047 = vmatprep.mubr.msk.bf16.mxu0 %vm5490_vm1, %v5489_v0 }
 0x2ad   : > { %3990 = vmatprep.subr.bf16.mxu1 %v5261_v2  ;;  %5051 = vmatprep.subr.bf16.mxu0 %v5489_v0 }
 0x2af   : > { %3991 = vmatpush1.bf16.msra.mxu1 %v5259_v3 }
 0x2b0   : > { %3992 = vmatprep.subr.bf16.mxu1 %v5264_v4 }
 0x2b3   : > { %5048 = vmatmul.mubr.msk.bf16.vlgmr.msra.gmra.mrb[20].mxu0 %vm4207_vm2, %v5159_v5  ;;  %3993 = vmatpush1.bf16.msra.mxu1 %v5262_v33 }
 0x2b4   : > { %3994 = vmatprep.subr.bf16.mxu1 %v5267_v6  ;;  %5059 = vmatprep.mubr.msk.bf16.mxu0 %vm5490_vm1, %v5489_v0  ;;  %v5304_v6 = vld [vmem:[%s7178_s7 + $0x100] ss:$8 sps:$4 sm:$0xff]  }
 0x2b7   : > { %3995 = vmatpush1.bf16.msra.mxu1 %v5265_v7  ;;  %v5309_v7 = vld [vmem:[%s7178_s7 + $0x114] ss:$8 sps:$4 sm:$0xff]  }
 0x2b8   : > { %3996 = vmatprep.subr.bf16.mxu1 %v5270_v8  ;;  %v5403_v8 = vld [vmem:[%s7183_s12] sm:$0xff]  }
 0x2b9   : > { %5052 = vmatpush3.bf16.msra.mxu0 %v5403_v8  ;;  %v5393_v8 = vld [vmem:[%s7178_s7 + $0x2d4] ss:$8 sps:$4 sm:$0xff]  }
 0x2ba   : > { %5053 = vmatprep.subr.bf16.mxu0 %v5489_v0 }
 0x2bb   : > { %3997 = vmatpush1.bf16.msra.mxu1 %v5268_v9  ;;  %v5307_v9 = vld [vmem:[%s7178_s7 + $0x110] ss:$8 sps:$4 sm:$0xff]  }
 0x2bc   : > { %3998 = vmatprep.subr.bf16.mxu1 %v5273_v11  ;;  %v5312_v11 = vld [vmem:[%s7178_s7 + $0x124] ss:$8 sps:$4 sm:$0xff]  }
 0x2bf   : > { %3999 = vmatpush1.bf16.msra.mxu1 %v5271_v38  ;;  %v5407_v38 = vld [vmem:[%s7183_s12 + $0x8] sm:$0xff]  }
 0x2c0   : > { %4000 = vmatprep.subr.bf16.mxu1 %v5276_v12  ;;  %v5310_v12 = vld [vmem:[%s7178_s7 + $0x120] ss:$8 sps:$4 sm:$0xff]   ;;  %5054 = vmatpush3.bf16.msra.mxu0 %v5407_v38  ;;  %v1542_v38 = vsub.s32 5, %v5822_v35 }
 0x2c1   : > { %5055 = vmatprep.subr.bf16.mxu0 %v5489_v0 }
 0x2c3   : > { %4001 = vmatpush1.bf16.msra.mxu1 %v5274_v13  ;;  %v5315_v13 = vld [vmem:[%s7178_s7 + $0x134] ss:$8 sps:$4 sm:$0xff]  }
 0x2c4   : > { %4002 = vmatprep.subr.bf16.mxu1 %v5279_v54  ;;  %v5411_v54 = vld [vmem:[%s7183_s12 + $0x10] sm:$0xff]  }
 0x2c5   : > { %5056 = vmatpush3.bf16.msra.mxu0 %v5411_v54 }
 0x2c6   : > { %5057 = vmatprep.subr.bf16.mxu0 %v5489_v0 }
 0x2c7   : > { %4003 = vmatpush1.bf16.msra.mxu1 %v5277_v14  ;;  %v5313_v14 = vld [vmem:[%s7178_s7 + $0x130] ss:$8 sps:$4 sm:$0xff]  }
 0x2c8   : > { %4004 = vmatprep.subr.bf16.mxu1 %v5282_v15  ;;  %v5318_v15 = vld [vmem:[%s7178_s7 + $0x144] ss:$8 sps:$4 sm:$0xff]  }
 0x2cb   : > { %4005 = vmatpush1.bf16.msra.mxu1 %v5280_v19  ;;  %v5415_v19 = vld [vmem:[%s7183_s12 + $0x18] sm:$0xff]  }
 0x2cc   : > { %4006 = vmatprep.subr.bf16.mxu1 %v5285_v21  ;;  %v5316_v21 = vld [vmem:[%s7178_s7 + $0x140] ss:$8 sps:$4 sm:$0xff]   ;;  %5058 = vmatpush3.bf16.msra.mxu0 %v5415_v19  ;;  %v1543_v19 = vrot.slane %v6803_v32, %v1542_v38  ;;  %v5424_v38 = vld [vmem:[%s7178_s7 + $0x364] ss:$8 sps:$4 sm:$0xff]  }
 0x2cd   : > { %5063 = vmatprep.subr.bf16.mxu0 %v5489_v0 }
 0x2cf   : > { %4007 = vmatpush1.bf16.msra.mxu1 %v5283_v24  ;;  %v5321_v24 = vld [vmem:[%s7178_s7 + $0x154] ss:$8 sps:$4 sm:$0xff]  }
 0x2d0   : > { %4008 = vmatprep.subr.bf16.mxu1 %v5288_v25  ;;  %v5319_v25 = vld [vmem:[%s7178_s7 + $0x150] ss:$8 sps:$4 sm:$0xff]  }
 0x2d3   : > { %4009 = vmatpush1.bf16.msra.mxu1 %v5286_v26  ;;  %v5324_v26 = vld [vmem:[%s7178_s7 + $0x164] ss:$8 sps:$4 sm:$0xff]  }
 0x2d4   : > { %4010 = vmatprep.subr.bf16.mxu1 %v5291_v27  ;;  %v5322_v27 = vld [vmem:[%s7178_s7 + $0x160] ss:$8 sps:$4 sm:$0xff]  }
 0x2d7   : > { %4011 = vmatpush1.bf16.msra.mxu1 %v5289_v28  ;;  %v5327_v28 = vld [vmem:[%s7178_s7 + $0x174] ss:$8 sps:$4 sm:$0xff]  }
 0x2d8   : > { %4012 = vmatprep.subr.bf16.mxu1 %v5294_v16  ;;  %v5325_v16 = vld [vmem:[%s7178_s7 + $0x170] ss:$8 sps:$4 sm:$0xff]  }
 0x2db   : > { %4013 = vmatpush1.bf16.msra.mxu1 %v5292_v17  ;;  %v5330_v17 = vld [vmem:[%s7178_s7 + $0x184] ss:$8 sps:$4 sm:$0xff]  }
 0x2dc   : > { %4014 = vmatprep.subr.bf16.mxu1 %v5297_v18  ;;  %v5328_v18 = vld [vmem:[%s7178_s7 + $0x180] ss:$8 sps:$4 sm:$0xff]  }
 0x2df   : > { %4015 = vmatpush1.bf16.msra.mxu1 %v5295_v20  ;;  %v5333_v20 = vld [vmem:[%s7178_s7 + $0x194] ss:$8 sps:$4 sm:$0xff]  }
 0x2e0   : > { %4016 = vmatprep.subr.bf16.mxu1 %v5300_v22  ;;  %v5331_v22 = vld [vmem:[%s7178_s7 + $0x190] ss:$8 sps:$4 sm:$0xff]  }
 0x2e3   : > { %4017 = vmatpush1.bf16.msra.mxu1 %v5298_v23  ;;  %v5336_v23 = vld [vmem:[%s7178_s7 + $0x1a4] ss:$8 sps:$4 sm:$0xff]  }
 0x2e4   : > { %4018 = vmatprep.subr.bf16.mxu1 %v5303_v29  ;;  %v5334_v29 = vld [vmem:[%s7178_s7 + $0x1a0] ss:$8 sps:$4 sm:$0xff]  }
 0x2e7   : > { %4019 = vmatpush1.bf16.msra.mxu1 %v5301_v30  ;;  %v5339_v30 = vld [vmem:[%s7178_s7 + $0x1b4] ss:$8 sps:$4 sm:$0xff]  }
 0x2e8   : > { %4031 = vmatprep.subr.bf16.mxu1 %v5306_v31  ;;  %v5337_v31 = vld [vmem:[%s7178_s7 + $0x1b0] ss:$8 sps:$4 sm:$0xff]  }
 0x2fd   : > { %v2917_v41 = vpop.f32.mrb[0].mxu1  ;;  %v3003_v42 = vpop.f32.mrb[12].mxu0 }
 0x2fe   : > { %v5075_v44 = vadd.f32 %v2917_v41, %v1523_v34  ;;  %v5079_v45 = vadd.f32 %v3003_v42, %v1531_v36  ;;  %v2919_v46 = vpop.f32.mrb[1].mxu1  ;;  %v3005_v47 = vpop.f32.mrb[13].mxu0  ;;  %v5348_v41 = vld [vmem:[%s7178_s7 + $0x1e4] ss:$8 sps:$4 sm:$0xff]   ;;  %v5346_v42 = vld [vmem:[%s7178_s7 + $0x1e0] ss:$8 sps:$4 sm:$0xff]  }
 0x2ff   : > { %v5076_v48 = vadd.f32 %v2919_v46, %v1527_v37  ;;  %v5080_v49 = vadd.f32 %v3005_v47, %v1535_v39  ;;  %v2921_v50 = vpop.f32.mrb[2].mxu1  ;;  %v3007_v51 = vpop.f32.mrb[14].mxu0  ;;  %v5354_v46 = vld [vmem:[%s7178_s7 + $0x204] ss:$8 sps:$4 sm:$0xff]   ;;  %v5352_v47 = vld [vmem:[%s7178_s7 + $0x200] ss:$8 sps:$4 sm:$0xff]  }
 0x300   : > { %v5077_v52 = vadd.f32 %v2921_v50, %v1523_v34  ;;  %v5081_v53 = vadd.f32 %v3007_v51, %v1531_v36  ;;  %v2923_v55 = vpop.f32.mrb[3].mxu1  ;;  %v3009_v56 = vpop.f32.mrb[15].mxu0  ;;  %v3184_v59 = vmax.f32 %v5075_v44, 0.0  ;;  %v3186_v60 = vmax.f32 %v5079_v45, 0.0  ;;  %v5342_v34 = vld [vmem:[%s7178_s7 + $0x1c4] ss:$8 sps:$4 sm:$0xff]  }
 0x301   : > { %v5078_v58 = vadd.f32 %v2923_v55, %v1527_v37  ;;  %v5082_v10 = vadd.f32 %v3009_v56, %v1535_v39  ;;  %v3185_v62 = vmax.f32 %v5076_v48, 0.0  ;;  %v3187_v63 = vmax.f32 %v5080_v49, 0.0  ;;  %v5340_v36 = vld [vmem:[%s7178_s7 + $0x1c0] ss:$8 sps:$4 sm:$0xff]   ;;  %v5345_v37 = vld [vmem:[%s7178_s7 + $0x1d4] ss:$8 sps:$4 sm:$0xff]  }
 0x302   : > { %v3192_v61 = vmax.f32 %v5077_v52, 0.0  ;;  %v3194_v57 = vmax.f32 %v5081_v53, 0.0  ;;  %v5343_v39 = vld [vmem:[%s7178_s7 + $0x1d0] ss:$8 sps:$4 sm:$0xff]   ;;  %v5351_v44 = vld [vmem:[%s7178_s7 + $0x1f4] ss:$8 sps:$4 sm:$0xff]  }
 0x303   : > { %v3193_v1 = vmax.f32 %v5078_v58, 0.0  ;;  %v3195_v2 = vmax.f32 %v5082_v10, 0.0  ;;  %v5349_v45 = vld [vmem:[%s7178_s7 + $0x1f0] ss:$8 sps:$4 sm:$0xff]   ;;  %v5357_v48 = vld [vmem:[%s7178_s7 + $0x214] ss:$8 sps:$4 sm:$0xff]  }
 0x304   : > { %v3200_v3 = vpack.c.bf16 %v3192_v61, %v3184_v59  ;;  %v6815_v4 = vpack.c.bf16 %v3194_v57, %v3186_v60  ;;  %v5355_v49 = vld [vmem:[%s7178_s7 + $0x210] ss:$8 sps:$4 sm:$0xff]   ;;  %v5360_v50 = vld [vmem:[%s7178_s7 + $0x224] ss:$8 sps:$4 sm:$0xff]   ;;  %v5358_v51 = vld [vmem:[%s7178_s7 + $0x220] ss:$8 sps:$4 sm:$0xff]  }
 0x305   : > { %v3201_v5 = vpack.c.bf16 %v3193_v1, %v3185_v62  ;;  %v3203_v33 = vpack.c.bf16 %v3195_v2, %v3187_v63  ;;  %v5363_v52 = vld [vmem:[%s7178_s7 + $0x234] ss:$8 sps:$4 sm:$0xff]   ;;  %v5361_v53 = vld [vmem:[%s7178_s7 + $0x230] ss:$8 sps:$4 sm:$0xff]   ;;  %v5366_v55 = vld [vmem:[%s7178_s7 + $0x244] ss:$8 sps:$4 sm:$0xff]  }
 0x306   : > { %v5364_v56 = vld [vmem:[%s7178_s7 + $0x240] ss:$8 sps:$4 sm:$0xff]   ;;  %v5369_v58 = vld [vmem:[%s7178_s7 + $0x254] ss:$8 sps:$4 sm:$0xff]   ;;  %v5367_v10 = vld [vmem:[%s7178_s7 + $0x250] ss:$8 sps:$4 sm:$0xff]  }
 0x307   : > { %4020 = vmatprep.mubr.bf16.mxu1 %v3201_v5  ;;  %v5372_v59 = vld [vmem:[%s7178_s7 + $0x264] ss:$8 sps:$4 sm:$0xff]   ;;  %v5370_v60 = vld [vmem:[%s7178_s7 + $0x260] ss:$8 sps:$4 sm:$0xff]   ;;  %v5375_v61 = vld [vmem:[%s7178_s7 + $0x274] ss:$8 sps:$4 sm:$0xff]  }
 0x308   : > { %4021 = vmatmul.mubr.bf16.vlgmr.msra.gmra.mrb[8].mxu1 %v3200_v3  ;;  %v5373_v57 = vld [vmem:[%s7178_s7 + $0x270] ss:$8 sps:$4 sm:$0xff]   ;;  %v5378_v62 = vld [vmem:[%s7178_s7 + $0x284] ss:$8 sps:$4 sm:$0xff]   ;;  %v5376_v63 = vld [vmem:[%s7178_s7 + $0x280] ss:$8 sps:$4 sm:$0xff]  }
 0x309   : > { %4032 = vmatpush1.bf16.msra.mxu1 %v5304_v6  ;;  %4063 = vmatprep.mubr.bf16.mxu1 %v3203_v33  ;;  %v5381_v1 = vld [vmem:[%s7178_s7 + $0x294] ss:$8 sps:$4 sm:$0xff]   ;;  %v5379_v2 = vld [vmem:[%s7178_s7 + $0x290] ss:$8 sps:$4 sm:$0xff]   ;;  %v5384_v3 = vld [vmem:[%s7178_s7 + $0x2a4] ss:$8 sps:$4 sm:$0xff]  }
 0x30a   : > { %4033 = vmatprep.subr.bf16.mxu1 %v5309_v7  ;;  %v5387_v5 = vld [vmem:[%s7178_s7 + $0x2b4] ss:$8 sps:$4 sm:$0xff]   ;;  %v5385_v33 = vld [vmem:[%s7178_s7 + $0x2b0] ss:$8 sps:$4 sm:$0xff]   ;;  %v5390_v6 = vld [vmem:[%s7178_s7 + $0x2c4] ss:$8 sps:$4 sm:$0xff]  }
 0x30b   : > { %v5388_v7 = vld [vmem:[%s7178_s7 + $0x2c0] ss:$8 sps:$4 sm:$0xff]  }
 0x30d   : > { %4034 = vmatpush1.bf16.msra.mxu1 %v5307_v9  ;;  %v1538_v9 = vsub.s32 4, %v5822_v35 }
 0x30e   : > { %4035 = vmatprep.subr.bf16.mxu1 %v5312_v11  ;;  %v1546_v11 = vsub.s32 6, %v5822_v35 }
 0x30f   : > { %v1539_v54 = vrot.slane %v6803_v32, %v1538_v9  ;;  %v5421_v9 = vld [vmem:[%s7178_s7 + $0x354] ss:$8 sps:$4 sm:$0xff]  }
 0x311   : > { %4036 = vmatpush1.bf16.msra.mxu1 %v5310_v12  ;;  %v1550_v12 = vsub.s32 7, %v5822_v35 }
 0x312   : > { %4037 = vmatprep.subr.bf16.mxu1 %v5315_v13  ;;  %v5391_v13 = vld [vmem:[%s7178_s7 + $0x2d0] ss:$8 sps:$4 sm:$0xff]  }
 0x315   : > { %4038 = vmatpush1.bf16.msra.mxu1 %v5313_v14  ;;  %v5396_v14 = vld [vmem:[%s7178_s7 + $0x2e4] ss:$8 sps:$4 sm:$0xff]  }
 0x316   : > { %4039 = vmatprep.subr.bf16.mxu1 %v5318_v15  ;;  %v1547_v15 = vrot.slane %v6803_v32, %v1546_v11  ;;  %v5419_v11 = vld [vmem:[%s7178_s7 + $0x350] ss:$8 sps:$4 sm:$0xff]  }
 0x319   : > { %4040 = vmatpush1.bf16.msra.mxu1 %v5316_v21  ;;  %v1551_v21 = vrot.slane %v6803_v32, %v1550_v12  ;;  %v5422_v12 = vld [vmem:[%s7178_s7 + $0x360] ss:$8 sps:$4 sm:$0xff]  }
 0x31a   : > { %4041 = vmatprep.subr.bf16.mxu1 %v5321_v24  ;;  %v5394_v24 = vld [vmem:[%s7178_s7 + $0x2e0] ss:$8 sps:$4 sm:$0xff]  }
 0x31d   : > { %4042 = vmatpush1.bf16.msra.mxu1 %v5319_v25 }
 0x31e   : > { %4043 = vmatprep.subr.bf16.mxu1 %v5324_v26 }
 0x321   : > { %4044 = vmatpush1.bf16.msra.mxu1 %v5322_v27 }
 0x322   : > { %4045 = vmatprep.subr.bf16.mxu1 %v5327_v28  ;;  %v5399_v28 = vld [vmem:[%s7178_s7 + $0x2f4] ss:$8 sps:$4 sm:$0xff]  }
 0x325   : > { %4046 = vmatpush1.bf16.msra.mxu1 %v5325_v16 }
 0x326   : > { %4047 = vmatprep.subr.bf16.mxu1 %v5330_v17 }
 0x329   : > { %4048 = vmatpush1.bf16.msra.mxu1 %v5328_v18 }
 0x32a   : > { %4049 = vmatprep.subr.bf16.mxu1 %v5333_v20 }
 0x32d   : > { %4050 = vmatpush1.bf16.msra.mxu1 %v5331_v22 }
 0x32e   : > { %4051 = vmatprep.subr.bf16.mxu1 %v5336_v23 }
 0x331   : > { %4052 = vmatpush1.bf16.msra.mxu1 %v5334_v29 }
 0x332   : > { %4053 = vmatprep.subr.bf16.mxu1 %v5339_v30 }
 0x335   : > { %4054 = vmatpush1.bf16.msra.mxu1 %v5337_v31 }
 0x336   : > { %4055 = vmatprep.subr.bf16.mxu1 %v5342_v34 }
 0x339   : > { %4056 = vmatpush1.bf16.msra.mxu1 %v5340_v36  ;;  %v5397_v36 = vld [vmem:[%s7178_s7 + $0x2f0] ss:$8 sps:$4 sm:$0xff]  }
 0x33a   : > { %4057 = vmatprep.subr.bf16.mxu1 %v5345_v37 }
 0x33d   : > { %4058 = vmatpush1.bf16.msra.mxu1 %v5343_v39 }
 0x33e   : > { %4059 = vmatprep.subr.bf16.mxu1 %v5348_v41 }
 0x341   : > { %4060 = vmatpush1.bf16.msra.mxu1 %v5346_v42  ;;  %v5402_v42 = vld [vmem:[%s7178_s7 + $0x304] ss:$8 sps:$4 sm:$0xff]  }
 0x342   : > { %4061 = vmatprep.subr.bf16.mxu1 %v5351_v44 }
 0x345   : > { %4062 = vmatpush1.bf16.msra.mxu1 %v5349_v45 }
 0x346   : > { %4074 = vmatprep.subr.bf16.mxu1 %v5354_v46 }
 0x348   : > { %4064 = vmatmul.mubr.bf16.vlgmr.msra.gmra.mrb[8].mxu1 %v6815_v4  ;;  %v5382_v4 = vld [vmem:[%s7178_s7 + $0x2a0] ss:$8 sps:$4 sm:$0xff]  }
 0x349   : > { %4075 = vmatpush1.bf16.msra.mxu1 %v5352_v47 }
 0x34a   : > { %4076 = vmatprep.subr.bf16.mxu1 %v5357_v48 }
 0x34d   : > { %4077 = vmatpush1.bf16.msra.mxu1 %v5355_v49 }
 0x34e   : > { %4078 = vmatprep.subr.bf16.mxu1 %v5360_v50 }
 0x351   : > { %4079 = vmatpush1.bf16.msra.mxu1 %v5358_v51  ;;  %v5015_v51 = vld [vmem:[%s7182_s11] ss:$0 sm:$0xff] }
 0x352   : > { %4080 = vmatprep.subr.bf16.mxu1 %v5363_v52 }
 0x355   : > { %4081 = vmatpush1.bf16.msra.mxu1 %v5361_v53 }
 0x356   : > { %4082 = vmatprep.subr.bf16.mxu1 %v5366_v55  ;;  %v5400_v55 = vld [vmem:[%s7178_s7 + $0x300] ss:$8 sps:$4 sm:$0xff]  }
 0x359   : > { %4083 = vmatpush1.bf16.msra.mxu1 %v5364_v56 }
 0x35a   : > { %4084 = vmatprep.subr.bf16.mxu1 %v5369_v58 }
 0x35d   : > { %4085 = vmatpush1.bf16.msra.mxu1 %v5367_v10  ;;  %v5406_v10 = vld [vmem:[%s7178_s7 + $0x314] ss:$8 sps:$4 sm:$0xff]  }
 0x35e   : > { %4086 = vmatprep.subr.bf16.mxu1 %v5372_v59 }
 0x361   : > { %4087 = vmatpush1.bf16.msra.mxu1 %v5370_v60 }
 0x362   : > { %4088 = vmatprep.subr.bf16.mxu1 %v5375_v61 }
 0x365   : > { %4089 = vmatpush1.bf16.msra.mxu1 %v5373_v57 }
 0x366   : > { %4090 = vmatprep.subr.bf16.mxu1 %v5378_v62 }
 0x369   : > { %4091 = vmatpush1.bf16.msra.mxu1 %v5376_v63  ;;  %v5404_v63 = vld [vmem:[%s7178_s7 + $0x310] ss:$8 sps:$4 sm:$0xff]  }
 0x36a   : > { %4092 = vmatprep.subr.bf16.mxu1 %v5381_v1  ;;  %v5410_v1 = vld [vmem:[%s7178_s7 + $0x324] ss:$8 sps:$4 sm:$0xff]  }
 0x36d   : > { %4093 = vmatpush1.bf16.msra.mxu1 %v5379_v2  ;;  %v5408_v2 = vld [vmem:[%s7178_s7 + $0x320] ss:$8 sps:$4 sm:$0xff]  }
 0x36e   : > { %4094 = vmatprep.subr.bf16.mxu1 %v5384_v3  ;;  %v5414_v3 = vld [vmem:[%s7178_s7 + $0x334] ss:$8 sps:$4 sm:$0xff]  }
 0x371   : > { %4095 = vmatpush1.bf16.msra.mxu1 %v5382_v4  ;;  %v5412_v4 = vld [vmem:[%s7178_s7 + $0x330] ss:$8 sps:$4 sm:$0xff]  }
 0x372   : > { %4096 = vmatprep.subr.bf16.mxu1 %v5387_v5  ;;  %v5418_v5 = vld [vmem:[%s7178_s7 + $0x344] ss:$8 sps:$4 sm:$0xff]  }
 0x375   : > { %4097 = vmatpush1.bf16.msra.mxu1 %v5385_v33 }
 0x376   : > { %4098 = vmatprep.subr.bf16.mxu1 %v5390_v6 }
 0x379   : > { %4099 = vmatpush1.bf16.msra.mxu1 %v5388_v7  ;;  %v5416_v7 = vld [vmem:[%s7178_s7 + $0x340] ss:$8 sps:$4 sm:$0xff]  }
 0x37a   : > { %4100 = vmatprep.subr.bf16.mxu1 %v5393_v8 }
 0x37d   : > { %4101 = vmatpush1.bf16.msra.mxu1 %v5391_v13  ;;  %v3089_v35 = vpop.f32.mrb[4].mxu1  ;;  %v5427_v13 = vld [vmem:[%s7178_s7 + $0x374] ss:$8 sps:$4 sm:$0xff]  }
 0x37e   : > { %v5083_v25 = vadd.f32 %v3089_v35, %v1539_v54  ;;  %v3175_v26 = vpop.f32.mrb[16].mxu0  ;;  %v3091_v27 = vpop.f32.mrb[5].mxu1  ;;  %4102 = vmatprep.subr.bf16.mxu1 %v5396_v14  ;;  %v5430_v14 = vld [vmem:[%s7178_s7 + $0x384] ss:$8 sps:$4 sm:$0xff]  }
 0x37f   : > { %v5087_v16 = vadd.f32 %v3175_v26, %v1547_v15  ;;  %v5084_v17 = vadd.f32 %v3091_v27, %v1543_v19  ;;  %v3177_v18 = vpop.f32.mrb[17].mxu0  ;;  %v3093_v20 = vpop.f32.mrb[6].mxu1  ;;  %v5436_v35 = vld [vmem:[%s7178_s7 + $0x3a4] ss:$8 sps:$4 sm:$0xff]   ;;  %v5437_v26 = vld [vmem:[%s7178_s7 + $0x3b0] ss:$8 sps:$4 sm:$0xff]  }
 0x380   : > { %v5088_v22 = vadd.f32 %v3177_v18, %v1551_v21  ;;  %v5085_v32 = vadd.f32 %v3093_v20, %v1539_v54  ;;  %v3179_v23 = vpop.f32.mrb[18].mxu0  ;;  %v3095_v29 = vpop.f32.mrb[7].mxu1  ;;  %v3188_v37 = vmax.f32 %v5083_v25, 0.0  ;;  %v5425_v54 = vld [vmem:[%s7178_s7 + $0x370] ss:$8 sps:$4 sm:$0xff]  }
 0x381   : > { %v5089_v30 = vadd.f32 %v3179_v23, %v1547_v15  ;;  %v5086_v31 = vadd.f32 %v3095_v29, %v1543_v19  ;;  %v3181_v34 = vpop.f32.mrb[19].mxu0  ;;  %4103 = vmatpush1.bf16.msra.mxu1 %v5394_v24  ;;  %v3190_v44 = vmax.f32 %v5087_v16, 0.0  ;;  %v3189_v45 = vmax.f32 %v5084_v17, 0.0  ;;  %v5428_v15 = vld [vmem:[%s7178_s7 + $0x380] ss:$8 sps:$4 sm:$0xff]  }
 0x382   : > { %v3196_v39 = vmax.f32 %v5085_v32, 0.0  ;;  %v5090_v41 = vadd.f32 %v3181_v34, %v1551_v21  ;;  %4104 = vmatprep.subr.bf16.mxu1 %v5399_v28  ;;  %v3191_v48 = vmax.f32 %v5088_v22, 0.0  ;;  %v5433_v19 = vld [vmem:[%s7178_s7 + $0x394] ss:$8 sps:$4 sm:$0xff]   ;;  %v5431_v21 = vld [vmem:[%s7178_s7 + $0x390] ss:$8 sps:$4 sm:$0xff]  }
 0x383   : > { %v3198_v46 = vmax.f32 %v5089_v30, 0.0  ;;  %v3197_v47 = vmax.f32 %v5086_v31, 0.0  ;;  %v5434_v24 = vld [vmem:[%s7178_s7 + $0x3a0] ss:$8 sps:$4 sm:$0xff]   ;;  %v5439_v25 = vld [vmem:[%s7178_s7 + $0x3b4] ss:$8 sps:$4 sm:$0xff]  }
 0x384   : > { %v3204_v49 = vpack.c.bf16 %v3196_v39, %v3188_v37  ;;  %v3199_v50 = vmax.f32 %v5090_v41, 0.0  ;;  %v5442_v27 = vld [vmem:[%s7178_s7 + $0x3c4] ss:$8 sps:$4 sm:$0xff]   ;;  %v5440_v28 = vld [vmem:[%s7178_s7 + $0x3c0] ss:$8 sps:$4 sm:$0xff]   ;;  %v5454_v30 = vld [vmem:[%s7185_s14 + $0x10] sm:$0xff]  }
 0x385   : > { %v7037_v52 = vpack.c.bf16 %v3198_v46, %v3190_v44  ;;  %v3205_v53 = vpack.c.bf16 %v3197_v47, %v3189_v45  ;;  %4105 = vmatpush1.bf16.msra.mxu1 %v5397_v36  ;;  %v5445_v16 = vld [vmem:[%s7178_s7 + $0x3d4] ss:$8 sps:$4 sm:$0xff]   ;;  %v5443_v17 = vld [vmem:[%s7178_s7 + $0x3d0] ss:$8 sps:$4 sm:$0xff]   ;;  %v5448_v18 = vld [vmem:[%s7178_s7 + $0x3e4] ss:$8 sps:$4 sm:$0xff]  }
 0x386   : > { %v3207_v56 = vpack.c.bf16 %v3199_v50, %v3191_v48  ;;  %v4249_v58 = vpop.f32.mrb[20].mxu0  ;;  %4117 = vmatprep.subr.bf16.mxu1 %v5402_v42  ;;  %v5446_v20 = vld [vmem:[%s7178_s7 + $0x3e0] ss:$8 sps:$4 sm:$0xff]   ;;  %v5451_v22 = vld [vmem:[%s7178_s7 + $0x3f4] ss:$8 sps:$4 sm:$0xff]  }
 0x387   : > { %v4250_v59 = vadd.f32 %v5015_v51, %v4249_v58  ;;  %v5049_v60 = vpop.f32.mrb[21].mxu0  ;;  %4106 = vmatprep.mubr.bf16.mxu1 %v3205_v53  ;;  %v5449_v32 = vld [vmem:[%s7178_s7 + $0x3f0] ss:$8 sps:$4 sm:$0xff]   ;;  %v5452_v23 = vld [vmem:[%s7185_s14] sm:$0xff]   ;;  %v5453_v29 = vld [vmem:[%s7185_s14 + $0x8] sm:$0xff]  }
 0x388   : > { %v4252_v61 = vpop.f32.mrb[22].mxu0  ;;  %4107 = vmatmul.mubr.bf16.vlgmr.msra.gmra.mrb[8].mxu1 %v3204_v49  ;;  %v5455_v31 = vld [vmem:[%s7185_s14 + $0x18] sm:$0xff]   ;;  %v5018_v34 = vld [vmem:[%s7184_s13] ss:$0 sm:$0xff] }
 0x389   : > { %v4253_v57 = vadd.f32 %v5015_v51, %v4252_v61  ;;  %4118 = vmatpush1.bf16.msra.mxu1 %v5400_v55  ;;  %v5050_v62 = vpop.f32.mrb[23].mxu0  ;;  %4149 = vmatprep.mubr.bf16.mxu1 %v3207_v56  ;;  %5456 = vtanh.f32 %v4250_v59 }
 0x38a   : > { %4119 = vmatprep.subr.bf16.mxu1 %v5406_v10 }
 0x38b   : > { %5458 = vtanh.f32 %v4253_v57 }
 0x38d   : > { %4120 = vmatpush1.bf16.msra.mxu1 %v5404_v63 }
 0x38e   : > { %4121 = vmatprep.subr.bf16.mxu1 %v5410_v1 }
 0x391   : > { %4122 = vmatpush1.bf16.msra.mxu1 %v5408_v2 }
 0x392   : > { %4123 = vmatprep.subr.bf16.mxu1 %v5414_v3 }
 0x393   : > { %v5457_v33 = vpop.eup %5456 }
 0x395   : > { %v5459_v6 = vpop.eup %5458  ;;  %4124 = vmatpush1.bf16.msra.mxu1 %v5412_v4 }
 0x396   : > { %4125 = vmatprep.subr.bf16.mxu1 %v5418_v5  ;;  %v4258_v8 = vpack.c.bf16 %v5459_v6, %v5457_v33 }
 0x398   : > { %5060 = vmatmul.mubr.msk.bf16.vlgmr.msra.gmra.mrb[24].mxu0 %vm4298_vm3, %v4258_v8 }
 0x399   : > { %4126 = vmatpush1.bf16.msra.mxu1 %v5416_v7  ;;  %5071 = vmatprep.mubr.msk.bf16.mxu0 %vm5490_vm1, %v5489_v0 }
 0x39a   : > { %4127 = vmatprep.subr.bf16.mxu1 %v5421_v9  ;;  %5064 = vmatpush3.bf16.msra.mxu0 %v5452_v23 }
 0x39b   : > { %5065 = vmatprep.subr.bf16.mxu0 %v5489_v0 }
 0x39d   : > { %4128 = vmatpush1.bf16.msra.mxu1 %v5419_v11 }
 0x39e   : > { %4129 = vmatprep.subr.bf16.mxu1 %v5424_v38  ;;  %5066 = vmatpush3.bf16.msra.mxu0 %v5453_v29 }
 0x39f   : > { %5067 = vmatprep.subr.bf16.mxu0 %v5489_v0 }
 0x3a1   : > { %4130 = vmatpush1.bf16.msra.mxu1 %v5422_v12 }
 0x3a2   : > { %4131 = vmatprep.subr.bf16.mxu1 %v5427_v13  ;;  %5068 = vmatpush3.bf16.msra.mxu0 %v5454_v30 }
 0x3a3   : > { %5069 = vmatprep.subr.bf16.mxu0 %v5489_v0  ;;  %v3336_v0 = vld [vmem:[%s7179_s8] sm:$0x3] }
 0x3a4   : > { %v3341_v48 = vrot.slane %v3336_v0, %v5831_v40  ;;  %v3345_v49 = vrot.slane %v3336_v0, %v5837_v43 }
 0x3a5   : > { %4132 = vmatpush1.bf16.msra.mxu1 %v5425_v54 }
 0x3a6   : > { %4133 = vmatprep.subr.bf16.mxu1 %v5430_v14  ;;  %5070 = vmatpush3.bf16.msra.mxu0 %v5455_v31 }
 0x3a9   : > { %4134 = vmatpush1.bf16.msra.mxu1 %v5428_v15 }
 0x3aa   : > { %4135 = vmatprep.subr.bf16.mxu1 %v5433_v19 }
 0x3ad   : > { %4136 = vmatpush1.bf16.msra.mxu1 %v5431_v21 }
 0x3ae   : > { %4137 = vmatprep.subr.bf16.mxu1 %v5436_v35 }
 0x3b1   : > { %4138 = vmatpush1.bf16.msra.mxu1 %v5434_v24  ;;  %v5024_v24 = vld [vmem:[#allocation2] ss:$0 sm:$0xff] }
 0x3b2   : > { %4139 = vmatprep.subr.bf16.mxu1 %v5439_v25 }
 0x3b5   : > { %4140 = vmatpush1.bf16.msra.mxu1 %v5437_v26 }
 0x3b6   : > { %4141 = vmatprep.subr.bf16.mxu1 %v5442_v27 }
 0x3b9   : > { %4142 = vmatpush1.bf16.msra.mxu1 %v5440_v28 }
 0x3ba   : > { %4143 = vmatprep.subr.bf16.mxu1 %v5445_v16 }
 0x3bd   : > { %4144 = vmatpush1.bf16.msra.mxu1 %v5443_v17 }
 0x3be   : > { %4145 = vmatprep.subr.bf16.mxu1 %v5448_v18 }
 0x3c1   : > { %4146 = vmatpush1.bf16.msra.mxu1 %v5446_v20 }
 0x3c2   : > { %4147 = vmatprep.subr.bf16.mxu1 %v5451_v22 }
 0x3c5   : > { %4148 = vmatpush1.bf16.msra.mxu1 %v5449_v32 }
 0x3c8   : > { %4150 = vmatmul.mubr.bf16.vlgmr.msra.gmra.mrb[8].mxu1 %v7037_v52 }
 0x46b   : > { %v4336_v36 = vpop.f32.mrb[24].mxu0 }
 0x46c   : > { %v4337_v37 = vadd.f32 %v5018_v34, %v4336_v36  ;;  %v5061_v39 = vpop.f32.mrb[25].mxu0 }
 0x46d   : > { %v4339_v41 = vpop.f32.mrb[26].mxu0 }
 0x46e   : > { %v4340_v42 = vadd.f32 %v5018_v34, %v4339_v41  ;;  %v5062_v44 = vpop.f32.mrb[27].mxu0  ;;  %5460 = vtanh.f32 %v4337_v37 }
 0x470   : > { %5462 = vtanh.f32 %v4340_v42 }
 0x478   : > { %v5461_v45 = vpop.eup %5460 }
 0x47a   : > { %v5463_v46 = vpop.eup %5462 }
 0x47b   : > { %v4345_v47 = vpack.c.bf16 %v5463_v46, %v5461_v45 }
 0x47d   : > { %5072 = vmatmul.mubr.msk.bf16.vlgmr.msra.gmra.mrb[28].mxu0 %vm4298_vm3, %v4345_v47 }
 0x49b   : > { %v4151_v50 = vpop.f32.mrb[8].mxu1 }
 0x49c   : > { %v5091_v51 = vadd.f32 %v4151_v50, %v3341_v48  ;;  %v4153_v52 = vpop.f32.mrb[9].mxu1 }
 0x49d   : > { %v5092_v53 = vadd.f32 %v4153_v52, %v3345_v49  ;;  %v4155_v55 = vpop.f32.mrb[10].mxu1 }
 0x49e   : > { %v4160_v56 = vsub.f32 0.0, %v5091_v51  ;;  %v5093_v58 = vadd.f32 %v4155_v55, %v3341_v48  ;;  %v4157_v10 = vpop.f32.mrb[11].mxu1 }
 0x49f   : > { %v4161_v59 = vsub.f32 0.0, %v5092_v53  ;;  %v5094_v60 = vadd.f32 %v4157_v10, %v3345_v49 }
 0x4a0   : > { %v4164_v61 = vmul.f32 1.442695, %v4160_v56  ;;  %v4162_v57 = vsub.f32 0.0, %v5093_v58 }
 0x4a1   : > { %v4166_v62 = vmul.f32 1.442695, %v4161_v59  ;;  %v4163_v63 = vsub.f32 0.0, %v5094_v60 }
 0x4a2   : > { %5464 = vpow2.f32 %v4164_v61  ;;  %v4168_v1 = vmul.f32 1.442695, %v4162_v57 }
 0x4a3   : > { %5466 = vpow2.f32 %v4166_v62  ;;  %v4170_v40 = vmul.f32 1.442695, %v4163_v63 }
 0x4a4   : > { %5468 = vpow2.f32 %v4168_v1 }
 0x4a5   : > { %5470 = vpow2.f32 %v4170_v40 }
 0x4ac   : > { %v5465_v43 = vpop.eup %5464 }
 0x4ad   : > { %v5467_v2 = vpop.eup %5466  ;;  %v4172_v3 = vadd.f32 1.0, %v5465_v43 }
 0x4ae   : > { %v5469_v4 = vpop.eup %5468  ;;  %v4173_v5 = vadd.f32 1.0, %v5467_v2 }
 0x4af   : > { %v5471_v33 = vpop.eup %5470  ;;  %5472 = vrcp.f32 %v4172_v3  ;;  %v4174_v6 = vadd.f32 1.0, %v5469_v4 }
 0x4b0   : > { %5474 = vrcp.f32 %v4173_v5  ;;  %v4175_v7 = vadd.f32 1.0, %v5471_v33 }
 0x4b1   : > { %5476 = vrcp.f32 %v4174_v6 }
 0x4b2   : > { %5478 = vrcp.f32 %v4175_v7 }
 0x4b9   : > { %v5473_v8 = vpop.eup %5472 }
 0x4ba   : > { %v5475_v9 = vpop.eup %5474  ;;  %v4180_v11 = vmax.f32 %v5473_v8, 0.0 }
 0x4bb   : > { %v5477_v38 = vpop.eup %5476  ;;  %v4181_v12 = vmax.f32 %v5475_v9, 0.0 }
 0x4bc   : > { %v5479_v13 = vpop.eup %5478  ;;  %v4184_v54 = vmin.f32 %v4180_v11, 1.0  ;;  %v4182_v14 = vmax.f32 %v5477_v38, 0.0 }
 0x4bd   : > { %v4185_v15 = vmin.f32 %v4181_v12, 1.0  ;;  %v4183_v19 = vmax.f32 %v5479_v13, 0.0 }
 0x4be   : > { %4188 = vst [vmem:[%s584_s22] sm:$0xff] %v4184_v54  ;;  %v4186_v21 = vmin.f32 %v4182_v14, 1.0 }
 0x4bf   : > { %4189 = vst [vmem:[%s584_s22 + $0x8] sm:$0xff] %v4185_v15  ;;  %v4187_v35 = vmin.f32 %v4183_v19, 1.0 }
 0x4c0   : > { %4190 = vst [vmem:[%s584_s22 + $0x10] sm:$0xff] %v4186_v21 }
 0x4c1   : > { %4191 = vst [vmem:[%s584_s22 + $0x18] sm:$0xff] %v4187_v35 }
 0x550   : > { %v4422_v25 = vpop.f32.mrb[28].mxu0 }
 0x551   : > { %v4423_v26 = vadd.f32 %v5024_v24, %v4422_v25  ;;  %v5073_v27 = vpop.f32.mrb[29].mxu0 }
 0x552   : > { %v4425_v28 = vpop.f32.mrb[30].mxu0 }
 0x553   : > { %4430 = vst.msk [vmem:[%s590_s19] sm:$0xff] %vm4429_vm4, %v4423_v26  ;;  %v4426_v16 = vadd.f32 %v5024_v24, %v4425_v28  ;;  %v5074_v17 = vpop.f32.mrb[31].mxu0 }
 0x555   : > { %4431 = vst.msk [vmem:[%s590_s19 + $0x8] sm:$0xff] %vm4429_vm4, %v4426_v16 }
 0x556 PF: > { %s7196_s26 = sld [smem:[#allocation3_spill]] }
 0x55c   : > { %s30_s26 = sadd.s32 1, %s7196_s26  }
 0x55d   : > { %p27_p4 = scmp.ge.s32.totalorder %s30_s26, 4  }
 0x55f   :  { %29 = sbr.rel (!%p27_p4) target bundleno = 3 (0x3), region = 129 }

</bundles_post_ra>
